<compile_context>
chip_gen: v7x
topology: tpu7x:2x2x1
jax: 0.10.0
libtpu: 0.0.40
codegen_flags: <defaults>
</compile_context>

<pallas_src>
import functools

import numpy as np
import jax
import jax.numpy as jnp
from jax import lax
from jax.experimental import pallas as pl
from jax.experimental.pallas import tpu as pltpu

_MASK_VALUE = -1e9  # finite (not -inf): every query column keeps live same-window keys


# ---------------------------------------------------------------------------
# Pallas kernel: one whole image (all windows) per grid step.
# Layout: channels on sublanes, tokens on lanes -> (C, T) with T = nw*ws*ws.
# ---------------------------------------------------------------------------
def _wmsa_image_kernel(x_ref, w_ref, b_ref, bias_ref, winmask_ref, o_ref, attn_ref, *,
                       n_heads, head_dim, in_dim, n_windows, win_tokens):
    c = in_dim
    nw, p2 = n_windows, win_tokens
    t = nw * p2

    xT = x_ref[0]                                            # (C, T) bf16

    # Fused QKV projection on the MXU (bf16 operands, f32 accumulation).
    # Attention scale is folded into the Q rows of the weight/bias slabs.
    qkvT = jnp.dot(w_ref[:3 * c, :], xT,
                   preferred_element_type=jnp.float32) + b_ref[:3 * c, :]     # (3C, T) f32

    for h in range(n_heads):                                 # tiny static unroll (n_heads=4)
        # 8-aligned sublane slices; bf16 for the MXU, accumulation stays f32.
        qT = qkvT[h * head_dim:(h + 1) * head_dim, :].astype(jnp.bfloat16)           # (hd, T)
        kT = qkvT[c + h * head_dim:c + (h + 1) * head_dim, :].astype(jnp.bfloat16)   # (hd, T)
        vT = qkvT[2 * c + h * head_dim:2 * c + (h + 1) * head_dim, :].astype(jnp.bfloat16)

        # S[key, query] for all windows at once, transposed-LHS dot_general
        # (no XLU relayout of kT).  Cross-window pairs are killed below.
        s = lax.dot_general(kT, qT, (((0,), (0,)), ((), ())),
                            preferred_element_type=jnp.float32)              # (T, T) f32

        # Rebuild the block-diagonal additive bias from the compact slabs:
        # view keys as (window, token-in-window); the rel-pos + shift bias only
        # depends on (key-in-window, query), the -1e9 cross-window mask only on
        # (key-window, query).  Off-block-diagonal entries end up <= -1e9.
        s = (s.reshape(nw, p2, t)
             + bias_ref[h][None, :, :]            # (1, p2, T): rel-pos + SW shift mask
             + winmask_ref[...]                   # (nw, 1, T): 0 same window, -1e9 else
             ).reshape(t, t)

        # Numerically-stable f32 softmax over the key axis (axis 0 / sublanes).
        m = jnp.max(s, axis=0, keepdims=True)                 # (1, T)
        p = jnp.exp(s - m)                                    # (T, T)
        l = jnp.sum(p, axis=0, keepdims=True)                 # (1, T)

        # Attention-weighted values (bf16 MXU operands), normalized AFTER the
        # matmul on the small (hd, T) result; exact reciprocal (accuracy path).
        o_h = jnp.dot(vT, p.astype(jnp.bfloat16),
                      preferred_element_type=jnp.float32)     # (hd, T)
        attn_ref[h * head_dim:(h + 1) * head_dim, :] = o_h * pl.reciprocal(l, approx=False)

    # Output projection from the (C, T) scratch; lane-dense (out_dim, T) store.
    o_ref[0] = jnp.dot(w_ref[3 * c:, :], attn_ref[...].astype(jnp.bfloat16),
                       preferred_element_type=jnp.float32) + b_ref[3 * c:, :]


# ---------------------------------------------------------------------------
# Host-side helpers
# ---------------------------------------------------------------------------
def _shift_mask_bool(h_windows, w_windows, p, shift, wtype):
    """Replicates WMSA.generate_mask -> (nw, p*p, p*p) bool, indexed [w, query, key]."""
    m = np.zeros((h_windows, w_windows, p, p, p, p), dtype=bool)
    if wtype != 'W':
        s = p - shift
        m[-1, :, :s, :, s:, :] = True
        m[-1, :, s:, :, :s, :] = True
        m[:, -1, :, :s, :, s:] = True
        m[:, -1, :, s:, :, :s] = True
    return m.reshape(h_windows * w_windows, p * p, p * p)


def _relative_bias(rel_params, window_size):
    """Replicates WMSA.relative_embedding -> (n_heads, p*p, p*p), indexed [h, query, key]."""
    cord = np.array([[i, j] for i in range(window_size) for j in range(window_size)])
    relation = cord[:, None, :] - cord[None, :, :] + window_size - 1
    return rel_params[:, relation[:, :, 0], relation[:, :, 1]]


# ---------------------------------------------------------------------------
# Wrapper: window partitioning, weight/bias fusion + pallas_call
# ---------------------------------------------------------------------------
def wmsa_forward(x, wqkv, bqkv, rel_params, wout, bout, *,
                 window_size, head_dim, wtype):
    b, H, W, c = x.shape
    n_heads = c // head_dim
    out_dim = wout.shape[1]
    ws = window_size
    p2 = ws * ws
    shift = ws // 2 if wtype != 'W' else 0
    scale = float(head_dim ** -0.5)

    if wtype != 'W':
        x = jnp.roll(x, (-shift, -shift), axis=(1, 2))

    hw, ww = H // ws, W // ws
    nw = hw * ww
    T = nw * p2

    # b (w1 p1) (w2 p2) c -> b c (w1 w2 p1 p2): single transpose, tokens on lanes.
    xT = x.reshape(b, hw, ws, ww, ws, c).transpose(0, 5, 1, 3, 2, 4).reshape(b, c, T)
    xT = xT.astype(jnp.bfloat16)                               # bf16 MXU operand / half DMA

    # Fused transposed weight/bias slabs; attention scale folded into the Q rows.
    scale_col = np.concatenate([np.full((c,), scale, np.float32),
                                np.ones((2 * c,), np.float32)])
    w_slab = jnp.concatenate([wqkv.T * scale_col[:, None], wout.T],
                             axis=0).astype(jnp.bfloat16)                      # (3C+out, C)
    b_slab = jnp.concatenate([bqkv * scale_col, bout],
                             axis=0)[:, None].astype(jnp.float32)              # (3C+out, 1)

    # Compact per-window additive bias (n_heads, p2, T), indexed
    # [h, key-in-window, wq*p2 + query-in-window]: rel-pos bias + SW shift mask.
    rel = _relative_bias(np.asarray(rel_params), ws).astype(np.float32)        # [h, q, k]
    shift_add = np.where(_shift_mask_bool(hw, ww, ws, shift, wtype),
                         _MASK_VALUE, 0.0).astype(np.float32)                  # [w, q, k]
    blk = rel[:, None].transpose(0, 1, 3, 2) + shift_add.transpose(0, 2, 1)[None]  # [h,w,k,q]
    bias_packed = np.ascontiguousarray(
        blk.transpose(0, 2, 1, 3).reshape(n_heads, p2, T))                     # [h, k, (w q)]

    # Cross-window exclusion mask (nw, 1, T): 0 where the query token belongs to
    # the key's window, -1e9 elsewhere (masks data kept in f32, review concern 3).
    qwin = np.repeat(np.arange(nw), p2)                                        # (T,)
    winmask = np.where(qwin[None, :] == np.arange(nw)[:, None],
                       0.0, _MASK_VALUE).astype(np.float32)[:, None, :]        # (nw, 1, T)

    kernel = functools.partial(_wmsa_image_kernel, n_heads=n_heads, head_dim=head_dim,
                               in_dim=c, n_windows=nw, win_tokens=p2)

    out_t = pl.pallas_call(
        kernel,
        out_shape=jax.ShapeDtypeStruct((b, out_dim, T), jnp.float32),
        grid=(b,),
        in_specs=[
            pl.BlockSpec((1, c, T), lambda i: (i, 0, 0)),                      # per-image xT
            pl.BlockSpec((3 * c + out_dim, c), lambda i: (0, 0)),              # fused W (bf16)
            pl.BlockSpec((3 * c + out_dim, 1), lambda i: (0, 0)),              # fused b (f32)
            pl.BlockSpec((n_heads, p2, T), lambda i: (0, 0, 0)),               # compact bias
            pl.BlockSpec((nw, 1, T), lambda i: (0, 0, 0)),                     # window mask
        ],
        out_specs=pl.BlockSpec((1, out_dim, T), lambda i: (i, 0, 0)),
        scratch_shapes=[pltpu.VMEM((c, T), jnp.float32)],                      # head outputs
        compiler_params=pltpu.CompilerParams(
            dimension_semantics=("parallel",)),                                # 2 TCs on v7x
    )(xT, w_slab, b_slab, jnp.asarray(bias_packed), jnp.asarray(winmask))

    # b c (w1 w2 p1 p2) -> b (w1 p1) (w2 p2) c: single transpose back.
    out = out_t.reshape(b, out_dim, hw, ww, ws, ws).transpose(0, 2, 4, 3, 5, 1)
    out = out.reshape(b, H, W, out_dim)
    if wtype != 'W':
        out = jnp.roll(out, (shift, shift), axis=(1, 2))
    return out


# ---------------------------------------------------------------------------
# Pure-JAX reference (mirrors the PyTorch forward) for validation
# ---------------------------------------------------------------------------
def wmsa_reference(x, wqkv, bqkv, rel_params, wout, bout, *,
                   window_size, head_dim, wtype):
    b, H, W, c = x.shape
    n_heads = c // head_dim
    ws = window_size
    shift = ws // 2 if wtype != 'W' else 0
    if wtype != 'W':
        x = jnp.roll(x, (-shift, -shift), axis=(1, 2))
    hw, ww = H // ws, W // ws
    xw = x.reshape(b, hw, ws, ww, ws, c).transpose(0, 1, 3, 2, 4, 5)
    xw = xw.reshape(b, hw * ww, ws * ws, c)
    qkv = xw @ wqkv + bqkv
    qkv = qkv.reshape(b, hw * ww, ws * ws, 3 * n_heads, head_dim).transpose(3, 0, 1, 2, 4)
    q, k, v = qkv[:n_heads], qkv[n_heads:2 * n_heads], qkv[2 * n_heads:]
    sim = jnp.einsum('hbwpc,hbwqc->hbwpq', q, k) * (head_dim ** -0.5)
    rel = jnp.asarray(_relative_bias(np.asarray(rel_params), ws))
    sim = sim + rel[:, None, None]
    if wtype != 'W':
        mask = jnp.asarray(_shift_mask_bool(hw, ww, ws, shift, wtype))
        sim = jnp.where(mask[None, None], -jnp.inf, sim)
    probs = jax.nn.softmax(sim, axis=-1)
    out = jnp.einsum('hbwij,hbwjc->hbwic', probs, v)
    out = out.transpose(1, 2, 3, 0, 4).reshape(b, hw * ww, ws * ws, c)
    out = out @ wout + bout
    out = out.reshape(b, hw, ww, ws, ws, -1).transpose(0, 1, 3, 2, 4, 5)
    out = out.reshape(b, H, W, -1)
    if wtype != 'W':
        out = jnp.roll(out, (shift, shift), axis=(1, 2))
    return out


# ---------------------------------------------------------------------------
if __name__ == "__main__":
    # Module config: input_dim=32, output_dim=32, head_dim=8 -> 4 heads,
    # window_size=4, type='SW' (shifted windows: exercises mask + cyclic roll).
    input_dim, output_dim, head_dim, window_size, wtype = 32, 32, 8, 4, 'SW'
    n_heads = input_dim // head_dim
    B, H, W = 2, 16, 16

    key = jax.random.PRNGKey(0)
    kx, k1, k2, k3, k4, k5 = jax.random.split(key, 6)

    x = jax.random.normal(kx, (B, H, W, input_dim), dtype=jnp.float32)

    # Deterministic synthetic parameters (shapes from WMSA.__init__).
    wqkv = 0.05 * jax.random.normal(k1, (input_dim, 3 * input_dim), dtype=jnp.float32)
    bqkv = 0.05 * jax.random.normal(k2, (3 * input_dim,), dtype=jnp.float32)
    wout = 0.05 * jax.random.normal(k3, (input_dim, output_dim), dtype=jnp.float32)
    bout = 0.05 * jax.random.normal(k4, (output_dim,), dtype=jnp.float32)
    # relative_position_params after the __init__ reshape/transpose: (n_heads, 2w-1, 2w-1)
    # TODO(synk): trunc_normal_ truncation not replicated; plain normal * 0.02 used.
    rel_params = 0.02 * jax.random.normal(
        k5, ((2 * window_size - 1) ** 2, n_heads), dtype=jnp.float32)
    rel_params = rel_params.reshape(
        2 * window_size - 1, 2 * window_size - 1, n_heads).transpose(2, 0, 1)

    out = wmsa_forward(x, wqkv, bqkv, rel_params, wout, bout,
                       window_size=window_size, head_dim=head_dim, wtype=wtype)
    out = jax.block_until_ready(out)

    ref = wmsa_reference(x, wqkv, bqkv, rel_params, wout, bout,
                         window_size=window_size, head_dim=head_dim, wtype=wtype)
    ref = jax.block_until_ready(ref)

    assert out.shape == (B, H, W, output_dim), out.shape
    # bf16 MXU operands (f32 accumulation + f32 softmax): tolerance loosened vs the
    # all-f32 version; observed error is a few 1e-3 on outputs of ~0.1 magnitude.
    np.testing.assert_allclose(np.asarray(out), np.asarray(ref), atol=2e-2, rtol=2e-2)
    print("KERNEL_OK")
</pallas_src>

<mosaic_0001>
module attributes {stable_mosaic.version = 11 : i64} {
  func.func @_wmsa_image_kernel(%arg0: i32, %arg1: memref<1x32x256xbf16, #tpu.memory_space<vmem>>, %arg2: memref<128x32xbf16, #tpu.memory_space<vmem>>, %arg3: memref<128x1xf32, #tpu.memory_space<vmem>>, %arg4: memref<4x16x256xf32, #tpu.memory_space<vmem>>, %arg5: memref<16x1x256xf32, #tpu.memory_space<vmem>>, %arg6: memref<1x32x256xf32, #tpu.memory_space<vmem>>, %arg7: memref<32x256xf32, #tpu.memory_space<vmem>>) attributes {dimension_semantics = [#tpu.dimension_semantics<parallel>], iteration_bounds = array<i64: 2>, scalar_prefetch = 0 : i64, scratch_operands = 1 : i64, tpu.core_type = #tpu.core_type<tc>, window_params = [{transform_indices = @transform_0, window_bounds = array<i64: 1, 32, 256>}, {pipeline_mode = #tpu.pipeline_mode<synchronous>, transform_indices = @transform_1, window_bounds = array<i64: 128, 32>}, {pipeline_mode = #tpu.pipeline_mode<synchronous>, transform_indices = @transform_2, window_bounds = array<i64: 128, 1>}, {pipeline_mode = #tpu.pipeline_mode<synchronous>, transform_indices = @transform_3, window_bounds = array<i64: 4, 16, 256>}, {pipeline_mode = #tpu.pipeline_mode<synchronous>, transform_indices = @transform_4, window_bounds = array<i64: 16, 1, 256>}, {transform_indices = @transform_5, window_bounds = array<i64: 1, 32, 256>}]} {
    %c0 = arith.constant 0 : index
    %c0_0 = arith.constant 0 : index
    %c0_1 = arith.constant 0 : index
    %0 = vector.load %arg1[%c0, %c0_0, %c0_1] : memref<1x32x256xbf16, #tpu.memory_space<vmem>>, vector<1x32x256xbf16>
    %1 = vector.shape_cast %0 : vector<1x32x256xbf16> to vector<32x256xbf16>
    %c0_2 = arith.constant 0 : index
    %c0_3 = arith.constant 0 : index
    %2 = vector.load %arg2[%c0_2, %c0_3] : memref<128x32xbf16, #tpu.memory_space<vmem>>, vector<96x32xbf16>
    %cst = arith.constant dense<0.000000e+00> : vector<96x256xf32>
    %3 = tpu.matmul %2, %1, %cst {dimension_numbers = #tpu.dot_dimension_numbers<[1], [0], [0], [1], [0, 0, 1, 1], [], []>} : vector<96x32xbf16>, vector<32x256xbf16>, vector<96x256xf32> -> vector<96x256xf32>
    %c0_4 = arith.constant 0 : index
    %c0_5 = arith.constant 0 : index
    %4 = vector.load %arg3[%c0_4, %c0_5] : memref<128x1xf32, #tpu.memory_space<vmem>>, vector<96x1xf32>
    %5 = vector.broadcast %4 : vector<96x1xf32> to vector<96x256xf32>
    %6 = arith.addf %3, %5 : vector<96x256xf32>
    %7 = vector.extract_strided_slice %6 {offsets = [0, 0], sizes = [8, 256], strides = [1, 1]} : vector<96x256xf32> to vector<8x256xf32>
    %8 = arith.truncf %7 : vector<8x256xf32> to vector<8x256xbf16>
    %9 = vector.extract_strided_slice %6 {offsets = [32, 0], sizes = [8, 256], strides = [1, 1]} : vector<96x256xf32> to vector<8x256xf32>
    %10 = arith.truncf %9 : vector<8x256xf32> to vector<8x256xbf16>
    %11 = vector.extract_strided_slice %6 {offsets = [64, 0], sizes = [8, 256], strides = [1, 1]} : vector<96x256xf32> to vector<8x256xf32>
    %12 = arith.truncf %11 : vector<8x256xf32> to vector<8x256xbf16>
    %cst_6 = arith.constant dense<0.000000e+00> : vector<256x256xf32>
    %13 = tpu.matmul %10, %8, %cst_6 {dimension_numbers = #tpu.dot_dimension_numbers<[0], [0], [1], [1], [0, 1, 1, 1], [], []>} : vector<8x256xbf16>, vector<8x256xbf16>, vector<256x256xf32> -> vector<256x256xf32>
    %14 = vector.shape_cast %13 : vector<256x256xf32> to vector<16x16x256xf32>
    %c0_7 = arith.constant 0 : index
    %c0_8 = arith.constant 0 : index
    %c0_9 = arith.constant 0 : index
    %15 = vector.load %arg4[%c0_7, %c0_8, %c0_9] : memref<4x16x256xf32, #tpu.memory_space<vmem>>, vector<1x16x256xf32>
    %16 = vector.shape_cast %15 : vector<1x16x256xf32> to vector<16x256xf32>
    %17 = vector.shape_cast %16 : vector<16x256xf32> to vector<1x16x256xf32>
    %18 = vector.broadcast %17 : vector<1x16x256xf32> to vector<16x16x256xf32>
    %19 = arith.addf %14, %18 : vector<16x16x256xf32>
    %c0_10 = arith.constant 0 : index
    %c0_11 = arith.constant 0 : index
    %c0_12 = arith.constant 0 : index
    %20 = vector.load %arg5[%c0_10, %c0_11, %c0_12] : memref<16x1x256xf32, #tpu.memory_space<vmem>>, vector<16x1x256xf32>
    %21 = vector.broadcast %20 : vector<16x1x256xf32> to vector<16x16x256xf32>
    %22 = arith.addf %19, %21 : vector<16x16x256xf32>
    %23 = vector.shape_cast %22 : vector<16x16x256xf32> to vector<256x256xf32>
    %cst_13 = arith.constant dense<0xFF800000> : vector<256xf32>
    %24 = vector.multi_reduction <maximumf>, %23, %cst_13 [0] : vector<256x256xf32> to vector<256xf32>
    %25 = vector.shape_cast %24 : vector<256xf32> to vector<1x256xf32>
    %26 = vector.broadcast %25 : vector<1x256xf32> to vector<256x256xf32>
    %27 = arith.subf %23, %26 : vector<256x256xf32>
    %28 = math.exp %27 : vector<256x256xf32>
    %cst_14 = arith.constant dense<0.000000e+00> : vector<256xf32>
    %29 = vector.multi_reduction <add>, %28, %cst_14 [0] : vector<256x256xf32> to vector<256xf32>
    %30 = vector.shape_cast %29 : vector<256xf32> to vector<1x256xf32>
    %31 = arith.truncf %28 : vector<256x256xf32> to vector<256x256xbf16>
    %cst_15 = arith.constant dense<0.000000e+00> : vector<8x256xf32>
    %32 = tpu.matmul %12, %31, %cst_15 {dimension_numbers = #tpu.dot_dimension_numbers<[1], [0], [0], [1], [0, 0, 1, 1], [], []>} : vector<8x256xbf16>, vector<256x256xbf16>, vector<8x256xf32> -> vector<8x256xf32>
    %33 = tpu.reciprocal %30 : vector<1x256xf32> -> vector<1x256xf32>
    %34 = vector.broadcast %33 : vector<1x256xf32> to vector<8x256xf32>
    %35 = arith.mulf %32, %34 : vector<8x256xf32>
    %c0_16 = arith.constant 0 : index
    %c0_17 = arith.constant 0 : index
    %36 = vector.load %arg7[%c0_16, %c0_17] : memref<32x256xf32, #tpu.memory_space<vmem>>, vector<8x256xf32>
    tpu.vector_store %arg7[%c0_16, %c0_17], %35 {strides = array<i32>} : memref<32x256xf32, #tpu.memory_space<vmem>>, vector<8x256xf32>,
    %37 = vector.extract_strided_slice %6 {offsets = [8, 0], sizes = [8, 256], strides = [1, 1]} : vector<96x256xf32> to vector<8x256xf32>
    %38 = arith.truncf %37 : vector<8x256xf32> to vector<8x256xbf16>
    %39 = vector.extract_strided_slice %6 {offsets = [40, 0], sizes = [8, 256], strides = [1, 1]} : vector<96x256xf32> to vector<8x256xf32>
    %40 = arith.truncf %39 : vector<8x256xf32> to vector<8x256xbf16>
    %41 = vector.extract_strided_slice %6 {offsets = [72, 0], sizes = [8, 256], strides = [1, 1]} : vector<96x256xf32> to vector<8x256xf32>
    %42 = arith.truncf %41 : vector<8x256xf32> to vector<8x256xbf16>
    %cst_18 = arith.constant dense<0.000000e+00> : vector<256x256xf32>
    %43 = tpu.matmul %40, %38, %cst_18 {dimension_numbers = #tpu.dot_dimension_numbers<[0], [0], [1], [1], [0, 1, 1, 1], [], []>} : vector<8x256xbf16>, vector<8x256xbf16>, vector<256x256xf32> -> vector<256x256xf32>
    %44 = vector.shape_cast %43 : vector<256x256xf32> to vector<16x16x256xf32>
    %c1 = arith.constant 1 : index
    %c0_19 = arith.constant 0 : index
    %c0_20 = arith.constant 0 : index
    %45 = vector.load %arg4[%c1, %c0_19, %c0_20] : memref<4x16x256xf32, #tpu.memory_space<vmem>>, vector<1x16x256xf32>
    %46 = vector.shape_cast %45 : vector<1x16x256xf32> to vector<16x256xf32>
    %47 = vector.shape_cast %46 : vector<16x256xf32> to vector<1x16x256xf32>
    %48 = vector.broadcast %47 : vector<1x16x256xf32> to vector<16x16x256xf32>
    %49 = arith.addf %44, %48 : vector<16x16x256xf32>
    %c0_21 = arith.constant 0 : index
    %c0_22 = arith.constant 0 : index
    %c0_23 = arith.constant 0 : index
    %50 = vector.load %arg5[%c0_21, %c0_22, %c0_23] : memref<16x1x256xf32, #tpu.memory_space<vmem>>, vector<16x1x256xf32>
    %51 = vector.broadcast %50 : vector<16x1x256xf32> to vector<16x16x256xf32>
    %52 = arith.addf %49, %51 : vector<16x16x256xf32>
    %53 = vector.shape_cast %52 : vector<16x16x256xf32> to vector<256x256xf32>
    %cst_24 = arith.constant dense<0xFF800000> : vector<256xf32>
    %54 = vector.multi_reduction <maximumf>, %53, %cst_24 [0] : vector<256x256xf32> to vector<256xf32>
    %55 = vector.shape_cast %54 : vector<256xf32> to vector<1x256xf32>
    %56 = vector.broadcast %55 : vector<1x256xf32> to vector<256x256xf32>
    %57 = arith.subf %53, %56 : vector<256x256xf32>
    %58 = math.exp %57 : vector<256x256xf32>
    %cst_25 = arith.constant dense<0.000000e+00> : vector<256xf32>
    %59 = vector.multi_reduction <add>, %58, %cst_25 [0] : vector<256x256xf32> to vector<256xf32>
    %60 = vector.shape_cast %59 : vector<256xf32> to vector<1x256xf32>
    %61 = arith.truncf %58 : vector<256x256xf32> to vector<256x256xbf16>
    %cst_26 = arith.constant dense<0.000000e+00> : vector<8x256xf32>
    %62 = tpu.matmul %42, %61, %cst_26 {dimension_numbers = #tpu.dot_dimension_numbers<[1], [0], [0], [1], [0, 0, 1, 1], [], []>} : vector<8x256xbf16>, vector<256x256xbf16>, vector<8x256xf32> -> vector<8x256xf32>
    %63 = tpu.reciprocal %60 : vector<1x256xf32> -> vector<1x256xf32>
    %64 = vector.broadcast %63 : vector<1x256xf32> to vector<8x256xf32>
    %65 = arith.mulf %62, %64 : vector<8x256xf32>
    %c8 = arith.constant 8 : index
    %c0_27 = arith.constant 0 : index
    %66 = vector.load %arg7[%c8, %c0_27] : memref<32x256xf32, #tpu.memory_space<vmem>>, vector<8x256xf32>
    tpu.vector_store %arg7[%c8, %c0_27], %65 {strides = array<i32>} : memref<32x256xf32, #tpu.memory_space<vmem>>, vector<8x256xf32>,
    %67 = vector.extract_strided_slice %6 {offsets = [16, 0], sizes = [8, 256], strides = [1, 1]} : vector<96x256xf32> to vector<8x256xf32>
    %68 = arith.truncf %67 : vector<8x256xf32> to vector<8x256xbf16>
    %69 = vector.extract_strided_slice %6 {offsets = [48, 0], sizes = [8, 256], strides = [1, 1]} : vector<96x256xf32> to vector<8x256xf32>
    %70 = arith.truncf %69 : vector<8x256xf32> to vector<8x256xbf16>
    %71 = vector.extract_strided_slice %6 {offsets = [80, 0], sizes = [8, 256], strides = [1, 1]} : vector<96x256xf32> to vector<8x256xf32>
    %72 = arith.truncf %71 : vector<8x256xf32> to vector<8x256xbf16>
    %cst_28 = arith.constant dense<0.000000e+00> : vector<256x256xf32>
    %73 = tpu.matmul %70, %68, %cst_28 {dimension_numbers = #tpu.dot_dimension_numbers<[0], [0], [1], [1], [0, 1, 1, 1], [], []>} : vector<8x256xbf16>, vector<8x256xbf16>, vector<256x256xf32> -> vector<256x256xf32>
    %74 = vector.shape_cast %73 : vector<256x256xf32> to vector<16x16x256xf32>
    %c2 = arith.constant 2 : index
    %c0_29 = arith.constant 0 : index
    %c0_30 = arith.constant 0 : index
    %75 = vector.load %arg4[%c2, %c0_29, %c0_30] : memref<4x16x256xf32, #tpu.memory_space<vmem>>, vector<1x16x256xf32>
    %76 = vector.shape_cast %75 : vector<1x16x256xf32> to vector<16x256xf32>
    %77 = vector.shape_cast %76 : vector<16x256xf32> to vector<1x16x256xf32>
    %78 = vector.broadcast %77 : vector<1x16x256xf32> to vector<16x16x256xf32>
    %79 = arith.addf %74, %78 : vector<16x16x256xf32>
    %c0_31 = arith.constant 0 : index
    %c0_32 = arith.constant 0 : index
    %c0_33 = arith.constant 0 : index
    %80 = vector.load %arg5[%c0_31, %c0_32, %c0_33] : memref<16x1x256xf32, #tpu.memory_space<vmem>>, vector<16x1x256xf32>
    %81 = vector.broadcast %80 : vector<16x1x256xf32> to vector<16x16x256xf32>
    %82 = arith.addf %79, %81 : vector<16x16x256xf32>
    %83 = vector.shape_cast %82 : vector<16x16x256xf32> to vector<256x256xf32>
    %cst_34 = arith.constant dense<0xFF800000> : vector<256xf32>
    %84 = vector.multi_reduction <maximumf>, %83, %cst_34 [0] : vector<256x256xf32> to vector<256xf32>
    %85 = vector.shape_cast %84 : vector<256xf32> to vector<1x256xf32>
    %86 = vector.broadcast %85 : vector<1x256xf32> to vector<256x256xf32>
    %87 = arith.subf %83, %86 : vector<256x256xf32>
    %88 = math.exp %87 : vector<256x256xf32>
    %cst_35 = arith.constant dense<0.000000e+00> : vector<256xf32>
    %89 = vector.multi_reduction <add>, %88, %cst_35 [0] : vector<256x256xf32> to vector<256xf32>
    %90 = vector.shape_cast %89 : vector<256xf32> to vector<1x256xf32>
    %91 = arith.truncf %88 : vector<256x256xf32> to vector<256x256xbf16>
    %cst_36 = arith.constant dense<0.000000e+00> : vector<8x256xf32>
    %92 = tpu.matmul %72, %91, %cst_36 {dimension_numbers = #tpu.dot_dimension_numbers<[1], [0], [0], [1], [0, 0, 1, 1], [], []>} : vector<8x256xbf16>, vector<256x256xbf16>, vector<8x256xf32> -> vector<8x256xf32>
    %93 = tpu.reciprocal %90 : vector<1x256xf32> -> vector<1x256xf32>
    %94 = vector.broadcast %93 : vector<1x256xf32> to vector<8x256xf32>
    %95 = arith.mulf %92, %94 : vector<8x256xf32>
    %c16 = arith.constant 16 : index
    %c0_37 = arith.constant 0 : index
    %96 = vector.load %arg7[%c16, %c0_37] : memref<32x256xf32, #tpu.memory_space<vmem>>, vector<8x256xf32>
    tpu.vector_store %arg7[%c16, %c0_37], %95 {strides = array<i32>} : memref<32x256xf32, #tpu.memory_space<vmem>>, vector<8x256xf32>,
    %97 = vector.extract_strided_slice %6 {offsets = [24, 0], sizes = [8, 256], strides = [1, 1]} : vector<96x256xf32> to vector<8x256xf32>
    %98 = arith.truncf %97 : vector<8x256xf32> to vector<8x256xbf16>
    %99 = vector.extract_strided_slice %6 {offsets = [56, 0], sizes = [8, 256], strides = [1, 1]} : vector<96x256xf32> to vector<8x256xf32>
    %100 = arith.truncf %99 : vector<8x256xf32> to vector<8x256xbf16>
    %101 = vector.extract_strided_slice %6 {offsets = [88, 0], sizes = [8, 256], strides = [1, 1]} : vector<96x256xf32> to vector<8x256xf32>
    %102 = arith.truncf %101 : vector<8x256xf32> to vector<8x256xbf16>
    %cst_38 = arith.constant dense<0.000000e+00> : vector<256x256xf32>
    %103 = tpu.matmul %100, %98, %cst_38 {dimension_numbers = #tpu.dot_dimension_numbers<[0], [0], [1], [1], [0, 1, 1, 1], [], []>} : vector<8x256xbf16>, vector<8x256xbf16>, vector<256x256xf32> -> vector<256x256xf32>
    %104 = vector.shape_cast %103 : vector<256x256xf32> to vector<16x16x256xf32>
    %c3 = arith.constant 3 : index
    %c0_39 = arith.constant 0 : index
    %c0_40 = arith.constant 0 : index
    %105 = vector.load %arg4[%c3, %c0_39, %c0_40] : memref<4x16x256xf32, #tpu.memory_space<vmem>>, vector<1x16x256xf32>
    %106 = vector.shape_cast %105 : vector<1x16x256xf32> to vector<16x256xf32>
    %107 = vector.shape_cast %106 : vector<16x256xf32> to vector<1x16x256xf32>
    %108 = vector.broadcast %107 : vector<1x16x256xf32> to vector<16x16x256xf32>
    %109 = arith.addf %104, %108 : vector<16x16x256xf32>
    %c0_41 = arith.constant 0 : index
    %c0_42 = arith.constant 0 : index
    %c0_43 = arith.constant 0 : index
    %110 = vector.load %arg5[%c0_41, %c0_42, %c0_43] : memref<16x1x256xf32, #tpu.memory_space<vmem>>, vector<16x1x256xf32>
    %111 = vector.broadcast %110 : vector<16x1x256xf32> to vector<16x16x256xf32>
    %112 = arith.addf %109, %111 : vector<16x16x256xf32>
    %113 = vector.shape_cast %112 : vector<16x16x256xf32> to vector<256x256xf32>
    %cst_44 = arith.constant dense<0xFF800000> : vector<256xf32>
    %114 = vector.multi_reduction <maximumf>, %113, %cst_44 [0] : vector<256x256xf32> to vector<256xf32>
    %115 = vector.shape_cast %114 : vector<256xf32> to vector<1x256xf32>
    %116 = vector.broadcast %115 : vector<1x256xf32> to vector<256x256xf32>
    %117 = arith.subf %113, %116 : vector<256x256xf32>
    %118 = math.exp %117 : vector<256x256xf32>
    %cst_45 = arith.constant dense<0.000000e+00> : vector<256xf32>
    %119 = vector.multi_reduction <add>, %118, %cst_45 [0] : vector<256x256xf32> to vector<256xf32>
    %120 = vector.shape_cast %119 : vector<256xf32> to vector<1x256xf32>
    %121 = arith.truncf %118 : vector<256x256xf32> to vector<256x256xbf16>
    %cst_46 = arith.constant dense<0.000000e+00> : vector<8x256xf32>
    %122 = tpu.matmul %102, %121, %cst_46 {dimension_numbers = #tpu.dot_dimension_numbers<[1], [0], [0], [1], [0, 0, 1, 1], [], []>} : vector<8x256xbf16>, vector<256x256xbf16>, vector<8x256xf32> -> vector<8x256xf32>
    %123 = tpu.reciprocal %120 : vector<1x256xf32> -> vector<1x256xf32>
    %124 = vector.broadcast %123 : vector<1x256xf32> to vector<8x256xf32>
    %125 = arith.mulf %122, %124 : vector<8x256xf32>
    %c24 = arith.constant 24 : index
    %c0_47 = arith.constant 0 : index
    %126 = vector.load %arg7[%c24, %c0_47] : memref<32x256xf32, #tpu.memory_space<vmem>>, vector<8x256xf32>
    tpu.vector_store %arg7[%c24, %c0_47], %125 {strides = array<i32>} : memref<32x256xf32, #tpu.memory_space<vmem>>, vector<8x256xf32>,
    %c96 = arith.constant 96 : index
    %c0_48 = arith.constant 0 : index
    %127 = vector.load %arg2[%c96, %c0_48] : memref<128x32xbf16, #tpu.memory_space<vmem>>, vector<32x32xbf16>
    %c0_49 = arith.constant 0 : index
    %c0_50 = arith.constant 0 : index
    %128 = vector.load %arg7[%c0_49, %c0_50] : memref<32x256xf32, #tpu.memory_space<vmem>>, vector<32x256xf32>
    %129 = arith.truncf %128 : vector<32x256xf32> to vector<32x256xbf16>
    %cst_51 = arith.constant dense<0.000000e+00> : vector<32x256xf32>
    %130 = tpu.matmul %127, %129, %cst_51 {dimension_numbers = #tpu.dot_dimension_numbers<[1], [0], [0], [1], [0, 0, 1, 1], [], []>} : vector<32x32xbf16>, vector<32x256xbf16>, vector<32x256xf32> -> vector<32x256xf32>
    %c96_52 = arith.constant 96 : index
    %c0_53 = arith.constant 0 : index
    %131 = vector.load %arg3[%c96_52, %c0_53] : memref<128x1xf32, #tpu.memory_space<vmem>>, vector<32x1xf32>
    %132 = vector.broadcast %131 : vector<32x1xf32> to vector<32x256xf32>
    %133 = arith.addf %130, %132 : vector<32x256xf32>
    %c0_54 = arith.constant 0 : index
    %c0_55 = arith.constant 0 : index
    %c0_56 = arith.constant 0 : index
    %134 = vector.load %arg6[%c0_54, %c0_55, %c0_56] : memref<1x32x256xf32, #tpu.memory_space<vmem>>, vector<1x32x256xf32>
    %135 = vector.shape_cast %134 : vector<1x32x256xf32> to vector<32x256xf32>
    %136 = vector.shape_cast %133 : vector<32x256xf32> to vector<1x32x256xf32>
    tpu.vector_store %arg6[%c0_54, %c0_55, %c0_56], %136 {strides = array<i32>} : memref<1x32x256xf32, #tpu.memory_space<vmem>>, vector<1x32x256xf32>,
    return
  }
  func.func @transform_0(%arg0: i32) -> (i32, i32, i32) {
    %c0_i32 = arith.constant 0 : i32
    %c0_i32_0 = arith.constant 0 : i32
    %c0_i32_1 = arith.constant 0 : i32
    return %arg0, %c0_i32, %c0_i32_0 : i32, i32, i32
  }
  func.func @transform_1(%arg0: i32) -> (i32, i32) {
    %c0_i32 = arith.constant 0 : i32
    %c0_i32_0 = arith.constant 0 : i32
    %c0_i32_1 = arith.constant 0 : i32
    return %c0_i32, %c0_i32_0 : i32, i32
  }
  func.func @transform_2(%arg0: i32) -> (i32, i32) {
    %c0_i32 = arith.constant 0 : i32
    %c0_i32_0 = arith.constant 0 : i32
    %c0_i32_1 = arith.constant 0 : i32
    return %c0_i32, %c0_i32_0 : i32, i32
  }
  func.func @transform_3(%arg0: i32) -> (i32, i32, i32) {
    %c0_i32 = arith.constant 0 : i32
    %c0_i32_0 = arith.constant 0 : i32
    %c0_i32_1 = arith.constant 0 : i32
    %c0_i32_2 = arith.constant 0 : i32
    return %c0_i32, %c0_i32_0, %c0_i32_1 : i32, i32, i32
  }
  func.func @transform_4(%arg0: i32) -> (i32, i32, i32) {
    %c0_i32 = arith.constant 0 : i32
    %c0_i32_0 = arith.constant 0 : i32
    %c0_i32_1 = arith.constant 0 : i32
    %c0_i32_2 = arith.constant 0 : i32
    return %c0_i32, %c0_i32_0, %c0_i32_1 : i32, i32, i32
  }
  func.func @transform_5(%arg0: i32) -> (i32, i32, i32) {
    %c0_i32 = arith.constant 0 : i32
    %c0_i32_0 = arith.constant 0 : i32
    %c0_i32_1 = arith.constant 0 : i32
    return %arg0, %c0_i32, %c0_i32_0 : i32, i32, i32
  }
}

</mosaic_0001>

<bundles_post_ra>
// kernel: tpu_custom_call.1
= control target key start
LH: loop header
LB: loop body
LE: loop exit
PB: predicated region body
PF: predicated region fallthrough
CT: control target
= control target key end

     0   :  { %10 = vsyncpa [#allocation4], 0  ;;  %s9320_s0 = inlined_call_operand.vmem [shape: bf16[2,32,256], index: 0, kind: input, shape index: {}]   ;;  %s9321_s1 = inlined_call_operand.vmem [shape: bf16[128,32], index: 1, kind: input, shape index: {}]   ;;  %s9322_s2 = inlined_call_operand.vmem [shape: f32[128,1], index: 2, kind: input, shape index: {}]   ;;  %s9323_s3 = inlined_call_operand.vmem [shape: f32[4,16,256], index: 3, kind: input, shape index: {}]   ;;  %s9324_s4 = inlined_call_operand.vmem [shape: f32[16,1,256], index: 4, kind: input, shape index: {}]   ;;  %s9325_s5 = inlined_call_operand.hbm [shape: f32[2,32,256], index: 5, kind: output, shape index: {}]  }
   0x1   :  { %12 = vsyncpa [#allocation4 + $0x1], 0  ;;  %s5582_s18 = smov 0   ;;  %s5584_s19 = smov 0  }
   0x2   :  { %s5586_s20 = smov 0   ;;  %s5588_s21 = smov 0  }
   0x3 LB: > { %s5603_s22 = sadd.s32 4294967295, %s5546_s21   ;;  %s4784_s23 = sadd.s32 4294967294, %s5546_s21   ;;  %s5546_s21 = sphi %s5588_s21, %s10041_s21   ;;  %s5542_s20 = sphi %s5586_s20, %s10040_s20   ;;  %s5538_s19 = sphi %s5584_s19, %s10039_s19   ;;  %s5534_s18 = sphi %s5582_s18, %s10038_s18  }
   0x4   : > { %s5607_s24 = sadd.s32 1, %s5546_s21   ;;  %s135_s25 = sadd.s32 1, %s5542_s20 }
   0x5   : > { %s132_s26 = ssub.s32 %s5546_s21, %s5607_s24  ;;  %p145_p0 = scmp.ne.s32.totalorder %s5542_s20, %s5538_s19 }
   0x6   : > { %p133_p1 = scmp.eq.s32.totalorder %s132_s26, 0  ;;  %p146_p2 = scmp.eq.s32.totalorder %s5603_s22, 1 }
   0x7   : > { %p151_p3 = scmp.ne.s32.totalorder %s5538_s19, %s5534_s18  ;;  %p152_p4 = scmp.eq.s32.totalorder %s4784_s23, 1 }
   0x8   : > { %s5618_s27 = scalar_select %p133_p1, %s5542_s20, %s135_s25  }
   0x9   : > { %p5620_p5 = por %p146_p2, %p145_p0  ;;  %p5624_p6 = por %p152_p4, %p151_p3 }
   0xa   : > { %p4787_p7 = scmp.ge.s32.totalorder %s5546_s21, 1  ;;  %p190_p8 = scmp.lt.s32.totalorder %s5546_s21, 3 }
   0xc   : > { %p191_p9 = pnand %p4787_p7, %p190_p8 }
   0xe   : > { %194 = sbr.rel (%p191_p9) target bundleno = 2744 (0xab8), region = 40 }
  0x15   : > { %p218_p10 = scmp.lt.s32.totalorder %s5603_s22, 1  ;;  %v9326_v0 = vmov 0   ;;  %v244_v1 = vld [vmem:[%s9322_s2 + $0x20] sm:$0xff]  ;;  %v245_v7 = vld [vmem:[%s9322_s2 + $0x28] sm:$0xff]  ;;  %vm362_vm0 = vcmask 261120   ;;  %v4950_v12 = vld [vmem:[%s9321_s1 + $0x10] sm:$0xff]  }
  0x16   : > { %413 = vmatprep.mubr.bf16.mxu0 %v9326_v0  ;;  %4940 = vset.pattern.permute.xlu0 %v9326_v0  ;;  %v240_v2 = vld [vmem:[%s9322_s2] sm:$0xff]  ;;  %v241_v10 = vld [vmem:[%s9322_s2 + $0x8] sm:$0xff]  ;;  %v4951_v13 = vld [vmem:[%s9321_s1 + $0x18] sm:$0xff]   ;;  %vm561_vm1 = vcmask 1043456   ;;  %vm512_vm2 = vcmask 64512   ;;  %s215_s10 = sand.u32 1, %s5538_s19  }
  0x17   : > { %s219_s30 = scalar_select %p218_p10, %s5603_s22, 1  ;;  %600 = vmatprep.mubr.bf16.mxu1 %v9326_v0  ;;  %274 = vperm.xlu0 %4940, %v244_v1   ;;  %v4948_v8 = vld [vmem:[%s9321_s1] sm:$0xff]   ;;  %v4949_v11 = vld [vmem:[%s9321_s1 + $0x8] sm:$0xff]   ;;  %v246_v51 = vld [vmem:[%s9322_s2 + $0x30] sm:$0xff] }
  0x18   : > { %v248_v9 = vld [vmem:[%s9322_s2 + $0x40] sm:$0xff]  ;;  %v4953_v15 = vld [vmem:[%s9321_s1 + $0x28] sm:$0xff]   ;;  %v242_v52 = vld [vmem:[%s9322_s2 + $0x10] sm:$0xff]  ;;  %s4788_s11 = sshll.u32 %s215_s10, 6  ;;  %s4897_s13 = sshll.u32 %s5603_s22, 10 }
  0x19   : > { %s4896_s6 = sshll.u32 %s219_s30, 5  ;;  %v4952_v14 = vld [vmem:[%s9321_s1 + $0x20] sm:$0xff]   ;;  %v249_v55 = vld [vmem:[%s9322_s2 + $0x48] sm:$0xff]  ;;  %s217_s12 = scalar_lea.vmem [#allocation3], %s4788_s11 }
  0x1a   : > { %s222_s9 = scalar_lea.vmem %s9320_s0, %s4896_s6  ;;  %s4722_s14 = sshll.u32 %s217_s12, 4  ;;  %s9275_s14 = int_to_ptr.vmem [resolvable:$true] %s4722_s14 }
  0x1b   : > { %v4942_v3 = vld [vmem:[%s222_s9 + $0x4] ss:$8 sps:$4 sm:$0xff]   ;;  %v4944_v4 = vld [vmem:[%s222_s9] ss:$8 sps:$4 sm:$0xff]   ;;  %v4945_v5 = vld [vmem:[%s222_s9 + $0x14] ss:$8 sps:$4 sm:$0xff]   ;;  %254 = vperm.xlu0 %4940, %v240_v2   ;;  %s9273_s17 = scalar_lea.hbm %s9325_s5, %s4897_s13 }
  0x1c   : > { %381 = vmatprep.subr.bf16.mxu0 %v4942_v3  ;;  %v4947_v6 = vld [vmem:[%s222_s9 + $0x10] ss:$8 sps:$4 sm:$0xff]   ;;  %s9279_s22 = scalar_lea.sflag [#allocation4], %s215_s10  ;;  %s5484_s23 = scalar_lea.vmem %s9275_s14, 1024 }
  0x1d   : > { %382 = vmatpush1.bf16.msra.mxu0 %v4944_v4  ;;  %p5485_p11 = scmp.ne.s32.totalorder %s9275_s14, %s5484_s23  ;;  %s5549_s25 = smov [#allocation3]  }
  0x1e   : > { %383 = vmatprep.subr.bf16.mxu0 %v4945_v5  ;;  %s5488_s26 = sshll.u32 %s5549_s25, 4  ;;  %s5489_s26 = int_to_ptr.vmem [resolvable:$false] %s5488_s26 }
  0x1f   : > { %279 = vperm.xlu0 %4940, %v245_v7   ;;  %p5486_p12 = pnand %p5485_p11, %p5620_p5  ;;  %s5490_s30 = scalar_lea.vmem %s5489_s26, 2048 }
  0x20   : > { %p5491_p0 = scmp.lt.s32.totalorder %s9275_s14, %s5489_s26  ;;  %p5492_p1 = scmp.lt.s32.totalorder %s5490_s30, %s5484_s23 }
  0x21   : > { %384 = vmatpush1.bf16.msra.mxu0 %v4947_v6  ;;  %p5487_p13 = pneg %p5486_p12 }
  0x22   : > { %p5493_p2 = por %p5492_p1, %p5491_p0 }
  0x23   : > { %294 = vperm.xlu0 %4940, %v248_v9  }
  0x24   : > { %4801 = vmatmul.mubr.msk.bf16.vlgmr.msra.gmra.mrb[0].mxu0 %vm362_vm0, %v4948_v8  ;;  %p5494_p3 = pnand %p5493_p2, %p5487_p13 }
  0x25   : > { %423 = vmatprep.mubr.bf16.mxu0 %v9326_v0 }
  0x27   : > { %259 = vperm.xlu0 %4940, %v241_v10  }
  0x2c   : > { %4802 = vmatmul.mubr.msk.bf16.gmra.mrb[4].mxu0 %vm362_vm0, %v4949_v11 }
  0x2d   : > { %433 = vmatprep.mubr.bf16.mxu0 %v9326_v0 }
  0x34   : > { %4803 = vmatmul.mubr.msk.bf16.gmra.mrb[8].mxu0 %vm362_vm0, %v4950_v12 }
  0x35   : > { %443 = vmatprep.mubr.bf16.mxu0 %v9326_v0 }
  0x3c   : > { %4804 = vmatmul.mubr.msk.bf16.gmra.mrb[12].mxu0 %vm362_vm0, %v4951_v13 }
  0x3d   : > { %453 = vmatprep.mubr.bf16.mxu0 %v9326_v0 }
  0x44   : > { %4805 = vmatmul.mubr.msk.bf16.gmra.mrb[16].mxu0 %vm362_vm0, %v4952_v14 }
  0x45   : > { %463 = vmatprep.mubr.bf16.mxu0 %v9326_v0 }
  0x4c   : > { %4806 = vmatmul.mubr.msk.bf16.gmra.mrb[20].mxu0 %vm362_vm0, %v4953_v15 }
  0x96   : > { %v275_v16 = vpop.permute.xlu0 %274 }
  0x9a   : > { %v255_v17 = vpop.permute.xlu0 %254 }
  0x9e   : > { %v280_v34 = vpop.permute.xlu0 %279 }
  0xa2   : > { %v5702_v45 = vpop.permute.xlu0 %294 }
  0xa3   : > { %9518 = vst [vmem:[#allocation13_spill] sm:$0xff] %v5702_v45 }
  0xa6   : > { %v5719_v58 = vpop.permute.xlu0 %259 }
  0xa7   : > { %9519 = vst [vmem:[#allocation14_spill] sm:$0xff] %v5719_v58 }
  0xf7   : > { %v415_v18 = vpop.f32.mrb[0].mxu0 }
  0xf8   : > { %v416_v19 = vadd.f32 %v415_v18, %v255_v17  ;;  %v417_v20 = vpop.f32.mrb[1].mxu0 }
  0xf9   : > { %v418_v21 = vadd.f32 %v417_v20, %v255_v17  ;;  %v5682_v22 = vpop.f32.mrb[2].mxu0  ;;  %v250_v20 = vld [vmem:[%s9322_s2 + $0x50] sm:$0xff] }
  0xfa   : > { %9511 = vst [vmem:[#allocation6_spill] sm:$0xff] %v5682_v22  ;;  %v474_v23 = vpack.c.bf16 %v416_v19, %v416_v19  ;;  %v5684_v24 = vpop.f32.mrb[3].mxu0 }
  0xfb   : > { %9512 = vst [vmem:[#allocation7_spill] sm:$0xff] %v5684_v24  ;;  %v475_v25 = vpack.c.bf16 %v418_v21, %v418_v21 }
  0xfc   : > { %v563_v26 = vsel %vm561_vm1, %v474_v23, 0  ;;  %v247_v23 = vld [vmem:[%s9322_s2 + $0x38] sm:$0xff] }
  0xfd   : > { %4807 = vmatprep.subr.msk.bf16.mxu1 %vm561_vm1, %v475_v25  ;;  %v243_v25 = vld [vmem:[%s9322_s2 + $0x18] sm:$0xff] }
  0xfe   : > { %569 = vmatpush1.bf16.msra.mxu1 %v563_v26 }
  0xff   : > { %v5688_v27 = vpop.f32.mrb[4].mxu0 }
 0x100   : > { %9513 = vst [vmem:[#allocation8_spill] sm:$0xff] %v5688_v27  ;;  %v5690_v28 = vpop.f32.mrb[5].mxu0 }
 0x101   : > { %9514 = vst [vmem:[#allocation9_spill] sm:$0xff] %v5690_v28  ;;  %v5692_v29 = vpop.f32.mrb[6].mxu0 }
 0x102   : > { %9515 = vst [vmem:[#allocation10_spill] sm:$0xff] %v5692_v29  ;;  %v5694_v30 = vpop.f32.mrb[7].mxu0 }
 0x103   : > { %9516 = vst [vmem:[#allocation11_spill] sm:$0xff] %v5694_v30 }
 0x107   : > { %v435_v31 = vpop.f32.mrb[8].mxu0 }
 0x108   : > { %v437_v32 = vpop.f32.mrb[9].mxu0  ;;  %v436_v33 = vadd.f32 %v435_v31, %v275_v16 }
 0x109   : > { %v439_v35 = vpop.f32.mrb[10].mxu0  ;;  %v438_v49 = vadd.f32 %v437_v32, %v275_v16 }
 0x10a   : > { %v440_v36 = vadd.f32 %v439_v35, %v280_v34  ;;  %v441_v37 = vpop.f32.mrb[11].mxu0  ;;  %v476_v38 = vpack.c.bf16 %v436_v33, %v436_v33 }
 0x10b   : > { %v477_v50 = vpack.c.bf16 %v438_v49, %v438_v49  ;;  %v442_v53 = vadd.f32 %v441_v37, %v280_v34  ;;  %v861_v37 = vlaneseq }
 0x10c   : > { %v1506_v39 = vpack.c.bf16 %v440_v36, %v440_v36  ;;  %480 = vxpose.xlu1.c.b16.start.end [1/1] (short) %v476_v38, 128 }
 0x10d   : > { %v1507_v54 = vpack.c.bf16 %v442_v53, %v442_v53  ;;  %v830_v53 = vld [vmem:[%s9324_s4 + $0x2] sm:$0x3] }
 0x10e   : > { %1510 = vxpose.xlu0.c.b16.start.end [1/1] (short) %v1506_v39, 128  ;;  %v862_v39 = vshrl.u32 %v861_v37, 7 }
 0x10f   : > { %v445_v40 = vpop.f32.mrb[12].mxu0 }
 0x110   : > { %v447_v41 = vpop.f32.mrb[13].mxu0 }
 0x111   : > { %v5696_v42 = vpop.f32.mrb[14].mxu0 }
 0x112   : > { %v5698_v43 = vpop.f32.mrb[15].mxu0 }
 0x117   : > { %v5700_v44 = vpop.f32.mrb[16].mxu0 }
 0x118   : > { %9517 = vst [vmem:[#allocation12_spill] sm:$0xff] %v5700_v44  ;;  %v457_v46 = vpop.f32.mrb[17].mxu0 }
 0x119   : > { %v458_v47 = vadd.f32 %v457_v46, %v5702_v45 }
 0x11b   : > { %v479_v48 = vpack.c.bf16 %v458_v47, %v458_v47  ;;  %v5785_v47 = vsub.s32 0, %v862_v39 }
 0x11d   : > { %1489 = vmatprep.mubr.bf16.mxu0 %v479_v48  ;;  %9534 = vst [vmem:[#allocation29_spill] sm:$0xff] %v5785_v47 }
 0x129   : > { %496 = vxpose.xlu1.c.b16.start.end [1/1] (short) %v477_v50, 128  ;;  %v5792_v50 = vld [vmem:[%s9323_s3] sm:$0xff] }
 0x133   : > { %284 = vperm.xlu0 %4940, %v246_v51   ;;  %v829_v51 = vld [vmem:[%s9324_s4] sm:$0x3] }
 0x137   : > { %264 = vperm.xlu0 %4940, %v242_v52   ;;  %v5797_v52 = vsub.s32 1, %v862_v39 }
 0x139   : > { %9536 = vst [vmem:[#allocation31_spill] sm:$0xff] %v5797_v52 }
 0x146   : > { %1526 = vxpose.xlu1.c.b16.start.end [1/1] (short) %v1507_v54, 128  ;;  %v5805_v54 = vld [vmem:[%s9323_s3 + $0x8] sm:$0xff] }
 0x14a   : > { %4941 = vset.pattern.permute.xlu1 %v9326_v0 }
 0x166   : > { %299 = vperm.xlu1 %4941, %v249_v55   ;;  %v5810_v55 = vld [vmem:[%s9323_s3 + $0x10] sm:$0xff] }
 0x172   : > { %v488_v56 = vpop.trf.xlu1 }
 0x173   : > { %4808 = vmatmul.mubr.msk.bf16.vlgmr.msra.gmra.mrb[0].mxu1 %vm512_vm2, %v488_v56 }
 0x174   : > { %610 = vmatprep.mubr.bf16.mxu1 %v9326_v0  ;;  %v5721_v60 = vpop.trf.xlu0 }
 0x175   : > { %9520 = vst [vmem:[#allocation15_spill] sm:$0xff] %v5721_v60 }
 0x176   : > { %v489_v57 = vpop.trf.xlu1 }
 0x178   : > { %v5725_v62 = vpop.trf.xlu0 }
 0x179   : > { %9521 = vst [vmem:[#allocation16_spill] sm:$0xff] %v5725_v62 }
 0x17a   : > { %v490_v59 = vpop.trf.xlu1 }
 0x17b   : > { %4809 = vmatmul.mubr.msk.bf16.gmra.mrb[4].mxu1 %vm512_vm2, %v489_v57  ;;  %v864_v57 = vrot.slane %v829_v51, %v5785_v47 }
 0x17c   : > { %620 = vmatprep.mubr.bf16.mxu1 %v9326_v0  ;;  %v5729_v63 = vpop.trf.xlu0 }
 0x17d   : > { %9522 = vst [vmem:[#allocation17_spill] sm:$0xff] %v5729_v63 }
 0x17e   : > { %v491_v61 = vpop.trf.xlu1 }
 0x180   : > { %v5733_v2 = vpop.trf.xlu0 }
 0x181   : > { %9523 = vst [vmem:[#allocation18_spill] sm:$0xff] %v5733_v2  ;;  %v838_v2 = vld [vmem:[%s9324_s4 + $0x12] sm:$0x3] }
 0x182   : > { %v492_v1 = vpop.trf.xlu1 }
 0x183   : > { %4810 = vmatmul.mubr.msk.bf16.gmra.mrb[8].mxu1 %vm512_vm2, %v490_v59  ;;  %v5817_v59 = vld [vmem:[%s9323_s3 + $0x18] sm:$0xff] }
 0x184   : > { %630 = vmatprep.mubr.bf16.mxu1 %v9326_v0  ;;  %v5735_v4 = vpop.trf.xlu0 }
 0x185   : > { %9524 = vst [vmem:[#allocation19_spill] sm:$0xff] %v5735_v4 }
 0x186   : > { %v493_v3 = vpop.trf.xlu1 }
 0x188   : > { %v5739_v6 = vpop.trf.xlu0 }
 0x189   : > { %9525 = vst [vmem:[#allocation20_spill] sm:$0xff] %v5739_v6 }
 0x18a   : > { %v494_v5 = vpop.trf.xlu1 }
 0x18b   : > { %4811 = vmatmul.mubr.msk.bf16.gmra.mrb[12].mxu1 %vm512_vm2, %v491_v61  ;;  %v872_v61 = vrot.slane %v830_v53, %v5785_v47 }
 0x18c   : > { %640 = vmatprep.mubr.bf16.mxu1 %v9326_v0  ;;  %v5743_v7 = vpop.trf.xlu0 }
 0x18d   : > { %9526 = vst [vmem:[#allocation21_spill] sm:$0xff] %v5743_v7 }
 0x18e   : > { %v495_v8 = vpop.trf.xlu1 }
 0x190   : > { %v5746_v9 = vpop.trf.xlu0 }
 0x191   : > { %9527 = vst [vmem:[#allocation22_spill] sm:$0xff] %v5746_v9 }
 0x192   : > { %v504_v10 = vpop.trf.xlu1 }
 0x193   : > { %4812 = vmatmul.mubr.msk.bf16.gmra.mrb[16].mxu1 %vm512_vm2, %v492_v1 }
 0x194   : > { %650 = vmatprep.mubr.bf16.mxu1 %v9326_v0 }
 0x196   : > { %v505_v16 = vpop.trf.xlu1 }
 0x19a   : > { %v506_v17 = vpop.trf.xlu1 }
 0x19b   : > { %4813 = vmatmul.mubr.msk.bf16.gmra.mrb[20].mxu1 %vm512_vm2, %v493_v3  ;;  %v868_v3 = vrot.slane %v829_v51, %v5797_v52 }
 0x19c   : > { %660 = vmatprep.mubr.bf16.mxu1 %v9326_v0 }
 0x19e   : > { %v507_v18 = vpop.trf.xlu1 }
 0x1a2   : > { %v508_v19 = vpop.trf.xlu1 }
 0x1a3   : > { %4814 = vmatmul.mubr.msk.bf16.gmra.mrb[24].mxu1 %vm512_vm2, %v494_v5 }
 0x1a4   : > { %670 = vmatprep.mubr.bf16.mxu1 %v9326_v0 }
 0x1a6   : > { %v509_v21 = vpop.trf.xlu1 }
 0x1aa   : > { %v510_v26 = vpop.trf.xlu1 }
 0x1ab   : > { %4815 = vmatmul.mubr.msk.bf16.gmra.mrb[28].mxu1 %vm512_vm2, %v495_v8  ;;  %v876_v8 = vrot.slane %v830_v53, %v5797_v52 }
 0x1ac   : > { %680 = vmatprep.mubr.bf16.mxu1 %v9326_v0 }
 0x1ae   : > { %v511_v31 = vpop.trf.xlu1 }
 0x1b2   : > { %v285_v11 = vpop.permute.xlu0 %284 }
 0x1b3   : > { %v446_v12 = vadd.f32 %v445_v40, %v285_v11  ;;  %v448_v13 = vadd.f32 %v447_v41, %v285_v11  ;;  %4816 = vmatmul.mubr.msk.bf16.gmra.mrb[32].mxu1 %vm512_vm2, %v504_v10 }
 0x1b4   : > { %690 = vmatprep.mubr.bf16.mxu1 %v9326_v0 }
 0x1b5   : > { %v2535_v14 = vpack.c.bf16 %v446_v12, %v446_v12  ;;  %v2536_v15 = vpack.c.bf16 %v448_v13, %v448_v13 }
 0x1b6   : > { %v5773_v32 = vpop.permute.xlu0 %264 }
 0x1b7   : > { %2539 = vxpose.xlu0.c.b16.start.end [1/1] (short) %v2535_v14, 128  ;;  %2555 = vxpose.xlu1.c.b16.start.end [1/1] (short) %v2536_v15, 128  ;;  %9528 = vst [vmem:[#allocation23_spill] sm:$0xff] %v5773_v32 }
 0x1bb   : > { %4817 = vmatmul.mubr.msk.bf16.gmra.mrb[36].mxu1 %vm512_vm2, %v505_v16 }
 0x1bc   : > { %700 = vmatprep.mubr.bf16.mxu1 %v9326_v0 }
 0x1c3   : > { %4818 = vmatmul.mubr.msk.bf16.gmra.mrb[40].mxu1 %vm512_vm2, %v506_v17 }
 0x1c4   : > { %710 = vmatprep.mubr.bf16.mxu1 %v9326_v0 }
 0x1cb   : > { %4819 = vmatmul.mubr.msk.bf16.gmra.mrb[44].mxu1 %vm512_vm2, %v507_v18 }
 0x1cc   : > { %720 = vmatprep.mubr.bf16.mxu1 %v9326_v0 }
 0x1d3   : > { %4820 = vmatmul.mubr.msk.bf16.gmra.mrb[48].mxu1 %vm512_vm2, %v508_v19 }
 0x1d4   : > { %730 = vmatprep.mubr.bf16.mxu1 %v9326_v0 }
 0x1d7   : > { %304 = vperm.xlu1 %4941, %v250_v20  }
 0x1db   : > { %4821 = vmatmul.mubr.msk.bf16.gmra.mrb[52].mxu1 %vm512_vm2, %v509_v21 }
 0x1dc   : > { %289 = vperm.xlu0 %4940, %v247_v23   ;;  %740 = vmatprep.mubr.bf16.mxu1 %v9326_v0 }
 0x1e0   : > { %269 = vperm.xlu0 %4940, %v243_v25  }
 0x1e3   : > { %4822 = vmatmul.mubr.msk.bf16.gmra.mrb[56].mxu1 %vm512_vm2, %v510_v26  ;;  %v831_v26 = vld [vmem:[%s9324_s4 + $0x4] sm:$0x3] }
 0x1e4   : > { %750 = vmatprep.mubr.bf16.mxu1 %v9326_v0  ;;  %v880_v51 = vrot.slane %v831_v26, %v5785_v47 }
 0x1eb   : > { %4823 = vmatmul.mubr.msk.bf16.gmra.mrb[60].mxu1 %vm512_vm2, %v511_v31 }
 0x21d   : > { %v5775_v33 = vpop.trf.xlu0 }
 0x21e   : > { %9529 = vst [vmem:[#allocation24_spill] sm:$0xff] %v5775_v33 }
 0x221   : > { %v5777_v34 = vpop.trf.xlu0 }
 0x222   : > { %9530 = vst [vmem:[#allocation25_spill] sm:$0xff] %v5777_v34 }
 0x225   : > { %v5779_v35 = vpop.trf.xlu0 }
 0x226   : > { %9531 = vst [vmem:[#allocation26_spill] sm:$0xff] %v5779_v35 }
 0x229   : > { %v5781_v36 = vpop.trf.xlu0 }
 0x22a   : > { %9532 = vst [vmem:[#allocation27_spill] sm:$0xff] %v5781_v36 }
 0x22d   : > { %v5783_v38 = vpop.trf.xlu0 }
 0x22e   : > { %9533 = vst [vmem:[#allocation28_spill] sm:$0xff] %v5783_v38 }
 0x231   : > { %v5787_v49 = vpop.trf.xlu0 }
 0x232   : > { %9535 = vst [vmem:[#allocation30_spill] sm:$0xff] %v5787_v49 }
 0x235   : > { %v5825_v13 = vpop.trf.xlu0 }
 0x236   : > { %9537 = vst [vmem:[#allocation32_spill] sm:$0xff] %v5825_v13 }
 0x239   : > { %v5857_v53 = vpop.trf.xlu0 }
 0x23a   : > { %9538 = vst [vmem:[#allocation33_spill] sm:$0xff] %v5857_v53 }
 0x246   : > { %v602_v40 = vpop.f32.mrb[0].mxu1 }
 0x247   : > { %v604_v41 = vpop.f32.mrb[1].mxu1  ;;  %v765_v56 = vadd.f32 %v5792_v50, %v602_v40 }
 0x248   : > { %v606_v46 = vpop.f32.mrb[2].mxu1  ;;  %v766_v1 = vadd.f32 %v5805_v54, %v604_v41 }
 0x249   : > { %v608_v48 = vpop.f32.mrb[3].mxu1  ;;  %v767_v10 = vadd.f32 %v5810_v55, %v606_v46  ;;  %v5829_v17 = vadd.f32 %v864_v57, %v765_v56 }
 0x24a   : > { %v768_v14 = vadd.f32 %v5817_v59, %v608_v48  ;;  %v5834_v21 = vadd.f32 %v868_v3, %v766_v1 }
 0x24b   : > { %v5842_v31 = vadd.f32 %v864_v57, %v767_v10 }
 0x24c   : > { %v5848_v40 = vadd.f32 %v868_v3, %v768_v14 }
 0x24e   : > { %v612_v5 = vpop.f32.mrb[4].mxu1 }
 0x24f   : > { %v769_v11 = vadd.f32 %v5792_v50, %v612_v5  ;;  %v614_v12 = vpop.f32.mrb[5].mxu1 }
 0x250   : > { %v770_v15 = vadd.f32 %v5805_v54, %v614_v12  ;;  %v616_v16 = vpop.f32.mrb[6].mxu1 }
 0x251   : > { %v5831_v18 = vadd.f32 %v872_v61, %v769_v11  ;;  %v771_v19 = vadd.f32 %v5810_v55, %v616_v16  ;;  %v618_v20 = vpop.f32.mrb[7].mxu1  ;;  %v832_v16 = vld [vmem:[%s9324_s4 + $0x6] sm:$0x3] }
 0x252   : > { %v5836_v23 = vadd.f32 %v876_v8, %v770_v15  ;;  %v772_v25 = vadd.f32 %v5817_v59, %v618_v20 }
 0x253   : > { %v1085_v37 = vmax.f32 %v5829_v17, %v5831_v18  ;;  %v5846_v39 = vadd.f32 %v872_v61, %v771_v19  ;;  %v884_v61 = vrot.slane %v831_v26, %v5797_v52 }
 0x254   : > { %v1122_v41 = vmax.f32 %v5834_v21, %v5836_v23  ;;  %v5852_v46 = vadd.f32 %v876_v8, %v772_v25 }
 0x255   : > { %v1086_v48 = vmax.f32 %v5842_v31, %v5846_v39 }
 0x256   : > { %v1123_v56 = vmax.f32 %v5848_v40, %v5852_v46  ;;  %v622_v57 = vpop.f32.mrb[8].mxu1 }
 0x257   : > { %v773_v1 = vadd.f32 %v5792_v50, %v622_v57  ;;  %v624_v3 = vpop.f32.mrb[9].mxu1 }
 0x258   : > { %v774_v5 = vadd.f32 %v5805_v54, %v624_v3  ;;  %v626_v8 = vpop.f32.mrb[10].mxu1 }
 0x259   : > { %v5864_v10 = vadd.f32 %v880_v51, %v773_v1  ;;  %v775_v11 = vadd.f32 %v5810_v55, %v626_v8  ;;  %v628_v12 = vpop.f32.mrb[11].mxu1  ;;  %v888_v8 = vrot.slane %v832_v16, %v5785_v47 }
 0x25a   : > { %v5867_v14 = vadd.f32 %v884_v61, %v774_v5  ;;  %v776_v15 = vadd.f32 %v5817_v59, %v628_v12 }
 0x25b   : > { %v1087_v19 = vmax.f32 %v1085_v37, %v5864_v10  ;;  %v5874_v20 = vadd.f32 %v880_v51, %v775_v11  ;;  %v290_v25 = vpop.permute.xlu0 %289  ;;  %v892_v51 = vrot.slane %v832_v16, %v5797_v52  ;;  %v833_v16 = vld [vmem:[%s9324_s4 + $0x8] sm:$0x3] }
 0x25c   : > { %v1124_v26 = vmax.f32 %v1122_v41, %v5867_v14  ;;  %v5877_v57 = vadd.f32 %v884_v61, %v776_v15  ;;  %v450_v1 = vadd.f32 %v5696_v42, %v290_v25  ;;  %v452_v3 = vadd.f32 %v5698_v43, %v290_v25 }
 0x25d   : > { %v1088_v5 = vmax.f32 %v1086_v48, %v5874_v20 }
 0x25e   : > { %v1125_v12 = vmax.f32 %v1123_v56, %v5877_v57  ;;  %v3564_v0 = vpack.c.bf16 %v450_v1, %v450_v1  ;;  %v3565_v30 = vpack.c.bf16 %v452_v3, %v452_v3  ;;  %v632_v37 = vpop.f32.mrb[12].mxu1 }
 0x25f   : > { %v777_v11 = vadd.f32 %v5792_v50, %v632_v37  ;;  %v634_v41 = vpop.f32.mrb[13].mxu1 }
 0x260   : > { %v778_v61 = vadd.f32 %v5805_v54, %v634_v41  ;;  %3584 = vxpose.xlu0.c.b16.start.end [1/1] (short) %v3565_v30, 128  ;;  %3568 = vxpose.xlu1.c.b16.start.end [1/1] (short) %v3564_v0, 128  ;;  %v636_v42 = vpop.f32.mrb[14].mxu1 }
 0x261   : > { %v5887_v43 = vadd.f32 %v888_v8, %v777_v11  ;;  %v779_v48 = vadd.f32 %v5810_v55, %v636_v42  ;;  %v638_v15 = vpop.f32.mrb[15].mxu1  ;;  %v896_v11 = vrot.slane %v833_v16, %v5785_v47  ;;  %v900_v42 = vrot.slane %v833_v16, %v5797_v52 }
 0x262   : > { %v5890_v25 = vadd.f32 %v892_v51, %v778_v61  ;;  %v780_v56 = vadd.f32 %v5817_v59, %v638_v15 }
 0x263   : > { %v1089_v1 = vmax.f32 %v1087_v19, %v5887_v43  ;;  %v5897_v3 = vadd.f32 %v888_v8, %v779_v48 }
 0x264   : > { %v1126_v0 = vmax.f32 %v1124_v26, %v5890_v25  ;;  %v5900_v30 = vadd.f32 %v892_v51, %v780_v56 }
 0x265   : > { %v1090_v37 = vmax.f32 %v1088_v5, %v5897_v3 }
 0x266   : > { %v1127_v41 = vmax.f32 %v1125_v12, %v5900_v30  ;;  %v642_v61 = vpop.f32.mrb[16].mxu1  ;;  %v834_v12 = vld [vmem:[%s9324_s4 + $0xa] sm:$0x3] }
 0x267   : > { %v781_v15 = vadd.f32 %v5792_v50, %v642_v61  ;;  %v644_v29 = vpop.f32.mrb[17].mxu1 }
 0x268   : > { %v782_v19 = vadd.f32 %v5805_v54, %v644_v29  ;;  %v646_v8 = vpop.f32.mrb[18].mxu1 }
 0x269   : > { %v5908_v48 = vadd.f32 %v896_v11, %v781_v15  ;;  %v783_v26 = vadd.f32 %v5810_v55, %v646_v8  ;;  %v648_v51 = vpop.f32.mrb[19].mxu1  ;;  %v904_v8 = vrot.slane %v834_v12, %v5785_v47 }
 0x26a   : > { %v5911_v56 = vadd.f32 %v900_v42, %v782_v19  ;;  %v784_v5 = vadd.f32 %v5817_v59, %v648_v51  ;;  %v908_v51 = vrot.slane %v834_v12, %v5797_v52 }
 0x26b   : > { %v1091_v16 = vmax.f32 %v1089_v1, %v5908_v48  ;;  %v5918_v61 = vadd.f32 %v896_v11, %v783_v26 }
 0x26c   : > { %9539 = vst [vmem:[#allocation34_spill] sm:$0xff] %v5911_v56  ;;  %v1128_v29 = vmax.f32 %v1126_v0, %v5911_v56  ;;  %v5921_v53 = vadd.f32 %v900_v42, %v784_v5 }
 0x26d   : > { %v1092_v15 = vmax.f32 %v1090_v37, %v5918_v61 }
 0x26e   : > { %9540 = vst [vmem:[#allocation35_spill] sm:$0xff] %v5921_v53  ;;  %v1129_v19 = vmax.f32 %v1127_v41, %v5921_v53  ;;  %v652_v13 = vpop.f32.mrb[20].mxu1  ;;  %v835_v41 = vld [vmem:[%s9324_s4 + $0xc] sm:$0x3] }
 0x26f   : > { %v785_v49 = vadd.f32 %v5792_v50, %v652_v13  ;;  %v654_v38 = vpop.f32.mrb[21].mxu1 }
 0x270   : > { %v786_v1 = vadd.f32 %v5805_v54, %v654_v38  ;;  %v656_v11 = vpop.f32.mrb[22].mxu1 }
 0x271   : > { %v5929_v26 = vadd.f32 %v904_v8, %v785_v49  ;;  %v787_v0 = vadd.f32 %v5810_v55, %v656_v11  ;;  %v658_v42 = vpop.f32.mrb[23].mxu1  ;;  %v912_v11 = vrot.slane %v835_v41, %v5785_v47 }
 0x272   : > { %v5932_v5 = vadd.f32 %v908_v51, %v786_v1  ;;  %v788_v37 = vadd.f32 %v5817_v59, %v658_v42  ;;  %v916_v42 = vrot.slane %v835_v41, %v5797_v52 }
 0x273   : > { %v1093_v12 = vmax.f32 %v1091_v16, %v5929_v26  ;;  %v5939_v13 = vadd.f32 %v904_v8, %v787_v0 }
 0x274   : > { %9541 = vst [vmem:[#allocation36_spill] sm:$0xff] %v5932_v5  ;;  %v1130_v38 = vmax.f32 %v1128_v29, %v5932_v5  ;;  %v5942_v36 = vadd.f32 %v908_v51, %v788_v37 }
 0x275   : > { %v1094_v49 = vmax.f32 %v1092_v15, %v5939_v13 }
 0x276   : > { %9542 = vst [vmem:[#allocation37_spill] sm:$0xff] %v5942_v36  ;;  %v1131_v1 = vmax.f32 %v1129_v19, %v5942_v36  ;;  %v662_v35 = vpop.f32.mrb[24].mxu1  ;;  %v836_v19 = vld [vmem:[%s9324_s4 + $0xe] sm:$0x3] }
 0x277   : > { %v789_v34 = vadd.f32 %v5792_v50, %v662_v35  ;;  %v664_v33 = vpop.f32.mrb[25].mxu1 }
 0x278   : > { %v790_v16 = vadd.f32 %v5805_v54, %v664_v33  ;;  %v666_v8 = vpop.f32.mrb[26].mxu1 }
 0x279   : > { %v5950_v0 = vadd.f32 %v912_v11, %v789_v34  ;;  %v791_v29 = vadd.f32 %v5810_v55, %v666_v8  ;;  %v668_v51 = vpop.f32.mrb[27].mxu1  ;;  %v920_v8 = vrot.slane %v836_v19, %v5785_v47 }
 0x27a   : > { %v5953_v37 = vadd.f32 %v916_v42, %v790_v16  ;;  %v792_v15 = vadd.f32 %v5817_v59, %v668_v51  ;;  %v924_v51 = vrot.slane %v836_v19, %v5797_v52 }
 0x27b   : > { %v1095_v41 = vmax.f32 %v1093_v12, %v5950_v0  ;;  %v5960_v35 = vadd.f32 %v912_v11, %v791_v29 }
 0x27c   : > { %9543 = vst [vmem:[#allocation38_spill] sm:$0xff] %v5953_v37  ;;  %v1132_v33 = vmax.f32 %v1130_v38, %v5953_v37  ;;  %v5963_v28 = vadd.f32 %v916_v42, %v792_v15 }
 0x27d   : > { %v1096_v34 = vmax.f32 %v1094_v49, %v5960_v35 }
 0x27e   : > { %9544 = vst [vmem:[#allocation39_spill] sm:$0xff] %v5963_v28  ;;  %v1133_v16 = vmax.f32 %v1131_v1, %v5963_v28  ;;  %v672_v27 = vpop.f32.mrb[28].mxu1  ;;  %v251_v1 = vld [vmem:[%s9322_s2 + $0x58] sm:$0xff] }
 0x27f   : > { %v793_v32 = vadd.f32 %v5792_v50, %v672_v27  ;;  %v674_v9 = vpop.f32.mrb[29].mxu1  ;;  %v837_v27 = vld [vmem:[%s9324_s4 + $0x10] sm:$0x3] }
 0x280   : > { %v794_v12 = vadd.f32 %v5805_v54, %v674_v9  ;;  %v676_v11 = vpop.f32.mrb[30].mxu1  ;;  %v932_v4 = vrot.slane %v837_v27, %v5797_v52 }
 0x281   : > { %v5971_v29 = vadd.f32 %v920_v8, %v793_v32  ;;  %v795_v38 = vadd.f32 %v5810_v55, %v676_v11  ;;  %v678_v42 = vpop.f32.mrb[31].mxu1 }
 0x282   : > { %v5974_v15 = vadd.f32 %v924_v51, %v794_v12  ;;  %v796_v49 = vadd.f32 %v5817_v59, %v678_v42  ;;  %v928_v42 = vrot.slane %v837_v27, %v5785_v47 }
 0x283   : > { %v1097_v9 = vmax.f32 %v1095_v41, %v5971_v29  ;;  %v5984_v19 = vadd.f32 %v920_v8, %v795_v38  ;;  %v4609_v41 = vld [vmem:[%s9322_s2 + $0x70] sm:$0xff] }
 0x284   : > { %9545 = vst [vmem:[#allocation40_spill] sm:$0xff] %v5974_v15  ;;  %v1134_v32 = vmax.f32 %v1132_v33, %v5974_v15  ;;  %v5987_v11 = vadd.f32 %v924_v51, %v796_v49 }
 0x285   : > { %v1098_v12 = vmax.f32 %v1096_v34, %v5984_v19  ;;  %309 = vperm.xlu0 %4940, %v251_v1  }
 0x286   : > { %9546 = vst [vmem:[#allocation41_spill] sm:$0xff] %v5987_v11  ;;  %v1135_v7 = vmax.f32 %v1133_v16, %v5987_v11  ;;  %v682_v6 = vpop.f32.mrb[32].mxu1 }
 0x287   : > { %v797_v8 = vadd.f32 %v5792_v50, %v682_v6  ;;  %v684_v38 = vpop.f32.mrb[33].mxu1 }
 0x288   : > { %v798_v33 = vadd.f32 %v5805_v54, %v684_v38  ;;  %v686_v51 = vpop.f32.mrb[34].mxu1 }
 0x289   : > { %v5998_v49 = vadd.f32 %v928_v42, %v797_v8  ;;  %v799_v34 = vadd.f32 %v5810_v55, %v686_v51  ;;  %4623 = vperm.xlu0 %4940, %v4609_v41   ;;  %v688_v1 = vpop.f32.mrb[35].mxu1  ;;  %v936_v41 = vrot.slane %v838_v2, %v5785_v47 }
 0x28a   : > { %v6001_v16 = vadd.f32 %v932_v4, %v798_v33  ;;  %v800_v27 = vadd.f32 %v5817_v59, %v688_v1  ;;  %v940_v1 = vrot.slane %v838_v2, %v5797_v52 }
 0x28b   : > { %v1099_v6 = vmax.f32 %v1097_v9, %v5998_v49  ;;  %v6008_v63 = vadd.f32 %v928_v42, %v799_v34 }
 0x28c   : > { %9547 = vst [vmem:[#allocation42_spill] sm:$0xff] %v6001_v16  ;;  %v1136_v38 = vmax.f32 %v1134_v32, %v6001_v16  ;;  %v6011_v8 = vadd.f32 %v932_v4, %v800_v27 }
 0x28d   : > { %v1100_v51 = vmax.f32 %v1098_v12, %v6008_v63 }
 0x28e   : > { %9548 = vst [vmem:[#allocation43_spill] sm:$0xff] %v6011_v8  ;;  %v1137_v33 = vmax.f32 %v1135_v7, %v6011_v8  ;;  %v692_v62 = vpop.f32.mrb[36].mxu1  ;;  %v839_v7 = vld [vmem:[%s9324_s4 + $0x14] sm:$0x3] }
 0x28f   : > { %v801_v60 = vadd.f32 %v5792_v50, %v692_v62  ;;  %v694_v44 = vpop.f32.mrb[37].mxu1 }
 0x290   : > { %v802_v9 = vadd.f32 %v5805_v54, %v694_v44  ;;  %v696_v42 = vpop.f32.mrb[38].mxu1 }
 0x291   : > { %v6019_v34 = vadd.f32 %v936_v41, %v801_v60  ;;  %v803_v4 = vadd.f32 %v5810_v55, %v696_v42  ;;  %v698_v32 = vpop.f32.mrb[39].mxu1  ;;  %v944_v42 = vrot.slane %v839_v7, %v5785_v47 }
 0x292   : > { %v6022_v27 = vadd.f32 %v940_v1, %v802_v9  ;;  %v804_v12 = vadd.f32 %v5817_v59, %v698_v32  ;;  %v948_v32 = vrot.slane %v839_v7, %v5797_v52 }
 0x293   : > { %v1101_v2 = vmax.f32 %v1099_v6, %v6019_v34  ;;  %v6029_v62 = vadd.f32 %v936_v41, %v803_v4 }
 0x294   : > { %9549 = vst [vmem:[#allocation44_spill] sm:$0xff] %v6022_v27  ;;  %v1138_v44 = vmax.f32 %v1136_v38, %v6022_v27  ;;  %v6032_v45 = vadd.f32 %v940_v1, %v804_v12 }
 0x295   : > { %v1102_v60 = vmax.f32 %v1100_v51, %v6029_v62 }
 0x296   : > { %9550 = vst [vmem:[#allocation45_spill] sm:$0xff] %v6032_v45  ;;  %v1139_v9 = vmax.f32 %v1137_v33, %v6032_v45  ;;  %v702_v24 = vpop.f32.mrb[40].mxu1  ;;  %v840_v33 = vld [vmem:[%s9324_s4 + $0x16] sm:$0x3] }
 0x297   : > { %v805_v22 = vadd.f32 %v5792_v50, %v702_v24  ;;  %v704_v58 = vpop.f32.mrb[41].mxu1 }
 0x298   : > { %v806_v6 = vadd.f32 %v5805_v54, %v704_v58  ;;  %v706_v41 = vpop.f32.mrb[42].mxu1 }
 0x299   : > { %v6040_v4 = vadd.f32 %v944_v42, %v805_v22  ;;  %v807_v38 = vadd.f32 %v5810_v55, %v706_v41  ;;  %v708_v1 = vpop.f32.mrb[43].mxu1  ;;  %v952_v41 = vrot.slane %v840_v33, %v5785_v47 }
 0x29a   : > { %v6043_v12 = vadd.f32 %v948_v32, %v806_v6  ;;  %v808_v51 = vadd.f32 %v5817_v59, %v708_v1 }
 0x29b   : > { %v1103_v7 = vmax.f32 %v1101_v2, %v6040_v4  ;;  %v6050_v24 = vadd.f32 %v944_v42, %v807_v38 }
 0x29c   : > { %9551 = vst [vmem:[#allocation46_spill] sm:$0xff] %v6043_v12  ;;  %v1140_v58 = vmax.f32 %v1138_v44, %v6043_v12  ;;  %v6053_v45 = vadd.f32 %v948_v32, %v808_v51  ;;  %v841_v44 = vld [vmem:[%s9324_s4 + $0x18] sm:$0x3] }
 0x29d   : > { %v1104_v22 = vmax.f32 %v1102_v60, %v6050_v24  ;;  %v960_v38 = vrot.slane %v841_v44, %v5785_v47 }
 0x29e   : > { %9552 = vst [vmem:[#allocation47_spill] sm:$0xff] %v6053_v45  ;;  %v1141_v6 = vmax.f32 %v1139_v9, %v6053_v45  ;;  %v712_v27 = vpop.f32.mrb[44].mxu1 }
 0x29f   : > { %v809_v1 = vadd.f32 %v5792_v50, %v712_v27  ;;  %v714_v8 = vpop.f32.mrb[45].mxu1 }
 0x2a0   : > { %v716_v16 = vpop.f32.mrb[46].mxu1  ;;  %v810_v45 = vadd.f32 %v5805_v54, %v714_v8 }
 0x2a1   : > { %v6059_v11 = vadd.f32 %v952_v41, %v809_v1  ;;  %v811_v2 = vadd.f32 %v5810_v55, %v716_v16  ;;  %v718_v42 = vpop.f32.mrb[47].mxu1  ;;  %v956_v16 = vrot.slane %v840_v33, %v5797_v52 }
 0x2a3   : > { %v1105_v60 = vmax.f32 %v1103_v7, %v6059_v11  ;;  %v6066_v32 = vadd.f32 %v952_v41, %v811_v2  ;;  %v812_v41 = vadd.f32 %v5817_v59, %v718_v42  ;;  %v964_v2 = vrot.slane %v841_v44, %v5797_v52 }
 0x2a4   : > { %v6085_v33 = vadd.f32 %v956_v16, %v810_v45 }
 0x2a5   : > { %v1106_v9 = vmax.f32 %v1104_v22, %v6066_v32  ;;  %v6090_v36 = vadd.f32 %v956_v16, %v812_v41 }
 0x2a6   : > { %v722_v27 = vpop.f32.mrb[48].mxu1  ;;  %9553 = vst [vmem:[#allocation48_spill] sm:$0xff] %v6085_v33 }
 0x2a7   : > { %v813_v51 = vadd.f32 %v5792_v50, %v722_v27  ;;  %v724_v1 = vpop.f32.mrb[49].mxu1  ;;  %v842_v27 = vld [vmem:[%s9324_s4 + $0x1a] sm:$0x3]  ;;  %9554 = vst [vmem:[#allocation49_spill] sm:$0xff] %v6090_v36 }
 0x2a8   : > { %v726_v12 = vpop.f32.mrb[50].mxu1  ;;  %v814_v22 = vadd.f32 %v5805_v54, %v724_v1  ;;  %v968_v42 = vrot.slane %v842_v27, %v5785_v47  ;;  %v972_v5 = vrot.slane %v842_v27, %v5797_v52 }
 0x2a9   : > { %v6073_v15 = vadd.f32 %v960_v38, %v813_v51  ;;  %v815_v28 = vadd.f32 %v5810_v55, %v726_v12  ;;  %v728_v7 = vpop.f32.mrb[51].mxu1 }
 0x2aa   : > { %v816_v51 = vadd.f32 %v5817_v59, %v728_v7  ;;  %v6092_v1 = vadd.f32 %v964_v2, %v814_v22  ;;  %v1143_v22 = vmax.f32 %v1141_v6, %v6090_v36 }
 0x2ab   : > { %v1107_v8 = vmax.f32 %v1105_v60, %v6073_v15  ;;  %v6083_v37 = vadd.f32 %v960_v38, %v815_v28  ;;  %v1142_v28 = vmax.f32 %v1140_v58, %v6085_v33  ;;  %v843_v58 = vld [vmem:[%s9324_s4 + $0x1c] sm:$0x3] }
 0x2ac   : > { %9555 = vst [vmem:[#allocation50_spill] sm:$0xff] %v6092_v1  ;;  %v6097_v45 = vadd.f32 %v964_v2, %v816_v51 }
 0x2ad   : > { %v1108_v12 = vmax.f32 %v1106_v9, %v6083_v37  ;;  %v1144_v56 = vmax.f32 %v1142_v28, %v6092_v1  ;;  %v976_v28 = vrot.slane %v843_v58, %v5785_v47  ;;  %v980_v1 = vrot.slane %v843_v58, %v5797_v52 }
 0x2ae   : > { %v732_v44 = vpop.f32.mrb[52].mxu1  ;;  %9556 = vst [vmem:[#allocation51_spill] sm:$0xff] %v6097_v45 }
 0x2af   : > { %v817_v53 = vadd.f32 %v5792_v50, %v732_v44  ;;  %v734_v60 = vpop.f32.mrb[53].mxu1 }
 0x2b0   : > { %v818_v38 = vadd.f32 %v5805_v54, %v734_v60  ;;  %v736_v7 = vpop.f32.mrb[54].mxu1 }
 0x2b1   : > { %v6100_v9 = vadd.f32 %v968_v42, %v817_v53  ;;  %v819_v16 = vadd.f32 %v5810_v55, %v736_v7  ;;  %v738_v41 = vpop.f32.mrb[55].mxu1  ;;  %v1145_v53 = vmax.f32 %v1143_v22, %v6097_v45 }
 0x2b2   : > { %v6105_v27 = vadd.f32 %v972_v5, %v818_v38  ;;  %v820_v44 = vadd.f32 %v5817_v59, %v738_v41 }
 0x2b3   : > { %v1109_v2 = vmax.f32 %v1107_v8, %v6100_v9  ;;  %v6112_v51 = vadd.f32 %v968_v42, %v819_v16 }
 0x2b4   : > { %9557 = vst [vmem:[#allocation52_spill] sm:$0xff] %v6105_v27  ;;  %v1146_v60 = vmax.f32 %v1144_v56, %v6105_v27  ;;  %v6116_v7 = vadd.f32 %v972_v5, %v820_v44 }
 0x2b5   : > { %v1110_v6 = vmax.f32 %v1108_v12, %v6112_v51 }
 0x2b6   : > { %9558 = vst [vmem:[#allocation53_spill] sm:$0xff] %v6116_v7  ;;  %v1147_v38 = vmax.f32 %v1145_v53, %v6116_v7  ;;  %v742_v41 = vpop.f32.mrb[56].mxu1  ;;  %v844_v53 = vld [vmem:[%s9324_s4 + $0x1e] sm:$0x3] }
 0x2b7   : > { %v821_v36 = vadd.f32 %v5792_v50, %v742_v41  ;;  %v744_v8 = vpop.f32.mrb[57].mxu1 }
 0x2b8   : > { %v822_v42 = vadd.f32 %v5805_v54, %v744_v8  ;;  %v746_v16 = vpop.f32.mrb[58].mxu1 }
 0x2b9   : > { %v6124_v22 = vadd.f32 %v976_v28, %v821_v36  ;;  %v823_v56 = vadd.f32 %v5810_v55, %v746_v16  ;;  %v748_v5 = vpop.f32.mrb[59].mxu1  ;;  %v984_v16 = vrot.slane %v844_v53, %v5785_v47 }
 0x2ba   : > { %v6127_v44 = vadd.f32 %v980_v1, %v822_v42  ;;  %v824_v12 = vadd.f32 %v5817_v59, %v748_v5  ;;  %v988_v5 = vrot.slane %v844_v53, %v5797_v52  ;;  %v6154_v53 = vpop.f32.mrb[18].mxu0 }
 0x2bb   : > { %v1111_v58 = vmax.f32 %v1109_v2, %v6124_v22  ;;  %v6134_v41 = vadd.f32 %v976_v28, %v823_v56  ;;  %9559 = vst [vmem:[#allocation54_spill] sm:$0xff] %v6154_v53 }
 0x2bc   : > { %v1148_v8 = vmax.f32 %v1146_v60, %v6127_v44  ;;  %v6137_v45 = vadd.f32 %v980_v1, %v824_v12 }
 0x2bd   : > { %v1112_v36 = vmax.f32 %v1110_v6, %v6134_v41 }
 0x2be   : > { %v1149_v42 = vmax.f32 %v1147_v38, %v6137_v45  ;;  %v752_v33 = vpop.f32.mrb[60].mxu1 }
 0x2bf   : > { %v825_v7 = vadd.f32 %v5792_v50, %v752_v33  ;;  %v754_v27 = vpop.f32.mrb[61].mxu1 }
 0x2c0   : > { %v826_v2 = vadd.f32 %v5805_v54, %v754_v27  ;;  %v756_v28 = vpop.f32.mrb[62].mxu1  ;;  %v6159_v54 = vpop.f32.mrb[19].mxu0 }
 0x2c1   : > { %v6145_v56 = vadd.f32 %v984_v16, %v825_v7  ;;  %v827_v1 = vadd.f32 %v5810_v55, %v756_v28  ;;  %v758_v60 = vpop.f32.mrb[63].mxu1  ;;  %9561 = vst [vmem:[#allocation56_spill] sm:$0xff] %v6159_v54  ;;  %v6162_v55 = vpop.f32.mrb[20].mxu0 }
 0x2c2   : > { %v6148_v12 = vadd.f32 %v988_v5, %v826_v2  ;;  %v828_v6 = vadd.f32 %v5817_v59, %v758_v60  ;;  %9562 = vst [vmem:[#allocation57_spill] sm:$0xff] %v6162_v55  ;;  %v6165_v2 = vpop.f32.mrb[21].mxu0 }
 0x2c3   : > { %v1113_v38 = vmax.f32 %v1111_v58, %v6145_v56  ;;  %v6152_v47 = vadd.f32 %v984_v16, %v827_v1  ;;  %9563 = vst [vmem:[#allocation58_spill] sm:$0xff] %v6165_v2  ;;  %v6167_v58 = vpop.f32.mrb[22].mxu0 }
 0x2c4   : > { %v1150_v50 = vmax.f32 %v1148_v8, %v6148_v12  ;;  %v6157_v33 = vadd.f32 %v988_v5, %v828_v6  ;;  %v6169_v28 = vpop.f32.mrb[23].mxu0 }
 0x2c5   : > { %v1114_v27 = vmax.f32 %v1112_v36, %v6152_v47  ;;  %9564 = vst [vmem:[#allocation59_spill] sm:$0xff] %v6169_v28  ;;  %v6171_v36 = vpop.permute.xlu0 %269  ;;  %v9589_v28 = vld [vmem:[#allocation47_spill] sm:$0xff] }
 0x2c6   : > { %9560 = vst [vmem:[#allocation55_spill] sm:$0xff] %v6157_v33  ;;  %v1151_v7 = vmax.f32 %v1149_v42, %v6157_v33  ;;  %9565 = vst [vmem:[#allocation60_spill] sm:$0xff] %v6171_v36 }
 0x2c7   : > { %v1115_v59 = vmax.f32 %v1113_v38, %v1114_v27  ;;  %v6175_v38 = vpop.trf.xlu1 }
 0x2c8   : > { %v1152_v16 = vmax.f32 %v1150_v50, %v1151_v7  ;;  %9566 = vst [vmem:[#allocation61_spill] sm:$0xff] %v6175_v38 }
 0x2c9   : > { %v1116_v1 = vrot.slane %v1115_v59, 4  ;;  %v6179_v50 = vpop.trf.xlu0 }
 0x2ca   : > { %v1153_v8 = vrot.slane %v1152_v16, 4  ;;  %9567 = vst [vmem:[#allocation62_spill] sm:$0xff] %v6179_v50 }
 0x2cb   : > { %v1117_v5 = vmax.f32 %v1115_v59, %v1116_v1  ;;  %v6221_v1 = vpop.trf.xlu1 }
 0x2cc   : > { %v1154_v60 = vmax.f32 %v1152_v16, %v1153_v8  ;;  %9568 = vst [vmem:[#allocation63_spill] sm:$0xff] %v6221_v1 }
 0x2cd   : > { %v1118_v6 = vrot.slane %v1117_v5, 2 }
 0x2ce   : > { %v1155_v53 = vrot.slane %v1154_v60, 2 }
 0x2cf   : > { %v1119_v52 = vmax.f32 %v1117_v5, %v1118_v6 }
 0x2d0   : > { %v1156_v55 = vmax.f32 %v1154_v60, %v1155_v53 }
 0x2d1   : > { %v1120_v54 = vrot.slane %v1119_v52, 1 }
 0x2d2   : > { %v1157_v42 = vrot.slane %v1156_v55, 1 }
 0x2d3   : > { %v6173_v33 = vmax.f32 %v1119_v52, %v1120_v54 }
 0x2d4   : > { %v6177_v27 = vmax.f32 %v1156_v55, %v1157_v42 }
 0x2d5   : > { %v1159_v7 = vsub.f32 %v5829_v17, %v6173_v33  ;;  %v1161_v59 = vsub.f32 %v5842_v31, %v6173_v33  ;;  %v1163_v16 = vsub.f32 %v5831_v18, %v6173_v33  ;;  %v1165_v53 = vsub.f32 %v5846_v39, %v6173_v33 }
 0x2d6   : > { %v1167_v52 = vsub.f32 %v5864_v10, %v6173_v33  ;;  %v1169_v54 = vsub.f32 %v5874_v20, %v6173_v33  ;;  %v1171_v55 = vsub.f32 %v5887_v43, %v6173_v33  ;;  %v1173_v17 = vsub.f32 %v5897_v3, %v6173_v33 }
 0x2d7   : > { %v1175_v31 = vsub.f32 %v5908_v48, %v6173_v33  ;;  %v1177_v18 = vsub.f32 %v5918_v61, %v6173_v33  ;;  %v1179_v39 = vsub.f32 %v5929_v26, %v6173_v33  ;;  %v1181_v10 = vsub.f32 %v5939_v13, %v6173_v33 }
 0x2d8   : > { %v1183_v20 = vsub.f32 %v5950_v0, %v6173_v33  ;;  %v1185_v43 = vsub.f32 %v5960_v35, %v6173_v33  ;;  %v1187_v3 = vsub.f32 %v5971_v29, %v6173_v33  ;;  %v1189_v48 = vsub.f32 %v5984_v19, %v6173_v33  ;;  %v6253_v35 = vpop.trf.xlu1 }
 0x2d9   : > { %v1191_v61 = vsub.f32 %v5998_v49, %v6173_v33  ;;  %v1193_v26 = vsub.f32 %v6008_v63, %v6173_v33  ;;  %v1195_v13 = vsub.f32 %v6019_v34, %v6173_v33  ;;  %v1197_v0 = vsub.f32 %v6029_v62, %v6173_v33  ;;  %v6231_v49 = vpop.trf.xlu0  ;;  %9570 = vst [vmem:[#allocation65_spill] sm:$0xff] %v6253_v35 }
 0x2da   : > { %9569 = vst [vmem:[#allocation64_spill] sm:$0xff] %v6231_v49  ;;  %v1223_v63 = vmul.f32 1.442695, %v1159_v7  ;;  %v1227_v62 = vmul.f32 1.442695, %v1161_v59  ;;  %v9591_v50 = vsub.f32 %v6050_v24, %v6173_v33 }
 0x2db   : > { %v1231_v19 = vmul.f32 1.442695, %v1163_v16  ;;  %v1235_v29 = vmul.f32 1.442695, %v1165_v53  ;;  %v1239_v60 = vmul.f32 1.442695, %v1167_v52 }
 0x2dc   : > { %4956 = vpow2.f32 %v1223_v63  ;;  %v1243_v6 = vmul.f32 1.442695, %v1169_v54  ;;  %v1247_v34 = vmul.f32 1.442695, %v1171_v55  ;;  %v1251_v7 = vmul.f32 1.442695, %v1173_v17  ;;  %v6257_v49 = vpop.trf.xlu1 }
 0x2dd   : > { %4958 = vpow2.f32 %v1227_v62  ;;  %v6255_v42 = vpop.trf.xlu0  ;;  %v1255_v59 = vmul.f32 1.442695, %v1175_v31  ;;  %v1259_v16 = vmul.f32 1.442695, %v1177_v18  ;;  %v1263_v53 = vmul.f32 1.442695, %v1179_v39 }
 0x2de   : > { %9571 = vst [vmem:[#allocation66_spill] sm:$0xff] %v6255_v42  ;;  %4960 = vpow2.f32 %v1231_v19  ;;  %v1267_v8 = vmul.f32 1.442695, %v1181_v10  ;;  %v1271_v5 = vmul.f32 1.442695, %v1183_v20  ;;  %9572 = vst [vmem:[#allocation67_spill] sm:$0xff] %v6257_v49 }
 0x2df   : > { %4962 = vpow2.f32 %v1235_v29  ;;  %v1275_v63 = vmul.f32 1.442695, %v1185_v43  ;;  %v1279_v52 = vmul.f32 1.442695, %v1187_v3  ;;  %v1283_v54 = vmul.f32 1.442695, %v1189_v48 }
 0x2e0   : > { %4964 = vpow2.f32 %v1239_v60  ;;  %v1287_v62 = vmul.f32 1.442695, %v1191_v61  ;;  %v1291_v42 = vmul.f32 1.442695, %v1193_v26  ;;  %v1295_v55 = vmul.f32 1.442695, %v1195_v13  ;;  %v6293_v3 = vpop.trf.xlu1 }
 0x2e1   : > { %4966 = vpow2.f32 %v1243_v6  ;;  %v6259_v19 = vpop.trf.xlu0  ;;  %v1299_v17 = vmul.f32 1.442695, %v1197_v0  ;;  %v9574_v48 = vld [vmem:[#allocation34_spill] sm:$0xff]  ;;  %v9575_v13 = vld [vmem:[#allocation35_spill] sm:$0xff]  ;;  %v9576_v29 = vld [vmem:[#allocation36_spill] sm:$0xff] }
 0x2e2   : > { %4968 = vpow2.f32 %v1247_v34  ;;  %9573 = vst [vmem:[#allocation68_spill] sm:$0xff] %v6259_v19  ;;  %v9577_v60 = vld [vmem:[#allocation37_spill] sm:$0xff]  ;;  %9580 = vst [vmem:[#allocation34_spill] sm:$0xff] %v6293_v3  ;;  %v9581_v34 = vld [vmem:[#allocation40_spill] sm:$0xff] }
 0x2e3   : > { %4970 = vpow2.f32 %v1251_v7  ;;  %v9582_v43 = vld [vmem:[#allocation41_spill] sm:$0xff]  ;;  %v9583_v10 = vld [vmem:[#allocation42_spill] sm:$0xff]  ;;  %v9585_v31 = vld [vmem:[#allocation43_spill] sm:$0xff] }
 0x2e4   : > { %4972 = vpow2.f32 %v1255_v59  ;;  %v9588_v39 = vld [vmem:[#allocation46_spill] sm:$0xff] }
 0x2e5   : > { %4974 = vpow2.f32 %v1259_v16  ;;  %v9578_v16 = vld [vmem:[#allocation38_spill] sm:$0xff]  ;;  %v6303_v18 = vpop.trf.xlu0 }
 0x2e6   : > { %v6269_v20 = vpop.eup %4956  ;;  %4976 = vpow2.f32 %v1263_v53  ;;  %9584 = vst [vmem:[#allocation35_spill] sm:$0xff] %v6303_v18  ;;  %v9592_v18 = vsub.f32 %v6059_v11, %v6173_v33  ;;  %v6346_v11 = vpop.trf.xlu1 }
 0x2e7   : > { %v6277_v26 = vpop.eup %4958  ;;  %4978 = vpow2.f32 %v1267_v8  ;;  %v9579_v8 = vld [vmem:[#allocation39_spill] sm:$0xff]  ;;  %9596 = vst [vmem:[#allocation36_spill] sm:$0xff] %v6346_v11 }
 0x2e8   : > { %v6285_v7 = vpop.eup %4960  ;;  %4980 = vpow2.f32 %v1271_v5  ;;  %v1351_v59 = vadd.f32 %v6277_v26, %v6269_v20  ;;  %v9587_v5 = vld [vmem:[#allocation45_spill] sm:$0xff] }
 0x2e9   : > { %v6295_v0 = vpop.eup %4962  ;;  %4982 = vpow2.f32 %v1275_v63  ;;  %v9586_v63 = vld [vmem:[#allocation44_spill] sm:$0xff] }
 0x2ea   : > { %v6305_v53 = vpop.eup %4964  ;;  %4984 = vpow2.f32 %v1279_v52  ;;  %v1352_v61 = vadd.f32 %v6285_v7, %v1351_v59  ;;  %v9590_v59 = vsub.f32 %v6040_v4, %v6173_v33  ;;  %v1311_v52 = vmul.f32 1.442695, %v9592_v18  ;;  %v9594_v4 = vld [vmem:[#allocation52_spill] sm:$0xff] }
 0x2eb   : > { %v6312_v6 = vpop.eup %4966  ;;  %4986 = vpow2.f32 %v1283_v54  ;;  %v1307_v54 = vmul.f32 1.442695, %v9591_v50  ;;  %v9595_v50 = vld [vmem:[#allocation53_spill] sm:$0xff] }
 0x2ec   : > { %v6320_v2 = vpop.eup %4968  ;;  %4988 = vpow2.f32 %v1287_v62  ;;  %v1303_v19 = vmul.f32 1.442695, %v9590_v59  ;;  %v1353_v3 = vadd.f32 %v6295_v0, %v1352_v61  ;;  %v9593_v62 = vsub.f32 %v6066_v32, %v6173_v33  ;;  %v6356_v59 = vpop.trf.xlu0 }
 0x2ed   : > { %v6329_v36 = vpop.eup %4970  ;;  %4990 = vpow2.f32 %v1291_v42  ;;  %9598 = vst [vmem:[#allocation37_spill] sm:$0xff] %v6356_v59  ;;  %v9599_v42 = vsub.f32 %v6073_v15, %v6173_v33 }
 0x2ee   : > { %v1315_v49 = vmul.f32 1.442695, %v9593_v62  ;;  %v6339_v35 = vpop.eup %4972  ;;  %4992 = vpow2.f32 %v1295_v55  ;;  %v1354_v24 = vadd.f32 %v6305_v53, %v1353_v3  ;;  %v9597_v55 = vld [vmem:[#allocation55_spill] sm:$0xff]  ;;  %v9600_v62 = vsub.f32 %v6083_v37, %v6173_v33 }
 0x2ef   : > { %v6348_v18 = vpop.eup %4974  ;;  %4994 = vpow2.f32 %v1299_v17  ;;  %v1319_v11 = vmul.f32 1.442695, %v9599_v42  ;;  %v9601_v3 = vsub.f32 %v6100_v9, %v6173_v33  ;;  %v9604_v37 = vsub.f32 %v6124_v22, %v6173_v33  ;;  %v6386_v9 = vpop.trf.xlu1 }
 0x2f0   : > { %v6358_v61 = vpop.eup %4976  ;;  %4996 = vpow2.f32 %v1303_v19  ;;  %v1355_v17 = vadd.f32 %v6312_v6, %v1354_v24  ;;  %v1323_v32 = vmul.f32 1.442695, %v9600_v62  ;;  %v9602_v24 = vsub.f32 %v6112_v51, %v6173_v33  ;;  %9605 = vst [vmem:[#allocation39_spill] sm:$0xff] %v6386_v9  ;;  %v6393_v51 = vpop.trf.xlu0 }
 0x2f1   : > { %v6364_v1 = vpop.eup %4978  ;;  %4998 = vpow2.f32 %v1307_v54  ;;  %v1327_v19 = vmul.f32 1.442695, %v9601_v3  ;;  %9607 = vst [vmem:[#allocation40_spill] sm:$0xff] %v6393_v51  ;;  %v9608_v22 = vsub.f32 %v6145_v56, %v6173_v33 }
 0x2f2   : > { %v6369_v38 = vpop.eup %4980  ;;  %5000 = vpow2.f32 %v1311_v52  ;;  %v1356_v59 = vadd.f32 %v6320_v2, %v1355_v17  ;;  %v1331_v54 = vmul.f32 1.442695, %v9602_v24  ;;  %v1335_v52 = vmul.f32 1.442695, %v9604_v37 }
 0x2f3   : > { %v6375_v15 = vpop.eup %4982  ;;  %5002 = vpow2.f32 %v1315_v49  ;;  %v9606_v49 = vsub.f32 %v6134_v41, %v6173_v33 }
 0x2f4   : > { %v6380_v42 = vpop.eup %4984  ;;  %5004 = vpow2.f32 %v1319_v11  ;;  %v1357_v62 = vadd.f32 %v6329_v36, %v1356_v59  ;;  %v1343_v11 = vmul.f32 1.442695, %v9608_v22 }
 0x2f5   : > { %9603 = vst [vmem:[#allocation38_spill] sm:$0xff] %v6380_v42  ;;  %v6388_v3 = vpop.eup %4986  ;;  %5006 = vpow2.f32 %v1323_v32  ;;  %v1339_v17 = vmul.f32 1.442695, %v9606_v49  ;;  %v9609_v32 = vsub.f32 %v6152_v47, %v6173_v33  ;;  %v9612_v47 = vsub.f32 %v5836_v23, %v6177_v27 }
 0x2f6   : > { %v6395_v24 = vpop.eup %4988  ;;  %5008 = vpow2.f32 %v1327_v19  ;;  %v1358_v59 = vadd.f32 %v6339_v35, %v1357_v62  ;;  %v9610_v19 = vsub.f32 %v5834_v21, %v6177_v27  ;;  %v9611_v62 = vsub.f32 %v5848_v40, %v6177_v27 }
 0x2f7   : > { %v6401_v37 = vpop.eup %4990  ;;  %5010 = vpow2.f32 %v1331_v54  ;;  %v1347_v9 = vmul.f32 1.442695, %v9609_v32  ;;  %v1233_v33 = vmul.f32 1.442695, %v9612_v47  ;;  %v9613_v21 = vsub.f32 %v5852_v46, %v6177_v27 }
 0x2f8   : > { %v6406_v41 = vpop.eup %4992  ;;  %5012 = vpow2.f32 %v1335_v52  ;;  %v1359_v49 = vadd.f32 %v6348_v18, %v1358_v59  ;;  %v1225_v51 = vmul.f32 1.442695, %v9610_v19  ;;  %v1229_v54 = vmul.f32 1.442695, %v9611_v62  ;;  %v6429_v19 = vpop.trf.xlu1 }
 0x2f9   : > { %v6412_v56 = vpop.eup %4994  ;;  %5014 = vpow2.f32 %v1339_v17  ;;  %v1237_v59 = vmul.f32 1.442695, %v9613_v21  ;;  %v9614_v17 = vsub.f32 %v5867_v14, %v6177_v27  ;;  %9615 = vst [vmem:[#allocation41_spill] sm:$0xff] %v6429_v19  ;;  %v9616_v23 = vsub.f32 %v5877_v57, %v6177_v27  ;;  %v6442_v21 = vpop.trf.xlu0 }
 0x2fa   : > { %v6420_v22 = vpop.eup %4996  ;;  %5016 = vpow2.f32 %v1343_v11  ;;  %v1360_v52 = vadd.f32 %v6358_v61, %v1359_v49  ;;  %v9617_v11 = vsub.f32 %v5890_v25, %v6177_v27  ;;  %v9618_v46 = vsub.f32 %v5900_v30, %v6177_v27  ;;  %9619 = vst [vmem:[#allocation42_spill] sm:$0xff] %v6442_v21 }
 0x2fb   : > { %v1241_v32 = vmul.f32 1.442695, %v9614_v17  ;;  %v6431_v40 = vpop.eup %4998  ;;  %5018 = vpow2.f32 %v1347_v9  ;;  %v1245_v62 = vmul.f32 1.442695, %v9616_v23  ;;  %v9620_v9 = vsub.f32 %v9574_v48, %v6177_v27 }
 0x2fc   : > { %v1249_v49 = vmul.f32 1.442695, %v9617_v11  ;;  %v1253_v47 = vmul.f32 1.442695, %v9618_v46  ;;  %v6444_v14 = vpop.eup %5000  ;;  %v1361_v17 = vadd.f32 %v6364_v1, %v1360_v52  ;;  %5020 = vpow2.f32 %v1225_v51 }
 0x2fd   : > { %v1257_v57 = vmul.f32 1.442695, %v9620_v9  ;;  %v9621_v23 = vsub.f32 %v9575_v13, %v6177_v27  ;;  %v6453_v11 = vpop.eup %5002  ;;  %5022 = vpow2.f32 %v1229_v54  ;;  %v6483_v13 = vpop.permute.xlu1 %299  ;;  %v9624_v30 = vsub.f32 %v9576_v29, %v6177_v27 }
 0x2fe   : > { %v6461_v52 = vpop.eup %5004  ;;  %v1362_v48 = vadd.f32 %v6369_v38, %v1361_v17  ;;  %5024 = vpow2.f32 %v1233_v33  ;;  %9622 = vst [vmem:[#allocation43_spill] sm:$0xff] %v6483_v13 }
 0x2ff   : > { %v1261_v25 = vmul.f32 1.442695, %v9621_v23  ;;  %v6468_v9 = vpop.eup %5006  ;;  %5026 = vpow2.f32 %v1237_v59 }
 0x300   : > { %v6476_v17 = vpop.eup %5008  ;;  %v1363_v33 = vadd.f32 %v6375_v15, %v1362_v48  ;;  %5028 = vpow2.f32 %v1241_v32  ;;  %v9626_v48 = vsub.f32 %v9577_v60, %v6177_v27  ;;  %v9629_v60 = vsub.f32 %v9579_v8, %v6177_v27 }
 0x301   : > { %v6485_v23 = vpop.eup %5010  ;;  %5030 = vpow2.f32 %v1245_v62  ;;  %v1265_v62 = vmul.f32 1.442695, %v9624_v30  ;;  %v9631_v8 = vsub.f32 %v9582_v43, %v6177_v27  ;;  %v9634_v43 = vsub.f32 %v9586_v63, %v6177_v27 }
 0x302   : > { %v6495_v54 = vpop.eup %5012  ;;  %v1364_v59 = vadd.f32 %v6380_v42, %v1363_v33  ;;  %5032 = vpow2.f32 %v1249_v49  ;;  %v1269_v32 = vmul.f32 1.442695, %v9626_v48  ;;  %v9627_v49 = vld [vmem:[#allocation56_spill] sm:$0xff]  ;;  %v1277_v48 = vmul.f32 1.442695, %v9629_v60 }
 0x303   : > { %v6505_v46 = vpop.eup %5014  ;;  %5034 = vpow2.f32 %v1253_v47  ;;  %v462_v33 = vadd.f32 %v9627_v49, %v6483_v13  ;;  %v9637_v63 = vpack.c.bf16 %v6277_v26, %v6269_v20 }
 0x304   : > { %v6487_v51 = vpop.permute.xlu0 %309  ;;  %v6514_v42 = vpop.eup %5016  ;;  %v1365_v29 = vadd.f32 %v6388_v3, %v1364_v59  ;;  %5036 = vpow2.f32 %v1257_v57  ;;  %v9630_v57 = vsub.f32 %v9581_v34, %v6177_v27 }
 0x305   : > { %9623 = vst [vmem:[#allocation44_spill] sm:$0xff] %v6487_v51  ;;  %v6503_v21 = vadd.f32 %v6167_v58, %v6487_v51  ;;  %v9628_v58 = vsub.f32 %v9578_v16, %v6177_v27  ;;  %v6520_v47 = vpop.eup %5018  ;;  %5038 = vpow2.f32 %v1261_v25  ;;  %v1509_v19 = vpack.c.bf16 %v462_v33, %v462_v33 }
 0x306   : > { %v1366_v51 = vadd.f32 %v6395_v24, %v1365_v29  ;;  %5040 = vpow2.f32 %v1265_v62  ;;  %v1281_v16 = vmul.f32 1.442695, %v9630_v57  ;;  %v1285_v33 = vmul.f32 1.442695, %v9631_v8 }
 0x307   : > { %9625 = vst [vmem:[#allocation45_spill] sm:$0xff] %v6503_v21  ;;  %v1273_v30 = vmul.f32 1.442695, %v9628_v58  ;;  %v5021_v21 = vpop.eup %5020  ;;  %5042 = vpow2.f32 %v1269_v32  ;;  %v9632_v58 = vsub.f32 %v9583_v10, %v6177_v27  ;;  %2518 = vmatprep.mubr.bf16.mxu1 %v1509_v19  ;;  %v9633_v32 = vsub.f32 %v9585_v31, %v6177_v27 }
 0x308   : > { %v5023_v25 = vpop.eup %5022  ;;  %v1367_v62 = vadd.f32 %v6401_v37, %v1366_v51  ;;  %v1297_v8 = vmul.f32 1.442695, %v9634_v43  ;;  %v9636_v31 = vsub.f32 %v9588_v39, %v6177_v27 }
 0x309   : > { %v1289_v60 = vmul.f32 1.442695, %v9632_v58  ;;  %v5025_v29 = vpop.eup %5024  ;;  %5044 = vpow2.f32 %v1273_v30  ;;  %v1388_v34 = vadd.f32 %v5023_v25, %v5021_v21  ;;  %v1426_v57 = vpack.c.bf16 %v5023_v25, %v5021_v21 }
 0x30a   : > { %v5027_v49 = vpop.eup %5026  ;;  %5046 = vpow2.f32 %v1277_v48  ;;  %v1293_v59 = vmul.f32 1.442695, %v9633_v32  ;;  %v1368_v10 = vadd.f32 %v6406_v41, %v1367_v62  ;;  %v9635_v21 = vsub.f32 %v9587_v5, %v6177_v27 }
 0x30b   : > { %v5029_v13 = vpop.eup %5028  ;;  %5048 = vpow2.f32 %v1281_v16  ;;  %v1389_v19 = vadd.f32 %v5025_v29, %v1388_v34  ;;  %1457 = vmatprep.subr.bf16.mxu0 %v1426_v57  ;;  %v1428_v51 = vpack.c.bf16 %v5027_v49, %v5025_v29  ;;  %v1305_v25 = vmul.f32 1.442695, %v9636_v31 }
 0x30c   : > { %v5031_v30 = vpop.eup %5030  ;;  %5050 = vpow2.f32 %v1285_v33  ;;  %v1301_v48 = vmul.f32 1.442695, %v9635_v21  ;;  %1458 = vmatpush1.bf16.msra.mxu0 %v9637_v63  ;;  %v1369_v16 = vadd.f32 %v6412_v56, %v1368_v10  ;;  %v9638_v5 = vsub.f32 %v9589_v28, %v6177_v27 }
 0x30d   : > { %v5033_v58 = vpop.eup %5032  ;;  %5052 = vpow2.f32 %v1289_v60  ;;  %v1390_v62 = vadd.f32 %v5027_v49, %v1389_v19  ;;  %1459 = vmatprep.subr.bf16.mxu0 %v1428_v51  ;;  %v1430_v29 = vpack.c.bf16 %v5031_v30, %v5029_v13  ;;  %v9639_v60 = vpack.c.bf16 %v6295_v0, %v6285_v7 }
 0x30e   : > { %v5035_v33 = vpop.eup %5034  ;;  %5054 = vpow2.f32 %v1293_v59  ;;  %v1309_v34 = vmul.f32 1.442695, %v9638_v5  ;;  %v1370_v39 = vadd.f32 %v6420_v22, %v1369_v16  ;;  %v9641_v7 = vsub.f32 %v9595_v50, %v6177_v27 }
 0x30f   : > { %v5037_v57 = vpop.eup %5036  ;;  %5056 = vpow2.f32 %v1297_v8  ;;  %v1391_v32 = vadd.f32 %v5029_v13, %v1390_v62  ;;  %v1432_v20 = vpack.c.bf16 %v5035_v33, %v5033_v58  ;;  %v9640_v13 = vsub.f32 %v9594_v4, %v6177_v27 }
 0x310   : > { %v5039_v26 = vpop.eup %5038  ;;  %5058 = vpow2.f32 %v1301_v48  ;;  %1460 = vmatpush1.bf16.msra.mxu0 %v9639_v60  ;;  %v1371_v43 = vadd.f32 %v6431_v40, %v1370_v39  ;;  %v1333_v31 = vmul.f32 1.442695, %v9641_v7  ;;  %v9643_v16 = vsub.f32 %v6127_v44, %v6177_v27 }
 0x311   : > { %v5041_v49 = vpop.eup %5040  ;;  %5060 = vpow2.f32 %v1305_v25  ;;  %v1392_v59 = vadd.f32 %v5031_v30, %v1391_v32  ;;  %1461 = vmatprep.subr.bf16.mxu0 %v1430_v29  ;;  %v1434_v28 = vpack.c.bf16 %v5039_v26, %v5037_v57  ;;  %v1329_v51 = vmul.f32 1.442695, %v9640_v13 }
 0x312   : > { %v5043_v10 = vpop.eup %5042  ;;  %5062 = vpow2.f32 %v1309_v34  ;;  %v1372_v8 = vadd.f32 %v6444_v14, %v1371_v43  ;;  %v9642_v30 = vpack.c.bf16 %v6312_v6, %v6305_v53  ;;  %v1337_v4 = vmul.f32 1.442695, %v9643_v16 }
 0x313   : > { %v5045_v19 = vpop.eup %5044  ;;  %v1393_v21 = vadd.f32 %v5033_v58, %v1392_v59  ;;  %v1436_v48 = vpack.c.bf16 %v5043_v10, %v5041_v49  ;;  %v9644_v50 = vsub.f32 %v6137_v45, %v6177_v27  ;;  %v9645_v6 = vsub.f32 %v6148_v12, %v6177_v27 }
 0x314   : > { %v5047_v0 = vpop.eup %5046  ;;  %1462 = vmatpush1.bf16.msra.mxu0 %v9642_v30  ;;  %v1373_v63 = vadd.f32 %v6453_v11, %v1372_v8  ;;  %5064 = vpow2.f32 %v1329_v51  ;;  %v9647_v45 = vpack.c.bf16 %v6329_v36, %v6320_v2  ;;  %v9648_v2 = vpack.c.bf16 %v6348_v18, %v6339_v35 }
 0x315   : > { %v6575_v25 = vpop.eup %5048  ;;  %v1394_v62 = vadd.f32 %v5035_v33, %v1393_v21  ;;  %1463 = vmatprep.subr.bf16.mxu0 %v1432_v20  ;;  %v1438_v58 = vpack.c.bf16 %v5047_v0, %v5045_v19  ;;  %v1341_v5 = vmul.f32 1.442695, %v9644_v50  ;;  %v1345_v53 = vmul.f32 1.442695, %v9645_v6 }
 0x316   : > { %v5051_v29 = vpop.eup %5050  ;;  %v1374_v39 = vadd.f32 %v6461_v52, %v1373_v63  ;;  %5066 = vpow2.f32 %v1333_v31  ;;  %v9646_v20 = vsub.f32 %v9597_v55, %v6177_v27  ;;  %v9650_v63 = vld [vmem:[#allocation49_spill] sm:$0xff]  ;;  %v9652_v35 = vpack.c.bf16 %v6364_v1, %v6358_v61 }
 0x317   : > { %v6587_v34 = vpop.eup %5052  ;;  %v1395_v32 = vadd.f32 %v5037_v57, %v1394_v62  ;;  %v1440_v44 = vpack.c.bf16 %v5051_v29, %v6575_v25  ;;  %5068 = vpow2.f32 %v1337_v4  ;;  %v1206_v16 = vsub.f32 %v9650_v63, %v6177_v27  ;;  %v9651_v62 = vld [vmem:[#allocation50_spill] sm:$0xff] }
 0x318   : > { %v5055_v33 = vpop.eup %5054  ;;  %v1349_v60 = vmul.f32 1.442695, %v9646_v20  ;;  %1464 = vmatpush1.bf16.msra.mxu0 %v9647_v45  ;;  %v1375_v43 = vadd.f32 %v6468_v9, %v1374_v39  ;;  %5070 = vpow2.f32 %v1341_v5  ;;  %v1208_v50 = vsub.f32 %v9651_v62, %v6177_v27  ;;  %v9664_v62 = vld [vmem:[#allocation6_spill] sm:$0xff] }
 0x319   : > { %v5057_v12 = vpop.eup %5056  ;;  %v1396_v59 = vadd.f32 %v5039_v26, %v1395_v32  ;;  %1465 = vmatprep.subr.bf16.mxu0 %v1434_v28  ;;  %v1442_v57 = vpack.c.bf16 %v5055_v33, %v6587_v34  ;;  %5072 = vpow2.f32 %v1345_v53  ;;  %v9649_v26 = vld [vmem:[#allocation48_spill] sm:$0xff]  ;;  %v9653_v53 = vld [vmem:[#allocation51_spill] sm:$0xff]  ;;  %v1317_v32 = vmul.f32 1.442695, %v1206_v16 }
 0x31a   : > { %v5059_v8 = vpop.eup %5058  ;;  %v1376_v51 = vadd.f32 %v6476_v17, %v1375_v43  ;;  %5074 = vpow2.f32 %v1349_v60  ;;  %v1204_v28 = vsub.f32 %v9649_v26, %v6177_v27  ;;  %v1210_v39 = vsub.f32 %v9653_v53, %v6177_v27 }
 0x31b   : > { %v5061_v13 = vpop.eup %5060  ;;  %v1397_v55 = vadd.f32 %v5041_v49, %v1396_v59  ;;  %v1444_v21 = vpack.c.bf16 %v5059_v8, %v5057_v12  ;;  %v1321_v1 = vmul.f32 1.442695, %v1208_v50  ;;  %v9654_v61 = vpack.c.bf16 %v6375_v15, %v6369_v38 }
 0x31c   : > { %v5063_v7 = vpop.eup %5062  ;;  %1466 = vmatpush1.bf16.msra.mxu0 %v9648_v2  ;;  %v1377_v36 = vadd.f32 %v6485_v23, %v1376_v51  ;;  %v1313_v6 = vmul.f32 1.442695, %v1204_v28 }
 0x31d   : > { %v1398_v31 = vadd.f32 %v5043_v10, %v1397_v55  ;;  %1467 = vmatprep.subr.bf16.mxu0 %v1436_v48  ;;  %v1446_v30 = vpack.c.bf16 %v5063_v7, %v5061_v13  ;;  %v1325_v55 = vmul.f32 1.442695, %v1210_v39  ;;  %v9672_v39 = vld [vmem:[#allocation16_spill] sm:$0xff] }
 0x31e   : > { %v1378_v49 = vadd.f32 %v6495_v54, %v1377_v36  ;;  %v5065_v18 = vpop.eup %5064  ;;  %5076 = vpow2.f32 %v1313_v6  ;;  %v9655_v36 = vld [vmem:[#allocation38_spill] sm:$0xff] }
 0x31f   : > { %v1399_v4 = vadd.f32 %v5045_v19, %v1398_v31  ;;  %5078 = vpow2.f32 %v1317_v32  ;;  %v9656_v26 = vpack.c.bf16 %v6388_v3, %v9655_v36  ;;  %v9675_v32 = vld [vmem:[#allocation19_spill] sm:$0xff] }
 0x320   : > { %1468 = vmatpush1.bf16.msra.mxu0 %v9652_v35  ;;  %v1379_v5 = vadd.f32 %v6505_v46, %v1378_v49  ;;  %v5067_v48 = vpop.eup %5066  ;;  %5080 = vpow2.f32 %v1321_v1 }
 0x321   : > { %v1400_v10 = vadd.f32 %v5047_v0, %v1399_v4  ;;  %1469 = vmatprep.subr.bf16.mxu0 %v1438_v58  ;;  %v5069_v20 = vpop.eup %5068  ;;  %v1452_v45 = vpack.c.bf16 %v5067_v48, %v5065_v18  ;;  %5082 = vpow2.f32 %v1325_v55  ;;  %v9663_v4 = vld [vmem:[#allocation14_spill] sm:$0xff]  ;;  %v9687_v55 = vld [vmem:[#allocation67_spill] sm:$0xff] }
 0x322   : > { %v1380_v19 = vadd.f32 %v6514_v42, %v1379_v5  ;;  %v5071_v43 = vpop.eup %5070 }
 0x323   : > { %v1401_v60 = vadd.f32 %v6575_v25, %v1400_v10  ;;  %v5073_v59 = vpop.eup %5072  ;;  %v1454_v27 = vpack.c.bf16 %v5071_v43, %v5069_v20  ;;  %v9669_v10 = vpack.c.bf16 %v6520_v47, %v6514_v42  ;;  %v9673_v42 = vld [vmem:[#allocation17_spill] sm:$0xff] }
 0x324   : > { %1470 = vmatpush1.bf16.msra.mxu0 %v9654_v61  ;;  %v6623_v0 = vadd.f32 %v6520_v47, %v1380_v19  ;;  %v5075_v51 = vpop.eup %5074  ;;  %v9674_v47 = vld [vmem:[#allocation18_spill] sm:$0xff]  ;;  %v9677_v19 = vld [vmem:[#allocation21_spill] sm:$0xff]  ;;  %v9682_v61 = vld [vmem:[#allocation63_spill] sm:$0xff] }
 0x325   : > { %v1402_v58 = vadd.f32 %v5051_v29, %v1401_v60  ;;  %1471 = vmatprep.subr.bf16.mxu0 %v1440_v44  ;;  %v1456_v2 = vpack.c.bf16 %v5075_v51, %v5073_v59  ;;  %v9657_v29 = vpack.c.bf16 %v6401_v37, %v6395_v24  ;;  %v9678_v60 = vld [vmem:[#allocation22_spill] sm:$0xff] }
 0x327   : > { %v1403_v25 = vadd.f32 %v6587_v34, %v1402_v58  ;;  %v9658_v34 = vpack.c.bf16 %v6412_v56, %v6406_v41  ;;  %v9684_v58 = vld [vmem:[#allocation65_spill] sm:$0xff] }
 0x328   : > { %1472 = vmatpush1.bf16.msra.mxu0 %v9656_v26  ;;  %v5077_v28 = vpop.eup %5076  ;;  %v9691_v26 = vld [vmem:[#allocation36_spill] sm:$0xff] }
 0x329   : > { %v1404_v38 = vadd.f32 %v5055_v33, %v1403_v25  ;;  %1473 = vmatprep.subr.bf16.mxu0 %v1442_v57  ;;  %v5079_v63 = vpop.eup %5078 }
 0x32a   : > { %v5081_v16 = vpop.eup %5080  ;;  %v1448_v57 = vpack.c.bf16 %v5079_v63, %v5077_v28 }
 0x32b   : > { %v1405_v15 = vadd.f32 %v5057_v12, %v1404_v38  ;;  %v5083_v49 = vpop.eup %5082  ;;  %v9659_v12 = vpack.c.bf16 %v6431_v40, %v6420_v22  ;;  %v9662_v22 = vpack.c.bf16 %v6485_v23, %v6476_v17 }
 0x32c   : > { %1474 = vmatpush1.bf16.msra.mxu0 %v9657_v29  ;;  %v9694_v29 = vld [vmem:[#allocation39_spill] sm:$0xff] }
 0x32d   : > { %v1406_v44 = vadd.f32 %v5059_v8, %v1405_v15  ;;  %1475 = vmatprep.subr.bf16.mxu0 %v1444_v21  ;;  %v1450_v8 = vpack.c.bf16 %v5083_v49, %v5081_v16  ;;  %v9661_v21 = vpack.c.bf16 %v6468_v9, %v6461_v52  ;;  %v9666_v52 = vpack.c.bf16 %v6505_v46, %v6495_v54  ;;  %v9667_v9 = vld [vmem:[#allocation13_spill] sm:$0xff]  ;;  %v9671_v54 = vld [vmem:[#allocation15_spill] sm:$0xff] }
 0x32e   : > { %v9670_v46 = vmov 0  }
 0x32f   : > { %v1407_v31 = vadd.f32 %v5061_v13, %v1406_v44  ;;  %v9660_v13 = vpack.c.bf16 %v6453_v11, %v6444_v14  ;;  %v420_v14 = vadd.f32 %v9664_v62, %v9663_v4  ;;  %v9665_v11 = vld [vmem:[#allocation7_spill] sm:$0xff]  ;;  %v9695_v44 = vld [vmem:[#allocation58_spill] sm:$0xff] }
 0x330   : > { %1476 = vmatpush1.bf16.msra.mxu0 %v9658_v34  ;;  %v422_v50 = vadd.f32 %v9665_v11, %v9663_v4  ;;  %v1382_v34 = vrot.slane %v6623_v0, 4 }
 0x331   : > { %v1408_v3 = vadd.f32 %v5063_v7, %v1407_v31  ;;  %1477 = vmatprep.subr.bf16.mxu0 %v1446_v30  ;;  %v1504_v23 = vpack.c.bf16 %v420_v14, %v420_v14 }
 0x332   : > { %v1505_v17 = vpack.c.bf16 %v422_v50, %v422_v50 }
 0x333   : > { %v1409_v33 = vadd.f32 %v5077_v28, %v1408_v3  ;;  %v1591_v53 = vsel %vm561_vm1, %v1504_v23, 0  ;;  %v6758_v23 = vld [vmem:[%s9323_s3 + $0x28] sm:$0xff] }
 0x334   : > { %1478 = vmatpush1.bf16.msra.mxu0 %v9659_v12 }
 0x335   : > { %v1410_v24 = vadd.f32 %v5079_v63, %v1409_v33  ;;  %1479 = vmatprep.subr.bf16.mxu0 %v1448_v57  ;;  %v9696_v63 = vld [vmem:[#allocation41_spill] sm:$0xff]  ;;  %v1383_v33 = vadd.f32 %v1382_v34, %v6623_v0  ;;  %v4608_v57 = vld [vmem:[%s9322_s2 + $0x68] sm:$0xff] }
 0x337   : > { %v1411_v37 = vadd.f32 %v5081_v16, %v1410_v24  ;;  %v4607_v16 = vld [vmem:[%s9322_s2 + $0x60] sm:$0xff]  ;;  %v1384_v12 = vrot.slane %v1383_v33, 2 }
 0x338   : > { %1480 = vmatpush1.bf16.msra.mxu0 %v9660_v13  ;;  %4613 = vperm.xlu1 %4941, %v4607_v16  }
 0x339   : > { %v1412_v41 = vadd.f32 %v5083_v49, %v1411_v37  ;;  %1481 = vmatprep.subr.bf16.mxu0 %v1450_v8  ;;  %v4610_v37 = vld [vmem:[%s9322_s2 + $0x78] sm:$0xff]  ;;  %v1385_v8 = vadd.f32 %v1384_v12, %v1383_v33 }
 0x33b   : > { %v1413_v56 = vadd.f32 %v5065_v18, %v1412_v41  ;;  %v9668_v18 = vld [vmem:[#allocation12_spill] sm:$0xff]  ;;  %v1386_v41 = vrot.slane %v1385_v8, 1 }
 0x33c   : > { %1482 = vmatpush1.bf16.msra.mxu0 %v9661_v21  ;;  %v456_v5 = vadd.f32 %v9668_v18, %v9667_v9  ;;  %4618 = vperm.xlu1 %4941, %v4608_v57   ;;  %v6747_v18 = vld [vmem:[%s9323_s3 + $0x20] sm:$0xff] }
 0x33d   : > { %v1414_v7 = vadd.f32 %v5067_v48, %v1413_v56  ;;  %1483 = vmatprep.subr.bf16.mxu0 %v1452_v45  ;;  %v6686_v45 = vpop.trf.xlu1  ;;  %v1387_v21 = vadd.f32 %v1386_v41, %v1385_v8 }
 0x33e   : > { %v478_v48 = vpack.c.bf16 %v456_v5, %v456_v5  ;;  %9679 = vst [vmem:[#allocation46_spill] sm:$0xff] %v6686_v45  ;;  %v1858_v5 = vld [vmem:[%s9324_s4] sm:$0x3] }
 0x33f   : > { %v1415_v30 = vadd.f32 %v5069_v20, %v1414_v7  ;;  %v9676_v20 = vld [vmem:[#allocation20_spill] sm:$0xff]  ;;  %5084 = vrcp.f32 %v1387_v21 }
 0x340   : > { %1484 = vmatpush1.bf16.msra.mxu0 %v9662_v22  ;;  %4628 = vperm.xlu1 %4941, %v4610_v37  }
 0x341   : > { %v1416_v40 = vadd.f32 %v5071_v43, %v1415_v30  ;;  %1485 = vmatprep.subr.bf16.mxu0 %v1454_v27  ;;  %v9680_v43 = vld [vmem:[#allocation61_spill] sm:$0xff]  ;;  %v6691_v1 = vpop.trf.xlu1 }
 0x342   : > { %9681 = vst [vmem:[#allocation47_spill] sm:$0xff] %v6691_v1 }
 0x343   : > { %v1417_v35 = vadd.f32 %v5073_v59, %v1416_v40 }
 0x344   : > { %1486 = vmatpush1.bf16.msra.mxu0 %v9666_v52 }
 0x345   : > { %v1418_v6 = vadd.f32 %v5075_v51, %v1417_v35  ;;  %1487 = vmatprep.subr.bf16.mxu0 %v1456_v2  ;;  %v6696_v59 = vpop.trf.xlu1  ;;  %v9689_v2 = vld [vmem:[#allocation34_spill] sm:$0xff] }
 0x346   : > { %9683 = vst [vmem:[#allocation52_spill] sm:$0xff] %v6696_v59 }
 0x347   : > { %v1419_v3 = vrot.slane %v1418_v6, 4 }
 0x348   : > { %1488 = vmatpush1.bf16.msra.mxu0 %v9669_v10 }
 0x349   : > { %4824 = vmatprep.subr.msk.bf16.mxu0 %vm561_vm1, %v1505_v17  ;;  %v6700_v27 = vpop.trf.xlu1  ;;  %v1420_v49 = vadd.f32 %v1419_v3, %v1418_v6  ;;  %v5085_v0 = vpop.eup %5084  ;;  %v1859_v6 = vld [vmem:[%s9324_s4 + $0x2] sm:$0x3]  ;;  %v6763_v17 = vld [vmem:[%s9323_s3 + $0x30] sm:$0xff]  ;;  %v1860_v3 = vld [vmem:[%s9324_s4 + $0x4] sm:$0x3] }
 0x34a   : > { %9685 = vst [vmem:[#allocation53_spill] sm:$0xff] %v6700_v27 }
 0x34b   : > { %1490 = vmatmul.mubr.bf16.vlgmr.msra.gmra.mrb[24].mxu0 %v478_v48  ;;  %v1421_v24 = vrot.slane %v1420_v49, 2  ;;  %v9699_v48 = vld [vmem:[#allocation29_spill] sm:$0xff] }
 0x34c   : > { %1597 = vmatpush1.bf16.msra.mxu0 %v1591_v53  ;;  %1628 = vmatprep.mubr.bf16.mxu0 %v9670_v46  ;;  %v1893_v53 = vrot.slane %v1858_v5, %v9699_v48  ;;  %v1909_v8 = vrot.slane %v1860_v3, %v9699_v48 }
 0x34d   : > { %v6703_v51 = vpop.trf.xlu1  ;;  %v1422_v13 = vadd.f32 %v1421_v24, %v1420_v49 }
 0x34e   : > { %9686 = vst [vmem:[#allocation55_spill] sm:$0xff] %v6703_v51 }
 0x34f   : > { %v1423_v56 = vrot.slane %v1422_v13, 1 }
 0x351   : > { %v6708_v25 = vpop.trf.xlu1  ;;  %v1424_v7 = vadd.f32 %v1423_v56, %v1422_v13 }
 0x352   : > { %9688 = vst [vmem:[#allocation56_spill] sm:$0xff] %v6708_v25 }
 0x353   : > { %4825 = vmatmul.mubr.msk.bf16.vlgmr.msra.gmra.mrb[28].mxu0 %vm512_vm2, %v9671_v54  ;;  %5086 = vrcp.f32 %v1424_v7  ;;  %v6770_v54 = vld [vmem:[%s9323_s3 + $0x38] sm:$0xff] }
 0x354   : > { %1638 = vmatprep.mubr.bf16.mxu0 %v9670_v46 }
 0x355   : > { %v6713_v36 = vpop.trf.xlu1 }
 0x356   : > { %9690 = vst [vmem:[#allocation48_spill] sm:$0xff] %v6713_v36 }
 0x359   : > { %v6717_v38 = vpop.trf.xlu1 }
 0x35a   : > { %9692 = vst [vmem:[#allocation49_spill] sm:$0xff] %v6717_v38 }
 0x35b   : > { %4826 = vmatmul.mubr.msk.bf16.gmra.mrb[32].mxu0 %vm512_vm2, %v9672_v39  ;;  %v1901_v39 = vrot.slane %v1859_v6, %v9699_v48 }
 0x35c   : > { %1648 = vmatprep.mubr.bf16.mxu0 %v9670_v46 }
 0x35d   : > { %v6720_v15 = vpop.permute.xlu1 %304  ;;  %v5087_v22 = vpop.eup %5086 }
 0x35e   : > { %9693 = vst [vmem:[#allocation50_spill] sm:$0xff] %v6720_v15  ;;  %v468_v28 = vadd.f32 %v9695_v44, %v6720_v15 }
 0x360   : > { %v2538_v31 = vpack.c.bf16 %v468_v28, %v468_v28 }
 0x363   : > { %4827 = vmatmul.mubr.msk.bf16.gmra.mrb[36].mxu0 %vm512_vm2, %v9673_v42 }
 0x364   : > { %1658 = vmatprep.mubr.bf16.mxu0 %v9670_v46 }
 0x36b   : > { %4828 = vmatmul.mubr.msk.bf16.gmra.mrb[40].mxu0 %vm512_vm2, %v9674_v47  ;;  %v9700_v47 = vld [vmem:[#allocation31_spill] sm:$0xff] }
 0x36c   : > { %1668 = vmatprep.mubr.bf16.mxu0 %v9670_v46  ;;  %v1913_v56 = vrot.slane %v1860_v3, %v9700_v47 }
 0x373   : > { %4829 = vmatmul.mubr.msk.bf16.gmra.mrb[44].mxu0 %vm512_vm2, %v9675_v32  ;;  %v1897_v32 = vrot.slane %v1858_v5, %v9700_v47 }
 0x374   : > { %1678 = vmatprep.mubr.bf16.mxu0 %v9670_v46 }
 0x37b   : > { %4830 = vmatmul.mubr.msk.bf16.gmra.mrb[48].mxu0 %vm512_vm2, %v9676_v20 }
 0x37c   : > { %1688 = vmatprep.mubr.bf16.mxu0 %v9670_v46 }
 0x383   : > { %4831 = vmatmul.mubr.msk.bf16.gmra.mrb[52].mxu0 %vm512_vm2, %v9677_v19  ;;  %v1905_v19 = vrot.slane %v1859_v6, %v9700_v47 }
 0x384   : > { %1698 = vmatprep.mubr.bf16.mxu0 %v9670_v46 }
 0x38b   : > { %4832 = vmatmul.mubr.msk.bf16.gmra.mrb[56].mxu0 %vm512_vm2, %v9678_v60 }
 0x38c   : > { %1708 = vmatprep.mubr.bf16.mxu0 %v9670_v46 }
 0x393   : > { %4833 = vmatmul.mubr.msk.bf16.gmra.mrb[60].mxu0 %vm512_vm2, %v9680_v43 }
 0x394   : > { %1718 = vmatprep.mubr.bf16.mxu0 %v9670_v46 }
 0x39b   : > { %4834 = vmatmul.mubr.msk.bf16.gmra.mrb[64].mxu0 %vm512_vm2, %v9682_v61 }
 0x39c   : > { %1728 = vmatprep.mubr.bf16.mxu0 %v9670_v46 }
 0x3a3   : > { %4835 = vmatmul.mubr.msk.bf16.gmra.mrb[68].mxu0 %vm512_vm2, %v9684_v58 }
 0x3a4   : > { %1738 = vmatprep.mubr.bf16.mxu0 %v9670_v46 }
 0x3ab   : > { %4836 = vmatmul.mubr.msk.bf16.gmra.mrb[72].mxu0 %vm512_vm2, %v9687_v55 }
 0x3ac   : > { %1748 = vmatprep.mubr.bf16.mxu0 %v9670_v46 }
 0x3b3   : > { %4837 = vmatmul.mubr.msk.bf16.gmra.mrb[76].mxu0 %vm512_vm2, %v9689_v2 }
 0x3b4   : > { %1758 = vmatprep.mubr.bf16.mxu0 %v9670_v46 }
 0x3bb   : > { %4838 = vmatmul.mubr.msk.bf16.gmra.mrb[80].mxu0 %vm512_vm2, %v9691_v26 }
 0x3bc   : > { %1768 = vmatprep.mubr.bf16.mxu0 %v9670_v46 }
 0x3c3   : > { %4839 = vmatmul.mubr.msk.bf16.gmra.mrb[84].mxu0 %vm512_vm2, %v9694_v29 }
 0x3c4   : > { %1778 = vmatprep.mubr.bf16.mxu0 %v9670_v46 }
 0x3cb   : > { %4840 = vmatmul.mubr.msk.bf16.gmra.mrb[88].mxu0 %vm512_vm2, %v9696_v63 }
 0x3cc   : > { %3547 = vmatprep.mubr.bf16.mxu0 %v2538_v31 }
 0x41e   : > { %v1491_v30 = vpop.f32.mrb[24].mxu0 }
 0x41f   : > { %v6740_v40 = vmul.f32 %v5085_v0, %v1491_v30  ;;  %v1493_v4 = vpop.f32.mrb[25].mxu0 }
 0x420   : > { %v6742_v62 = vmul.f32 %v5087_v22, %v1493_v4  ;;  %v1495_v14 = vpop.f32.mrb[26].mxu0 }
 0x421   : > { %9697 = vst [vmem:[#allocation51_spill] sm:$0xff] %v6740_v40  ;;  %v1496_v11 = vpop.f32.mrb[27].mxu0 }
 0x422   : > { %9698 = vst [vmem:[#allocation38_spill] sm:$0xff] %v6742_v62 }
 0x426   : > { %v1630_v50 = vpop.f32.mrb[28].mxu0 }
 0x427   : > { %v1632_v35 = vpop.f32.mrb[29].mxu0  ;;  %v1794_v10 = vadd.f32 %v6747_v18, %v1630_v50 }
 0x428   : > { %v1634_v52 = vpop.f32.mrb[30].mxu0  ;;  %v1795_v42 = vadd.f32 %v6758_v23, %v1632_v35  ;;  %v1861_v35 = vld [vmem:[%s9324_s4 + $0x6] sm:$0x3] }
 0x429   : > { %v1636_v9 = vpop.f32.mrb[31].mxu0  ;;  %v1796_v60 = vadd.f32 %v6763_v17, %v1634_v52  ;;  %v6780_v26 = vadd.f32 %v1893_v53, %v1794_v10 }
 0x42a   : > { %v1797_v58 = vadd.f32 %v6770_v54, %v1636_v9  ;;  %v6785_v31 = vadd.f32 %v1897_v32, %v1795_v42 }
 0x42b   : > { %v6793_v16 = vadd.f32 %v1893_v53, %v1796_v60  ;;  %v1917_v53 = vrot.slane %v1861_v35, %v9699_v48 }
 0x42c   : > { %v6799_v49 = vadd.f32 %v1897_v32, %v1797_v58  ;;  %v1921_v32 = vrot.slane %v1861_v35, %v9700_v47 }
 0x42e   : > { %v1640_v20 = vpop.f32.mrb[32].mxu0 }
 0x42f   : > { %v1798_v43 = vadd.f32 %v6747_v18, %v1640_v20  ;;  %v1642_v61 = vpop.f32.mrb[33].mxu0 }
 0x430   : > { %v1799_v55 = vadd.f32 %v6758_v23, %v1642_v61  ;;  %v1644_v2 = vpop.f32.mrb[34].mxu0 }
 0x431   : > { %v6782_v29 = vadd.f32 %v1901_v39, %v1798_v43  ;;  %v1800_v44 = vadd.f32 %v6763_v17, %v1644_v2  ;;  %v1646_v28 = vpop.f32.mrb[35].mxu0 }
 0x432   : > { %v6787_v63 = vadd.f32 %v1905_v19, %v1799_v55  ;;  %v1801_v34 = vadd.f32 %v6770_v54, %v1646_v28  ;;  %v1862_v28 = vld [vmem:[%s9324_s4 + $0x8] sm:$0x3] }
 0x433   : > { %v2114_v33 = vmax.f32 %v6780_v26, %v6782_v29  ;;  %v6797_v57 = vadd.f32 %v1901_v39, %v1800_v44 }
 0x434   : > { %v2151_v12 = vmax.f32 %v6785_v31, %v6787_v63  ;;  %v6803_v24 = vadd.f32 %v1905_v19, %v1801_v34 }
 0x435   : > { %v2115_v37 = vmax.f32 %v6793_v16, %v6797_v57 }
 0x436   : > { %v2152_v13 = vmax.f32 %v6799_v49, %v6803_v24  ;;  %v1650_v41 = vpop.f32.mrb[36].mxu0 }
 0x437   : > { %v1802_v21 = vadd.f32 %v6747_v18, %v1650_v41  ;;  %v1652_v7 = vpop.f32.mrb[37].mxu0 }
 0x438   : > { %v1803_v0 = vadd.f32 %v6758_v23, %v1652_v7  ;;  %v1654_v30 = vpop.f32.mrb[38].mxu0 }
 0x439   : > { %v6813_v22 = vadd.f32 %v1909_v8, %v1802_v21  ;;  %v1804_v4 = vadd.f32 %v6763_v17, %v1654_v30  ;;  %v1656_v14 = vpop.f32.mrb[39].mxu0 }
 0x43a   : > { %v6816_v11 = vadd.f32 %v1913_v56, %v1803_v0  ;;  %v1805_v50 = vadd.f32 %v6770_v54, %v1656_v14 }
 0x43b   : > { %v2116_v52 = vmax.f32 %v2114_v33, %v6813_v22  ;;  %v6823_v9 = vadd.f32 %v1909_v8, %v1804_v4  ;;  %v1925_v8 = vrot.slane %v1862_v28, %v9699_v48 }
 0x43c   : > { %v2153_v5 = vmax.f32 %v2151_v12, %v6816_v11  ;;  %v6826_v6 = vadd.f32 %v1913_v56, %v1805_v50  ;;  %v1929_v56 = vrot.slane %v1862_v28, %v9700_v47 }
 0x43d   : > { %v2117_v10 = vmax.f32 %v2115_v37, %v6823_v9 }
 0x43e   : > { %v2154_v39 = vmax.f32 %v2152_v13, %v6826_v6  ;;  %v1660_v42 = vpop.f32.mrb[40].mxu0 }
 0x43f   : > { %v1806_v20 = vadd.f32 %v6747_v18, %v1660_v42  ;;  %v1662_v19 = vpop.f32.mrb[41].mxu0 }
 0x440   : > { %v1807_v60 = vadd.f32 %v6758_v23, %v1662_v19  ;;  %v1664_v43 = vpop.f32.mrb[42].mxu0 }
 0x441   : > { %v6834_v61 = vadd.f32 %v1917_v53, %v1806_v20  ;;  %v1808_v58 = vadd.f32 %v6763_v17, %v1664_v43  ;;  %v1666_v55 = vpop.f32.mrb[43].mxu0 }
 0x442   : > { %v6837_v2 = vadd.f32 %v1921_v32, %v1807_v60  ;;  %v1809_v44 = vadd.f32 %v6770_v54, %v1666_v55 }
 0x443   : > { %v2118_v34 = vmax.f32 %v2116_v52, %v6834_v61  ;;  %v6844_v3 = vadd.f32 %v1917_v53, %v1808_v58 }
 0x444   : > { %v2155_v33 = vmax.f32 %v2153_v5, %v6837_v2  ;;  %v6847_v12 = vadd.f32 %v1921_v32, %v1809_v44  ;;  %v1863_v5 = vld [vmem:[%s9324_s4 + $0xa] sm:$0x3] }
 0x445   : > { %v2119_v37 = vmax.f32 %v2117_v10, %v6844_v3  ;;  %v1933_v20 = vrot.slane %v1863_v5, %v9699_v48  ;;  %v1937_v43 = vrot.slane %v1863_v5, %v9700_v47 }
 0x446   : > { %v2156_v13 = vmax.f32 %v2154_v39, %v6847_v12  ;;  %v1670_v41 = vpop.f32.mrb[44].mxu0 }
 0x447   : > { %v1810_v21 = vadd.f32 %v6747_v18, %v1670_v41  ;;  %v1672_v7 = vpop.f32.mrb[45].mxu0 }
 0x448   : > { %v1811_v0 = vadd.f32 %v6758_v23, %v1672_v7  ;;  %v1674_v30 = vpop.f32.mrb[46].mxu0 }
 0x449   : > { %v6855_v4 = vadd.f32 %v1925_v8, %v1810_v21  ;;  %v1812_v14 = vadd.f32 %v6763_v17, %v1674_v30  ;;  %v1676_v50 = vpop.f32.mrb[47].mxu0 }
 0x44a   : > { %v6858_v35 = vadd.f32 %v1929_v56, %v1811_v0  ;;  %v1813_v52 = vadd.f32 %v6770_v54, %v1676_v50 }
 0x44b   : > { %v2120_v10 = vmax.f32 %v2118_v34, %v6855_v4  ;;  %v6865_v53 = vadd.f32 %v1925_v8, %v1812_v14 }
 0x44c   : > { %9701 = vst [vmem:[#allocation14_spill] sm:$0xff] %v6858_v35  ;;  %v2157_v39 = vmax.f32 %v2155_v33, %v6858_v35  ;;  %v6868_v42 = vadd.f32 %v1929_v56, %v1813_v52 }
 0x44d   : > { %v2121_v32 = vmax.f32 %v2119_v37, %v6865_v53 }
 0x44e   : > { %9702 = vst [vmem:[#allocation6_spill] sm:$0xff] %v6868_v42  ;;  %v2158_v19 = vmax.f32 %v2156_v13, %v6868_v42  ;;  %v1680_v60 = vpop.f32.mrb[48].mxu0  ;;  %v1864_v13 = vld [vmem:[%s9324_s4 + $0xc] sm:$0x3] }
 0x44f   : > { %v1814_v58 = vadd.f32 %v6747_v18, %v1680_v60  ;;  %v1682_v55 = vpop.f32.mrb[49].mxu0  ;;  %v1941_v14 = vrot.slane %v1864_v13, %v9699_v48  ;;  %v1945_v5 = vrot.slane %v1864_v13, %v9700_v47 }
 0x450   : > { %v1815_v44 = vadd.f32 %v6758_v23, %v1682_v55  ;;  %v1684_v28 = vpop.f32.mrb[50].mxu0 }
 0x451   : > { %v6876_v34 = vadd.f32 %v1933_v20, %v1814_v58  ;;  %v1816_v33 = vadd.f32 %v6763_v17, %v1684_v28  ;;  %v1686_v8 = vpop.f32.mrb[51].mxu0 }
 0x452   : > { %v6879_v41 = vadd.f32 %v1937_v43, %v1815_v44  ;;  %v1817_v37 = vadd.f32 %v6770_v54, %v1686_v8 }
 0x453   : > { %v2122_v56 = vmax.f32 %v2120_v10, %v6876_v34  ;;  %v6886_v21 = vadd.f32 %v1933_v20, %v1816_v33 }
 0x454   : > { %9703 = vst [vmem:[#allocation7_spill] sm:$0xff] %v6879_v41  ;;  %v2159_v7 = vmax.f32 %v2157_v39, %v6879_v41  ;;  %v6889_v0 = vadd.f32 %v1937_v43, %v1817_v37 }
 0x455   : > { %v2123_v30 = vmax.f32 %v2121_v32, %v6886_v21 }
 0x456   : > { %9704 = vst [vmem:[#allocation13_spill] sm:$0xff] %v6889_v0  ;;  %v2160_v50 = vmax.f32 %v2158_v19, %v6889_v0  ;;  %v1690_v52 = vpop.f32.mrb[52].mxu0  ;;  %v1865_v19 = vld [vmem:[%s9324_s4 + $0xe] sm:$0x3] }
 0x457   : > { %v1818_v60 = vadd.f32 %v6747_v18, %v1690_v52  ;;  %v1692_v58 = vpop.f32.mrb[53].mxu0  ;;  %v1949_v52 = vrot.slane %v1865_v19, %v9699_v48 }
 0x458   : > { %v1819_v10 = vadd.f32 %v6758_v23, %v1692_v58  ;;  %v1694_v20 = vpop.f32.mrb[54].mxu0 }
 0x459   : > { %v6897_v55 = vadd.f32 %v1941_v14, %v1818_v60  ;;  %v1820_v39 = vadd.f32 %v6763_v17, %v1694_v20  ;;  %v1696_v43 = vpop.f32.mrb[55].mxu0 }
 0x45a   : > { %v6900_v44 = vadd.f32 %v1945_v5, %v1819_v10  ;;  %v1821_v32 = vadd.f32 %v6770_v54, %v1696_v43  ;;  %v1953_v10 = vrot.slane %v1865_v19, %v9700_v47 }
 0x45b   : > { %v2124_v28 = vmax.f32 %v2122_v56, %v6897_v55  ;;  %v6907_v33 = vadd.f32 %v1941_v14, %v1820_v39 }
 0x45c   : > { %9705 = vst [vmem:[#allocation12_spill] sm:$0xff] %v6900_v44  ;;  %v2161_v8 = vmax.f32 %v2159_v7, %v6900_v44  ;;  %v6910_v37 = vadd.f32 %v1945_v5, %v1821_v32 }
 0x45d   : > { %v2125_v13 = vmax.f32 %v2123_v30, %v6907_v33 }
 0x45e   : > { %9706 = vst [vmem:[#allocation15_spill] sm:$0xff] %v6910_v37  ;;  %v2162_v60 = vmax.f32 %v2160_v50, %v6910_v37  ;;  %v1700_v58 = vpop.f32.mrb[56].mxu0  ;;  %v1866_v50 = vld [vmem:[%s9324_s4 + $0x10] sm:$0x3] }
 0x45f   : > { %v1822_v20 = vadd.f32 %v6747_v18, %v1700_v58  ;;  %v1702_v43 = vpop.f32.mrb[57].mxu0 }
 0x460   : > { %v1823_v56 = vadd.f32 %v6758_v23, %v1702_v43  ;;  %v1704_v14 = vpop.f32.mrb[58].mxu0 }
 0x461   : > { %v6918_v39 = vadd.f32 %v1949_v52, %v1822_v20  ;;  %v1824_v7 = vadd.f32 %v6763_v17, %v1704_v14  ;;  %v1706_v5 = vpop.f32.mrb[59].mxu0  ;;  %v1957_v14 = vrot.slane %v1866_v50, %v9699_v48 }
 0x462   : > { %v6921_v32 = vadd.f32 %v1953_v10, %v1823_v56  ;;  %v1825_v30 = vadd.f32 %v6770_v54, %v1706_v5  ;;  %v1961_v5 = vrot.slane %v1866_v50, %v9700_v47 }
 0x463   : > { %v2126_v19 = vmax.f32 %v2124_v28, %v6918_v39  ;;  %v6928_v58 = vadd.f32 %v1949_v52, %v1824_v7 }
 0x464   : > { %9707 = vst [vmem:[#allocation16_spill] sm:$0xff] %v6921_v32  ;;  %v2163_v43 = vmax.f32 %v2161_v8, %v6921_v32  ;;  %v6931_v15 = vadd.f32 %v1953_v10, %v1825_v30 }
 0x465   : > { %v2127_v20 = vmax.f32 %v2125_v13, %v6928_v58 }
 0x466   : > { %9708 = vst [vmem:[#allocation17_spill] sm:$0xff] %v6931_v15  ;;  %v2164_v56 = vmax.f32 %v2162_v60, %v6931_v15  ;;  %v1710_v62 = vpop.f32.mrb[60].mxu0  ;;  %v1867_v60 = vld [vmem:[%s9324_s4 + $0x12] sm:$0x3] }
 0x467   : > { %v1826_v40 = vadd.f32 %v6747_v18, %v1710_v62  ;;  %v1712_v38 = vpop.f32.mrb[61].mxu0 }
 0x468   : > { %v1827_v28 = vadd.f32 %v6758_v23, %v1712_v38  ;;  %v1714_v52 = vpop.f32.mrb[62].mxu0 }
 0x469   : > { %v6939_v7 = vadd.f32 %v1957_v14, %v1826_v40  ;;  %v1828_v8 = vadd.f32 %v6763_v17, %v1714_v52  ;;  %v1716_v10 = vpop.f32.mrb[63].mxu0  ;;  %v1965_v52 = vrot.slane %v1867_v60, %v9699_v48 }
 0x46a   : > { %v6942_v30 = vadd.f32 %v1961_v5, %v1827_v28  ;;  %v1829_v13 = vadd.f32 %v6770_v54, %v1716_v10  ;;  %v1969_v10 = vrot.slane %v1867_v60, %v9700_v47 }
 0x46b   : > { %v2128_v50 = vmax.f32 %v2126_v19, %v6939_v7  ;;  %v6949_v62 = vadd.f32 %v1957_v14, %v1828_v8 }
 0x46c   : > { %9709 = vst [vmem:[#allocation18_spill] sm:$0xff] %v6942_v30  ;;  %v2165_v38 = vmax.f32 %v2163_v43, %v6942_v30  ;;  %v6952_v36 = vadd.f32 %v1961_v5, %v1829_v13 }
 0x46d   : > { %v2129_v40 = vmax.f32 %v2127_v20, %v6949_v62 }
 0x46e   : > { %9710 = vst [vmem:[#allocation19_spill] sm:$0xff] %v6952_v36  ;;  %v2166_v28 = vmax.f32 %v2164_v56, %v6952_v36  ;;  %v1720_v25 = vpop.f32.mrb[64].mxu0  ;;  %v1868_v56 = vld [vmem:[%s9324_s4 + $0x14] sm:$0x3] }
 0x46f   : > { %v1830_v51 = vadd.f32 %v6747_v18, %v1720_v25  ;;  %v1722_v27 = vpop.f32.mrb[65].mxu0 }
 0x470   : > { %v1831_v19 = vadd.f32 %v6758_v23, %v1722_v27  ;;  %v1724_v14 = vpop.f32.mrb[66].mxu0 }
 0x471   : > { %v6960_v8 = vadd.f32 %v1965_v52, %v1830_v51  ;;  %v1832_v43 = vadd.f32 %v6763_v17, %v1724_v14  ;;  %v1726_v5 = vpop.f32.mrb[67].mxu0  ;;  %v1973_v14 = vrot.slane %v1868_v56, %v9699_v48 }
 0x472   : > { %v6963_v13 = vadd.f32 %v1969_v10, %v1831_v19  ;;  %v1833_v20 = vadd.f32 %v6770_v54, %v1726_v5  ;;  %v1977_v5 = vrot.slane %v1868_v56, %v9700_v47 }
 0x473   : > { %v2130_v60 = vmax.f32 %v2128_v50, %v6960_v8  ;;  %v6970_v25 = vadd.f32 %v1965_v52, %v1832_v43 }
 0x474   : > { %9711 = vst [vmem:[#allocation20_spill] sm:$0xff] %v6963_v13  ;;  %v2167_v27 = vmax.f32 %v2165_v38, %v6963_v13  ;;  %v6973_v59 = vadd.f32 %v1969_v10, %v1833_v20 }
 0x475   : > { %v2131_v51 = vmax.f32 %v2129_v40, %v6970_v25 }
 0x476   : > { %9712 = vst [vmem:[#allocation21_spill] sm:$0xff] %v6973_v59  ;;  %v2168_v19 = vmax.f32 %v2166_v28, %v6973_v59  ;;  %v1730_v1 = vpop.f32.mrb[68].mxu0  ;;  %v1869_v28 = vld [vmem:[%s9324_s4 + $0x16] sm:$0x3] }
 0x477   : > { %v1834_v45 = vadd.f32 %v6747_v18, %v1730_v1  ;;  %v1732_v46 = vpop.f32.mrb[69].mxu0 }
 0x478   : > { %v1835_v50 = vadd.f32 %v6758_v23, %v1732_v46  ;;  %v1734_v52 = vpop.f32.mrb[70].mxu0 }
 0x479   : > { %v6981_v43 = vadd.f32 %v1973_v14, %v1834_v45  ;;  %v1836_v38 = vadd.f32 %v6763_v17, %v1734_v52  ;;  %v1736_v10 = vpop.f32.mrb[71].mxu0  ;;  %v1981_v52 = vrot.slane %v1869_v28, %v9699_v48 }
 0x47a   : > { %v6984_v20 = vadd.f32 %v1977_v5, %v1835_v50  ;;  %v1837_v40 = vadd.f32 %v6770_v54, %v1736_v10 }
 0x47b   : > { %v2132_v56 = vmax.f32 %v2130_v60, %v6981_v43  ;;  %v6991_v1 = vadd.f32 %v1973_v14, %v1836_v38 }
 0x47c   : > { %9713 = vst [vmem:[#allocation22_spill] sm:$0xff] %v6984_v20  ;;  %v2169_v46 = vmax.f32 %v2167_v27, %v6984_v20  ;;  %v6994_v59 = vadd.f32 %v1977_v5, %v1837_v40  ;;  %v1870_v27 = vld [vmem:[%s9324_s4 + $0x18] sm:$0x3] }
 0x47d   : > { %v2133_v45 = vmax.f32 %v2131_v51, %v6991_v1  ;;  %v1989_v38 = vrot.slane %v1870_v27, %v9699_v48 }
 0x47e   : > { %9714 = vst [vmem:[#allocation61_spill] sm:$0xff] %v6994_v59  ;;  %v2170_v50 = vmax.f32 %v2168_v19, %v6994_v59  ;;  %v1740_v13 = vpop.f32.mrb[72].mxu0 }
 0x47f   : > { %v1838_v10 = vadd.f32 %v6747_v18, %v1740_v13  ;;  %v1742_v36 = vpop.f32.mrb[73].mxu0 }
 0x480   : > { %v1744_v30 = vpop.f32.mrb[74].mxu0  ;;  %v1839_v59 = vadd.f32 %v6758_v23, %v1742_v36 }
 0x481   : > { %v7000_v15 = vadd.f32 %v1981_v52, %v1838_v10  ;;  %v1840_v60 = vadd.f32 %v6763_v17, %v1744_v30  ;;  %v1746_v14 = vpop.f32.mrb[75].mxu0  ;;  %v1985_v30 = vrot.slane %v1869_v28, %v9700_v47 }
 0x483   : > { %v2134_v51 = vmax.f32 %v2132_v56, %v7000_v15  ;;  %v7007_v5 = vadd.f32 %v1981_v52, %v1840_v60  ;;  %v1841_v52 = vadd.f32 %v6770_v54, %v1746_v14  ;;  %v1993_v60 = vrot.slane %v1870_v27, %v9700_v47 }
 0x484   : > { %v7026_v28 = vadd.f32 %v1985_v30, %v1839_v59 }
 0x485   : > { %v2135_v19 = vmax.f32 %v2133_v45, %v7007_v5  ;;  %v7031_v0 = vadd.f32 %v1985_v30, %v1841_v52 }
 0x486   : > { %v1750_v13 = vpop.f32.mrb[76].mxu0  ;;  %9715 = vst [vmem:[#allocation63_spill] sm:$0xff] %v7026_v28 }
 0x487   : > { %v1842_v40 = vadd.f32 %v6747_v18, %v1750_v13  ;;  %v1752_v10 = vpop.f32.mrb[77].mxu0  ;;  %v1871_v13 = vld [vmem:[%s9324_s4 + $0x1a] sm:$0x3]  ;;  %9716 = vst [vmem:[#allocation65_spill] sm:$0xff] %v7031_v0 }
 0x488   : > { %v1754_v20 = vpop.f32.mrb[78].mxu0  ;;  %v1843_v45 = vadd.f32 %v6758_v23, %v1752_v10  ;;  %v1997_v14 = vrot.slane %v1871_v13, %v9699_v48  ;;  %v2001_v41 = vrot.slane %v1871_v13, %v9700_v47 }
 0x489   : > { %v7014_v32 = vadd.f32 %v1989_v38, %v1842_v40  ;;  %v1844_v37 = vadd.f32 %v6763_v17, %v1754_v20  ;;  %v1756_v56 = vpop.f32.mrb[79].mxu0 }
 0x48a   : > { %v1845_v40 = vadd.f32 %v6770_v54, %v1756_v56  ;;  %v7033_v10 = vadd.f32 %v1993_v60, %v1843_v45  ;;  %v2172_v45 = vmax.f32 %v2170_v50, %v7031_v0 }
 0x48b   : > { %v2136_v36 = vmax.f32 %v2134_v51, %v7014_v32  ;;  %v7024_v44 = vadd.f32 %v1989_v38, %v1844_v37  ;;  %v2171_v37 = vmax.f32 %v2169_v46, %v7026_v28  ;;  %v1872_v46 = vld [vmem:[%s9324_s4 + $0x1c] sm:$0x3] }
 0x48c   : > { %9717 = vst [vmem:[#allocation67_spill] sm:$0xff] %v7033_v10  ;;  %v7038_v59 = vadd.f32 %v1993_v60, %v1845_v40 }
 0x48d   : > { %v2137_v20 = vmax.f32 %v2135_v19, %v7024_v44  ;;  %v2173_v35 = vmax.f32 %v2171_v37, %v7033_v10  ;;  %v2005_v37 = vrot.slane %v1872_v46, %v9699_v48  ;;  %v2009_v10 = vrot.slane %v1872_v46, %v9700_v47 }
 0x48e   : > { %v1760_v27 = vpop.f32.mrb[80].mxu0  ;;  %9718 = vst [vmem:[#allocation34_spill] sm:$0xff] %v7038_v59 }
 0x48f   : > { %v1846_v42 = vadd.f32 %v6747_v18, %v1760_v27  ;;  %v1762_v51 = vpop.f32.mrb[81].mxu0 }
 0x490   : > { %v1847_v38 = vadd.f32 %v6758_v23, %v1762_v51  ;;  %v1764_v56 = vpop.f32.mrb[82].mxu0 }
 0x491   : > { %v7041_v19 = vadd.f32 %v1997_v14, %v1846_v42  ;;  %v1848_v30 = vadd.f32 %v6763_v17, %v1764_v56  ;;  %v1766_v52 = vpop.f32.mrb[83].mxu0  ;;  %v2174_v42 = vmax.f32 %v2172_v45, %v7038_v59 }
 0x492   : > { %v7046_v13 = vadd.f32 %v2001_v41, %v1847_v38  ;;  %v1849_v27 = vadd.f32 %v6770_v54, %v1766_v52 }
 0x493   : > { %v2138_v60 = vmax.f32 %v2136_v36, %v7041_v19  ;;  %v7053_v40 = vadd.f32 %v1997_v14, %v1848_v30 }
 0x494   : > { %9719 = vst [vmem:[#allocation36_spill] sm:$0xff] %v7046_v13  ;;  %v2175_v51 = vmax.f32 %v2173_v35, %v7046_v13  ;;  %v7057_v56 = vadd.f32 %v2001_v41, %v1849_v27 }
 0x495   : > { %v2139_v50 = vmax.f32 %v2137_v20, %v7053_v40 }
 0x496   : > { %9720 = vst [vmem:[#allocation39_spill] sm:$0xff] %v7057_v56  ;;  %v2176_v38 = vmax.f32 %v2174_v42, %v7057_v56  ;;  %v1770_v52 = vpop.f32.mrb[84].mxu0  ;;  %v1873_v42 = vld [vmem:[%s9324_s4 + $0x1e] sm:$0x3] }
 0x497   : > { %v1850_v0 = vadd.f32 %v6747_v18, %v1770_v52  ;;  %v1772_v36 = vpop.f32.mrb[85].mxu0 }
 0x498   : > { %v1851_v14 = vadd.f32 %v6758_v23, %v1772_v36  ;;  %v1774_v30 = vpop.f32.mrb[86].mxu0 }
 0x499   : > { %v7065_v45 = vadd.f32 %v2005_v37, %v1850_v0  ;;  %v1852_v35 = vadd.f32 %v6763_v17, %v1774_v30  ;;  %v1776_v41 = vpop.f32.mrb[87].mxu0  ;;  %v2013_v30 = vrot.slane %v1873_v42, %v9699_v48 }
 0x49a   : > { %v7068_v27 = vadd.f32 %v2009_v10, %v1851_v14  ;;  %v1853_v20 = vadd.f32 %v6770_v54, %v1776_v41  ;;  %v2017_v41 = vrot.slane %v1873_v42, %v9700_v47 }
 0x49b   : > { %v2140_v46 = vmax.f32 %v2138_v60, %v7065_v45  ;;  %v7075_v52 = vadd.f32 %v2005_v37, %v1852_v35 }
 0x49c   : > { %9721 = vst [vmem:[#allocation58_spill] sm:$0xff] %v7068_v27  ;;  %v2177_v36 = vmax.f32 %v2175_v51, %v7068_v27  ;;  %v7078_v59 = vadd.f32 %v2009_v10, %v1853_v20 }
 0x49d   : > { %v2141_v0 = vmax.f32 %v2139_v50, %v7075_v52 }
 0x49e   : > { %9722 = vst [vmem:[#allocation41_spill] sm:$0xff] %v7078_v59  ;;  %v2178_v14 = vmax.f32 %v2176_v38, %v7078_v59  ;;  %v1780_v28 = vpop.f32.mrb[88].mxu0 }
 0x49f   : > { %v1854_v56 = vadd.f32 %v6747_v18, %v1780_v28  ;;  %v1782_v13 = vpop.f32.mrb[89].mxu0 }
 0x4a0   : > { %v1855_v60 = vadd.f32 %v6758_v23, %v1782_v13  ;;  %v1784_v37 = vpop.f32.mrb[90].mxu0 }
 0x4a1   : > { %v7086_v35 = vadd.f32 %v2013_v30, %v1854_v56  ;;  %v1856_v10 = vadd.f32 %v6763_v17, %v1784_v37  ;;  %v1786_v51 = vpop.f32.mrb[91].mxu0 }
 0x4a2   : > { %v7089_v20 = vadd.f32 %v2017_v41, %v1855_v60  ;;  %v1857_v50 = vadd.f32 %v6770_v54, %v1786_v51 }
 0x4a3   : > { %v2142_v38 = vmax.f32 %v2140_v46, %v7086_v35  ;;  %v7093_v48 = vadd.f32 %v2013_v30, %v1856_v10 }
 0x4a4   : > { %v2179_v42 = vmax.f32 %v2177_v36, %v7089_v20  ;;  %v7096_v18 = vadd.f32 %v2017_v41, %v1857_v50 }
 0x4a5   : > { %v2143_v23 = vmax.f32 %v2141_v0, %v7093_v48 }
 0x4a6   : > { %v2180_v28 = vmax.f32 %v2178_v14, %v7096_v18 }
 0x4a7   : > { %v2144_v13 = vmax.f32 %v2142_v38, %v2143_v23 }
 0x4a8   : > { %v2181_v56 = vmax.f32 %v2179_v42, %v2180_v28 }
 0x4a9   : > { %v2145_v17 = vrot.slane %v2144_v13, 4 }
 0x4aa   : > { %v2182_v37 = vrot.slane %v2181_v56, 4 }
 0x4ab   : > { %v2146_v60 = vmax.f32 %v2144_v13, %v2145_v17 }
 0x4ac   : > { %v2183_v47 = vmax.f32 %v2181_v56, %v2182_v37 }
 0x4ad   : > { %v2147_v59 = vrot.slane %v2146_v60, 2 }
 0x4ae   : > { %v2184_v54 = vrot.slane %v2183_v47, 2 }
 0x4af   : > { %v2148_v51 = vmax.f32 %v2146_v60, %v2147_v59 }
 0x4b0   : > { %v2185_v46 = vmax.f32 %v2183_v47, %v2184_v54 }
 0x4b1   : > { %v2149_v30 = vrot.slane %v2148_v51, 1 }
 0x4b2   : > { %v2186_v10 = vrot.slane %v2185_v46, 1 }
 0x4b3   : > { %v7100_v27 = vmax.f32 %v2148_v51, %v2149_v30 }
 0x4b4   : > { %v7102_v36 = vmax.f32 %v2185_v46, %v2186_v10 }
 0x4b5   : > { %v2188_v0 = vsub.f32 %v6780_v26, %v7100_v27  ;;  %v2190_v14 = vsub.f32 %v6793_v16, %v7100_v27  ;;  %v2192_v41 = vsub.f32 %v6782_v29, %v7100_v27  ;;  %v2194_v50 = vsub.f32 %v6797_v57, %v7100_v27 }
 0x4b6   : > { %v2196_v47 = vsub.f32 %v6813_v22, %v7100_v27  ;;  %v2198_v59 = vsub.f32 %v6823_v9, %v7100_v27  ;;  %v2200_v38 = vsub.f32 %v6834_v61, %v7100_v27  ;;  %v2202_v26 = vsub.f32 %v6844_v3, %v7100_v27 }
 0x4b7   : > { %v2204_v16 = vsub.f32 %v6855_v4, %v7100_v27  ;;  %v2206_v29 = vsub.f32 %v6865_v53, %v7100_v27  ;;  %v2208_v57 = vsub.f32 %v6876_v34, %v7100_v27  ;;  %v2210_v22 = vsub.f32 %v6886_v21, %v7100_v27 }
 0x4b8   : > { %v2212_v9 = vsub.f32 %v6897_v55, %v7100_v27  ;;  %v2214_v61 = vsub.f32 %v6907_v33, %v7100_v27  ;;  %v2216_v3 = vsub.f32 %v6918_v39, %v7100_v27  ;;  %v2218_v4 = vsub.f32 %v6928_v58, %v7100_v27 }
 0x4b9   : > { %v2220_v53 = vsub.f32 %v6939_v7, %v7100_v27  ;;  %v2222_v34 = vsub.f32 %v6949_v62, %v7100_v27  ;;  %v2224_v21 = vsub.f32 %v6960_v8, %v7100_v27  ;;  %v2226_v55 = vsub.f32 %v6970_v25, %v7100_v27 }
 0x4ba   : > { %v2228_v33 = vsub.f32 %v6981_v43, %v7100_v27  ;;  %v2230_v39 = vsub.f32 %v6991_v1, %v7100_v27  ;;  %v2232_v58 = vsub.f32 %v7000_v15, %v7100_v27  ;;  %v2234_v7 = vsub.f32 %v7007_v5, %v7100_v27  ;;  %v9737_v43 = vld [vmem:[#allocation36_spill] sm:$0xff]  ;;  %v9740_v5 = vld [vmem:[#allocation41_spill] sm:$0xff] }
 0x4bb   : > { %v2236_v62 = vsub.f32 %v7014_v32, %v7100_v27  ;;  %v2238_v8 = vsub.f32 %v7024_v44, %v7100_v27  ;;  %v2240_v25 = vsub.f32 %v7041_v19, %v7100_v27  ;;  %v2252_v17 = vmul.f32 1.442695, %v2188_v0 }
 0x4bc   : > { %v2256_v37 = vmul.f32 1.442695, %v2190_v14  ;;  %v2260_v60 = vmul.f32 1.442695, %v2192_v41  ;;  %v2264_v51 = vmul.f32 1.442695, %v2194_v50  ;;  %v9742_v44 = vsub.f32 %v7065_v45, %v7100_v27 }
 0x4bd   : > { %5088 = vpow2.f32 %v2252_v17  ;;  %v2268_v30 = vmul.f32 1.442695, %v2196_v47  ;;  %v2272_v10 = vmul.f32 1.442695, %v2198_v59  ;;  %v2276_v28 = vmul.f32 1.442695, %v2200_v38 }
 0x4be   : > { %5090 = vpow2.f32 %v2256_v37  ;;  %v2280_v13 = vmul.f32 1.442695, %v2202_v26  ;;  %v2284_v56 = vmul.f32 1.442695, %v2204_v16  ;;  %v2288_v0 = vmul.f32 1.442695, %v2206_v29 }
 0x4bf   : > { %5092 = vpow2.f32 %v2260_v60  ;;  %v2292_v14 = vmul.f32 1.442695, %v2208_v57  ;;  %v2296_v41 = vmul.f32 1.442695, %v2210_v22  ;;  %v2300_v54 = vmul.f32 1.442695, %v2212_v9 }
 0x4c0   : > { %5094 = vpow2.f32 %v2264_v51  ;;  %v2304_v50 = vmul.f32 1.442695, %v2214_v61  ;;  %v2308_v23 = vmul.f32 1.442695, %v2216_v3  ;;  %v2312_v46 = vmul.f32 1.442695, %v2218_v4 }
 0x4c1   : > { %5096 = vpow2.f32 %v2268_v30  ;;  %v2316_v17 = vmul.f32 1.442695, %v2220_v53  ;;  %v2320_v47 = vmul.f32 1.442695, %v2222_v34  ;;  %v2324_v59 = vmul.f32 1.442695, %v2224_v21 }
 0x4c2   : > { %5098 = vpow2.f32 %v2272_v10  ;;  %v2328_v37 = vmul.f32 1.442695, %v2226_v55  ;;  %v9723_v61 = vld [vmem:[#allocation14_spill] sm:$0xff]  ;;  %v9725_v21 = vld [vmem:[#allocation7_spill] sm:$0xff]  ;;  %v9727_v51 = vld [vmem:[#allocation12_spill] sm:$0xff] }
 0x4c3   : > { %5100 = vpow2.f32 %v2276_v28  ;;  %v9724_v53 = vld [vmem:[#allocation6_spill] sm:$0xff]  ;;  %v9726_v28 = vld [vmem:[#allocation13_spill] sm:$0xff]  ;;  %v9728_v10 = vld [vmem:[#allocation15_spill] sm:$0xff] }
 0x4c4   : > { %5102 = vpow2.f32 %v2280_v13  ;;  %v9730_v13 = vld [vmem:[#allocation17_spill] sm:$0xff]  ;;  %v9732_v22 = vld [vmem:[#allocation19_spill] sm:$0xff]  ;;  %v9733_v29 = vld [vmem:[#allocation20_spill] sm:$0xff] }
 0x4c5   : > { %5104 = vpow2.f32 %v2284_v56  ;;  %v9734_v55 = vld [vmem:[#allocation21_spill] sm:$0xff]  ;;  %v9735_v26 = vld [vmem:[#allocation22_spill] sm:$0xff] }
 0x4c6   : > { %5106 = vpow2.f32 %v2288_v0  ;;  %v9736_v38 = vld [vmem:[#allocation61_spill] sm:$0xff] }
 0x4c7   : > { %v7180_v57 = vpop.eup %5088  ;;  %5108 = vpow2.f32 %v2292_v14 }
 0x4c8   : > { %v7188_v4 = vpop.eup %5090  ;;  %5110 = vpow2.f32 %v2296_v41  ;;  %v9729_v41 = vld [vmem:[#allocation16_spill] sm:$0xff] }
 0x4c9   : > { %v7196_v56 = vpop.eup %5092  ;;  %5112 = vpow2.f32 %v2300_v54  ;;  %v2380_v60 = vadd.f32 %v7188_v4, %v7180_v57  ;;  %v9731_v54 = vld [vmem:[#allocation18_spill] sm:$0xff] }
 0x4ca   : > { %v7204_v14 = vpop.eup %5094  ;;  %5114 = vpow2.f32 %v2304_v50 }
 0x4cb   : > { %v7212_v9 = vpop.eup %5096  ;;  %5116 = vpow2.f32 %v2308_v23  ;;  %v2381_v30 = vadd.f32 %v7196_v56, %v2380_v60  ;;  %v2332_v60 = vmul.f32 1.442695, %v2228_v33  ;;  %v2340_v23 = vmul.f32 1.442695, %v2232_v58 }
 0x4cc   : > { %v7219_v16 = vpop.eup %5098  ;;  %5118 = vpow2.f32 %v2312_v46  ;;  %v2336_v46 = vmul.f32 1.442695, %v2230_v39  ;;  %v9738_v39 = vld [vmem:[#allocation39_spill] sm:$0xff] }
 0x4cd   : > { %v7227_v42 = vpop.eup %5100  ;;  %5120 = vpow2.f32 %v2316_v17  ;;  %v2382_v50 = vadd.f32 %v7204_v14, %v2381_v30  ;;  %v2344_v17 = vmul.f32 1.442695, %v2234_v7 }
 0x4ce   : > { %v7236_v34 = vpop.eup %5102  ;;  %5122 = vpow2.f32 %v2320_v47  ;;  %v9739_v47 = vld [vmem:[#allocation58_spill] sm:$0xff] }
 0x4cf   : > { %v7246_v3 = vpop.eup %5104  ;;  %5124 = vpow2.f32 %v2324_v59  ;;  %v2383_v1 = vadd.f32 %v7212_v9, %v2382_v50  ;;  %v2348_v50 = vmul.f32 1.442695, %v2236_v62  ;;  %v9741_v62 = vsub.f32 %v7053_v40, %v7100_v27 }
 0x4d0   : > { %v7253_v15 = vpop.eup %5106  ;;  %5126 = vpow2.f32 %v2328_v37  ;;  %v2352_v37 = vmul.f32 1.442695, %v2238_v8  ;;  %v2364_v8 = vmul.f32 1.442695, %v9742_v44  ;;  %v9744_v40 = vsub.f32 %v7086_v35, %v7100_v27 }
 0x4d1   : > { %v7261_v33 = vpop.eup %5108  ;;  %5128 = vpow2.f32 %v2332_v60  ;;  %v2384_v0 = vadd.f32 %v7219_v16, %v2383_v1  ;;  %v2356_v60 = vmul.f32 1.442695, %v2240_v25  ;;  %v9743_v25 = vsub.f32 %v7075_v52, %v7100_v27 }
 0x4d2   : > { %v7267_v30 = vpop.eup %5110  ;;  %5130 = vpow2.f32 %v2336_v46  ;;  %v2360_v46 = vmul.f32 1.442695, %v9741_v62 }
 0x4d3   : > { %v7272_v7 = vpop.eup %5112  ;;  %5132 = vpow2.f32 %v2340_v23  ;;  %v2385_v59 = vadd.f32 %v7227_v42, %v2384_v0  ;;  %v2368_v0 = vmul.f32 1.442695, %v9743_v25 }
 0x4d4   : > { %v7278_v32 = vpop.eup %5114  ;;  %5134 = vpow2.f32 %v2344_v17 }
 0x4d5   : > { %v7283_v1 = vpop.eup %5116  ;;  %5136 = vpow2.f32 %v2348_v50  ;;  %v2386_v23 = vadd.f32 %v7236_v34, %v2385_v59  ;;  %v2372_v50 = vmul.f32 1.442695, %v9744_v40  ;;  %v9745_v59 = vsub.f32 %v7093_v48, %v7100_v27 }
 0x4d6   : > { %v7289_v19 = vpop.eup %5118  ;;  %5138 = vpow2.f32 %v2352_v37  ;;  %v9748_v48 = vsub.f32 %v6787_v63, %v7102_v36  ;;  %v9751_v63 = vsub.f32 %v6826_v6, %v7102_v36  ;;  %v9755_v6 = vsub.f32 %v9724_v53, %v7102_v36 }
 0x4d7   : > { %v7294_v17 = vpop.eup %5120  ;;  %5140 = vpow2.f32 %v2356_v60  ;;  %v2387_v62 = vadd.f32 %v7246_v3, %v2386_v23  ;;  %v2376_v37 = vmul.f32 1.442695, %v9745_v59  ;;  %v9746_v60 = vsub.f32 %v6785_v31, %v7102_v36 }
 0x4d8   : > { %v7300_v45 = vpop.eup %5122  ;;  %5142 = vpow2.f32 %v2360_v46  ;;  %v9747_v23 = vsub.f32 %v6799_v49, %v7102_v36  ;;  %v2262_v27 = vmul.f32 1.442695, %v9748_v48  ;;  %v9749_v31 = vsub.f32 %v6803_v24, %v7102_v36 }
 0x4d9   : > { %v7305_v44 = vpop.eup %5124  ;;  %5144 = vpow2.f32 %v2364_v8  ;;  %v2388_v52 = vadd.f32 %v7253_v15, %v2387_v62  ;;  %v2254_v25 = vmul.f32 1.442695, %v9746_v60  ;;  %v2274_v49 = vmul.f32 1.442695, %v9751_v63 }
 0x4da   : > { %v7311_v35 = vpop.eup %5126  ;;  %5146 = vpow2.f32 %v2368_v0  ;;  %v2258_v46 = vmul.f32 1.442695, %v9747_v23  ;;  %v2266_v62 = vmul.f32 1.442695, %v9749_v31  ;;  %v9750_v0 = vsub.f32 %v6816_v11, %v7102_v36 }
 0x4db   : > { %v7319_v40 = vpop.eup %5128  ;;  %5148 = vpow2.f32 %v2372_v50  ;;  %v2389_v8 = vadd.f32 %v7261_v33, %v2388_v52  ;;  %v9752_v50 = vsub.f32 %v6837_v2, %v7102_v36  ;;  %v9753_v52 = vsub.f32 %v6847_v12, %v7102_v36 }
 0x4dc   : > { %v2270_v59 = vmul.f32 1.442695, %v9750_v0  ;;  %v7328_v60 = vpop.eup %5130  ;;  %5150 = vpow2.f32 %v2376_v37  ;;  %v9754_v37 = vsub.f32 %v9723_v61, %v7102_v36  ;;  %v2290_v0 = vmul.f32 1.442695, %v9755_v6 }
 0x4dd   : > { %v2278_v23 = vmul.f32 1.442695, %v9752_v50  ;;  %v2282_v24 = vmul.f32 1.442695, %v9753_v52  ;;  %v7339_v48 = vpop.eup %5132  ;;  %v2390_v11 = vadd.f32 %v7267_v30, %v2389_v8  ;;  %5152 = vpow2.f32 %v2254_v25 }
 0x4de   : > { %v2286_v31 = vmul.f32 1.442695, %v9754_v37  ;;  %v7348_v63 = vpop.eup %5134  ;;  %5154 = vpow2.f32 %v2258_v46  ;;  %v9757_v6 = vsub.f32 %v9726_v28, %v7102_v36 }
 0x4df   : > { %v7356_v8 = vpop.eup %5136  ;;  %v2391_v61 = vadd.f32 %v7272_v7, %v2390_v11  ;;  %5156 = vpow2.f32 %v2262_v27 }
 0x4e0   : > { %v7363_v50 = vpop.eup %5138  ;;  %5158 = vpow2.f32 %v2266_v62  ;;  %v9756_v62 = vsub.f32 %v9725_v21, %v7102_v36  ;;  %v2298_v37 = vmul.f32 1.442695, %v9757_v6 }
 0x4e1   : > { %v7371_v11 = vpop.eup %5140  ;;  %v2392_v27 = vadd.f32 %v7278_v32, %v2391_v61  ;;  %5160 = vpow2.f32 %v2270_v59 }
 0x4e2   : > { %v7378_v53 = vpop.eup %5142  ;;  %5162 = vpow2.f32 %v2274_v49  ;;  %v2294_v46 = vmul.f32 1.442695, %v9756_v62 }
 0x4e3   : > { %v7386_v61 = vpop.eup %5144  ;;  %v2393_v59 = vadd.f32 %v7283_v1, %v2392_v27  ;;  %5164 = vpow2.f32 %v2278_v23  ;;  %v9758_v23 = vsub.f32 %v9727_v51, %v7102_v36  ;;  %v9763_v51 = vsub.f32 %v9732_v22, %v7102_v36 }
 0x4e4   : > { %v7394_v58 = vpop.eup %5146  ;;  %5166 = vpow2.f32 %v2282_v24  ;;  %v9759_v24 = vsub.f32 %v9728_v10, %v7102_v36  ;;  %v9762_v10 = vsub.f32 %v9731_v54, %v7102_v36  ;;  %v9766_v22 = vsub.f32 %v9735_v26, %v7102_v36 }
 0x4e5   : > { %v7399_v52 = vpop.eup %5148  ;;  %v2394_v25 = vadd.f32 %v7289_v19, %v2393_v59  ;;  %5168 = vpow2.f32 %v2286_v31  ;;  %v2302_v21 = vmul.f32 1.442695, %v9758_v23  ;;  %v9760_v31 = vsub.f32 %v9729_v41, %v7102_v36 }
 0x4e6   : > { %v7407_v62 = vpop.eup %5150  ;;  %5170 = vpow2.f32 %v2290_v0  ;;  %v2306_v28 = vmul.f32 1.442695, %v9759_v24  ;;  %v9761_v0 = vsub.f32 %v9730_v13, %v7102_v36  ;;  %v2318_v24 = vmul.f32 1.442695, %v9762_v10 }
 0x4e7   : > { %v5153_v6 = vpop.eup %5152  ;;  %v2395_v49 = vadd.f32 %v7294_v17, %v2394_v25  ;;  %5172 = vpow2.f32 %v2294_v46  ;;  %v2310_v59 = vmul.f32 1.442695, %v9760_v31  ;;  %v9764_v13 = vsub.f32 %v9733_v29, %v7102_v36 }
 0x4e8   : > { %v5155_v23 = vpop.eup %5154  ;;  %5174 = vpow2.f32 %v2298_v37  ;;  %v2314_v27 = vmul.f32 1.442695, %v9761_v0  ;;  %v2322_v37 = vmul.f32 1.442695, %v9763_v51  ;;  %v2334_v51 = vmul.f32 1.442695, %v9766_v22 }
 0x4e9   : > { %v5157_v12 = vpop.eup %5156  ;;  %v2396_v25 = vadd.f32 %v7300_v45, %v2395_v49  ;;  %5176 = vpow2.f32 %v2302_v21  ;;  %v2417_v46 = vadd.f32 %v5155_v23, %v5153_v6  ;;  %v2455_v41 = vpack.c.bf16 %v5155_v23, %v5153_v6 }
 0x4ea   : > { %v5159_v31 = vpop.eup %5158  ;;  %5178 = vpow2.f32 %v2306_v28  ;;  %v2326_v0 = vmul.f32 1.442695, %v9764_v13  ;;  %v9765_v28 = vsub.f32 %v9734_v55, %v7102_v36  ;;  %v9767_v29 = vpack.c.bf16 %v7188_v4, %v7180_v57 }
 0x4eb   : > { %v5161_v2 = vpop.eup %5160  ;;  %v2397_v54 = vadd.f32 %v7305_v44, %v2396_v25  ;;  %5180 = vpow2.f32 %v2310_v59  ;;  %v2418_v10 = vadd.f32 %v5157_v12, %v2417_v46  ;;  %2486 = vmatprep.subr.bf16.mxu1 %v2455_v41  ;;  %v2457_v49 = vpack.c.bf16 %v5159_v31, %v5157_v12 }
 0x4ec   : > { %v5163_v21 = vpop.eup %5162  ;;  %5182 = vpow2.f32 %v2314_v27  ;;  %v2330_v6 = vmul.f32 1.442695, %v9765_v28  ;;  %2487 = vmatpush1.bf16.msra.mxu1 %v9767_v29  ;;  %v9768_v55 = vsub.f32 %v9736_v38, %v7102_v36 }
 0x4ed   : > { %v5165_v23 = vpop.eup %5164  ;;  %v2398_v59 = vadd.f32 %v7311_v35, %v2397_v54  ;;  %5184 = vpow2.f32 %v2318_v24  ;;  %v2419_v25 = vadd.f32 %v5159_v31, %v2418_v10  ;;  %2488 = vmatprep.subr.bf16.mxu1 %v2457_v49  ;;  %v2459_v12 = vpack.c.bf16 %v5163_v21, %v5161_v2 }
 0x4ee   : > { %v5167_v27 = vpop.eup %5166  ;;  %5186 = vpow2.f32 %v2322_v37  ;;  %v2338_v46 = vmul.f32 1.442695, %v9768_v55  ;;  %v9769_v24 = vpack.c.bf16 %v7204_v14, %v7196_v56  ;;  %v9771_v14 = vsub.f32 %v9738_v39, %v7102_v36 }
 0x4ef   : > { %v5169_v41 = vpop.eup %5168  ;;  %v2399_v26 = vadd.f32 %v7319_v40, %v2398_v59  ;;  %5188 = vpow2.f32 %v2326_v0  ;;  %v2420_v13 = vadd.f32 %v5161_v2, %v2419_v25  ;;  %v2461_v57 = vpack.c.bf16 %v5167_v27, %v5165_v23 }
 0x4f0   : > { %v5171_v4 = vpop.eup %5170  ;;  %5190 = vpow2.f32 %v2330_v6  ;;  %2489 = vmatpush1.bf16.msra.mxu1 %v9769_v24  ;;  %v9770_v2 = vsub.f32 %v9737_v43, %v7102_v36  ;;  %v2362_v29 = vmul.f32 1.442695, %v9771_v14  ;;  %v9773_v25 = vsub.f32 %v9739_v47, %v7102_v36 }
 0x4f1   : > { %v5173_v31 = vpop.eup %5172  ;;  %v2400_v54 = vadd.f32 %v7328_v60, %v2399_v26  ;;  %5192 = vpow2.f32 %v2334_v51  ;;  %v2421_v37 = vadd.f32 %v5163_v21, %v2420_v13  ;;  %2490 = vmatprep.subr.bf16.mxu1 %v2459_v12  ;;  %v2463_v38 = vpack.c.bf16 %v5171_v4, %v5169_v41 }
 0x4f2   : > { %v5175_v10 = vpop.eup %5174  ;;  %5194 = vpow2.f32 %v2338_v46  ;;  %v2358_v28 = vmul.f32 1.442695, %v9770_v2  ;;  %v9772_v21 = vpack.c.bf16 %v7219_v16, %v7212_v9  ;;  %v2366_v43 = vmul.f32 1.442695, %v9773_v25  ;;  %v9780_v25 = vld [vmem:[#allocation65_spill] sm:$0xff] }
 0x4f3   : > { %v5177_v49 = vpop.eup %5176  ;;  %v2401_v0 = vadd.f32 %v7339_v48, %v2400_v54  ;;  %v2422_v6 = vadd.f32 %v5165_v23, %v2421_v37  ;;  %v2465_v22 = vpack.c.bf16 %v5175_v10, %v5173_v31  ;;  %v9774_v39 = vsub.f32 %v9740_v5, %v7102_v36 }
 0x4f4   : > { %v5179_v56 = vpop.eup %5178  ;;  %2491 = vmatpush1.bf16.msra.mxu1 %v9772_v21  ;;  %v9775_v16 = vsub.f32 %v7089_v20, %v7102_v36  ;;  %5196 = vpow2.f32 %v2358_v28  ;;  %v9777_v5 = vpack.c.bf16 %v7236_v34, %v7227_v42  ;;  %v9778_v42 = vpack.c.bf16 %v7253_v15, %v7246_v3 }
 0x4f5   : > { %v7460_v51 = vpop.eup %5180  ;;  %v2402_v59 = vadd.f32 %v7348_v63, %v2401_v0  ;;  %v2423_v12 = vadd.f32 %v5167_v27, %v2422_v6  ;;  %2492 = vmatprep.subr.bf16.mxu1 %v2461_v57  ;;  %v2467_v23 = vpack.c.bf16 %v5179_v56, %v5177_v49  ;;  %v2370_v46 = vmul.f32 1.442695, %v9774_v39  ;;  %v9781_v39 = vld [vmem:[#allocation67_spill] sm:$0xff] }
 0x4f6   : > { %v5183_v55 = vpop.eup %5182  ;;  %v2374_v9 = vmul.f32 1.442695, %v9775_v16  ;;  %5198 = vpow2.f32 %v2362_v29  ;;  %v9776_v57 = vsub.f32 %v7096_v18, %v7102_v36  ;;  %v9782_v3 = vpack.c.bf16 %v7267_v30, %v7261_v33 }
 0x4f7   : > { %v7472_v26 = vpop.eup %5184  ;;  %v2403_v13 = vadd.f32 %v7356_v8, %v2402_v59  ;;  %v2424_v24 = vadd.f32 %v5169_v41, %v2423_v12  ;;  %v2469_v47 = vpack.c.bf16 %v5183_v55, %v7460_v51  ;;  %5200 = vpow2.f32 %v2366_v43 }
 0x4f8   : > { %v5187_v27 = vpop.eup %5186  ;;  %v2378_v54 = vmul.f32 1.442695, %v9776_v57  ;;  %2493 = vmatpush1.bf16.msra.mxu1 %v9777_v5  ;;  %5202 = vpow2.f32 %v2370_v46  ;;  %v2235_v43 = vsub.f32 %v9780_v25, %v7102_v36  ;;  %v2237_v46 = vsub.f32 %v9781_v39, %v7102_v36 }
 0x4f9   : > { %v5189_v20 = vpop.eup %5188  ;;  %v2404_v37 = vadd.f32 %v7363_v50, %v2403_v13  ;;  %v2425_v0 = vadd.f32 %v5171_v4, %v2424_v24  ;;  %2494 = vmatprep.subr.bf16.mxu1 %v2463_v38  ;;  %v2471_v41 = vpack.c.bf16 %v5187_v27, %v7472_v26  ;;  %5204 = vpow2.f32 %v2374_v9  ;;  %v9779_v4 = vld [vmem:[#allocation63_spill] sm:$0xff]  ;;  %v9783_v13 = vld [vmem:[#allocation34_spill] sm:$0xff] }
 0x4fa   : > { %v5191_v2 = vpop.eup %5190  ;;  %5206 = vpow2.f32 %v2378_v54  ;;  %v2233_v38 = vsub.f32 %v9779_v4, %v7102_v36  ;;  %v2239_v24 = vsub.f32 %v9783_v13, %v7102_v36  ;;  %v2346_v57 = vmul.f32 1.442695, %v2235_v43  ;;  %v9801_v13 = vld [vmem:[#allocation25_spill] sm:$0xff] }
 0x4fb   : > { %v5193_v28 = vpop.eup %5192  ;;  %v2405_v6 = vadd.f32 %v7371_v11, %v2404_v37  ;;  %v2426_v18 = vadd.f32 %v5173_v31, %v2425_v0  ;;  %v2473_v14 = vpack.c.bf16 %v5191_v2, %v5189_v20  ;;  %v2350_v33 = vmul.f32 1.442695, %v2237_v46 }
 0x4fc   : > { %v5195_v29 = vpop.eup %5194  ;;  %2495 = vmatpush1.bf16.msra.mxu1 %v9778_v42  ;;  %v2342_v9 = vmul.f32 1.442695, %v2233_v38  ;;  %v9784_v30 = vpack.c.bf16 %v7278_v32, %v7272_v7  ;;  %v2354_v42 = vmul.f32 1.442695, %v2239_v24  ;;  %v9785_v4 = vpack.c.bf16 %v7289_v19, %v7283_v1  ;;  %v9804_v24 = vld [vmem:[#allocation28_spill] sm:$0xff] }
 0x4fd   : > { %v2406_v34 = vadd.f32 %v7378_v53, %v2405_v6  ;;  %v2427_v21 = vadd.f32 %v5175_v10, %v2426_v18  ;;  %2496 = vmatprep.subr.bf16.mxu1 %v2465_v22  ;;  %v2475_v59 = vpack.c.bf16 %v5195_v29, %v5193_v28 }
 0x4fe   : > { %v5197_v15 = vpop.eup %5196  ;;  %5208 = vpow2.f32 %v2342_v9  ;;  %v9798_v9 = vpack.c.bf16 %v7407_v62, %v7399_v52 }
 0x4ff   : > { %v2407_v31 = vadd.f32 %v7386_v61, %v2406_v34  ;;  %v2428_v12 = vadd.f32 %v5177_v49, %v2427_v21  ;;  %5210 = vpow2.f32 %v2346_v57  ;;  %v9805_v57 = vld [vmem:[#allocation30_spill] sm:$0xff] }
 0x500   : > { %2497 = vmatpush1.bf16.msra.mxu1 %v9782_v3  ;;  %v5199_v22 = vpop.eup %5198  ;;  %5212 = vpow2.f32 %v2350_v33  ;;  %v9797_v3 = vld [vmem:[#allocation54_spill] sm:$0xff]  ;;  %v9811_v33 = vld [vmem:[#allocation53_spill] sm:$0xff] }
 0x501   : > { %v2408_v16 = vadd.f32 %v7394_v58, %v2407_v31  ;;  %v2429_v10 = vadd.f32 %v5179_v56, %v2428_v12  ;;  %2498 = vmatprep.subr.bf16.mxu1 %v2467_v23  ;;  %v5201_v54 = vpop.eup %5200  ;;  %v2481_v37 = vpack.c.bf16 %v5199_v22, %v5197_v15  ;;  %5214 = vpow2.f32 %v2354_v42  ;;  %v9792_v31 = vld [vmem:[#allocation23_spill] sm:$0xff]  ;;  %v9793_v12 = vld [vmem:[#allocation8_spill] sm:$0xff] }
 0x502   : > { %v5203_v0 = vpop.eup %5202 }
 0x503   : > { %v2409_v49 = vadd.f32 %v7399_v52, %v2408_v16  ;;  %v2430_v5 = vadd.f32 %v7460_v51, %v2429_v10  ;;  %v5205_v6 = vpop.eup %5204  ;;  %v2483_v36 = vpack.c.bf16 %v5203_v0, %v5201_v54  ;;  %v9802_v52 = vld [vmem:[#allocation26_spill] sm:$0xff] }
 0x504   : > { %2499 = vmatpush1.bf16.msra.mxu1 %v9784_v30  ;;  %v5207_v18 = vpop.eup %5206  ;;  %v9812_v30 = vld [vmem:[#allocation55_spill] sm:$0xff] }
 0x505   : > { %v7508_v56 = vadd.f32 %v7407_v62, %v2409_v49  ;;  %v2431_v23 = vadd.f32 %v5183_v55, %v2430_v5  ;;  %2500 = vmatprep.subr.bf16.mxu1 %v2469_v47  ;;  %v2485_v34 = vpack.c.bf16 %v5207_v18, %v5205_v6  ;;  %v9786_v55 = vpack.c.bf16 %v7300_v45, %v7294_v17  ;;  %v9803_v62 = vld [vmem:[#allocation27_spill] sm:$0xff]  ;;  %v9807_v49 = vld [vmem:[#allocation33_spill] sm:$0xff]  ;;  %v9808_v5 = vld [vmem:[#allocation46_spill] sm:$0xff] }
 0x507   : > { %v2432_v51 = vadd.f32 %v7472_v26, %v2431_v23  ;;  %v9787_v26 = vpack.c.bf16 %v7311_v35, %v7305_v44  ;;  %v9814_v23 = vld [vmem:[#allocation48_spill] sm:$0xff] }
 0x508   : > { %2501 = vmatpush1.bf16.msra.mxu1 %v9785_v4  ;;  %v5209_v38 = vpop.eup %5208  ;;  %v2411_v4 = vrot.slane %v7508_v56, 4 }
 0x509   : > { %v2433_v7 = vadd.f32 %v5187_v27, %v2432_v51  ;;  %2502 = vmatprep.subr.bf16.mxu1 %v2471_v41  ;;  %v5211_v25 = vpop.eup %5210 }
 0x50a   : > { %v5213_v19 = vpop.eup %5212  ;;  %v2477_v41 = vpack.c.bf16 %v5211_v25, %v5209_v38 }
 0x50b   : > { %v2434_v32 = vadd.f32 %v5189_v20, %v2433_v7  ;;  %v5215_v43 = vpop.eup %5214  ;;  %v9788_v20 = vpack.c.bf16 %v7328_v60, %v7319_v40  ;;  %v9791_v40 = vpack.c.bf16 %v7378_v53, %v7371_v11 }
 0x50c   : > { %2503 = vmatpush1.bf16.msra.mxu1 %v9786_v55 }
 0x50d   : > { %v2435_v47 = vadd.f32 %v5191_v2, %v2434_v32  ;;  %2504 = vmatprep.subr.bf16.mxu1 %v2473_v14  ;;  %v2479_v2 = vpack.c.bf16 %v5215_v43, %v5213_v19  ;;  %v9790_v14 = vpack.c.bf16 %v7363_v50, %v7356_v8  ;;  %v9795_v8 = vpack.c.bf16 %v7394_v58, %v7386_v61  ;;  %v9796_v50 = vld [vmem:[#allocation43_spill] sm:$0xff]  ;;  %v9800_v61 = vld [vmem:[#allocation24_spill] sm:$0xff] }
 0x50e   : > { %v9799_v58 = vmov 0   ;;  %v2412_v32 = vadd.f32 %v2411_v4, %v7508_v56 }
 0x50f   : > { %v2436_v21 = vadd.f32 %v5193_v28, %v2435_v47  ;;  %v9789_v28 = vpack.c.bf16 %v7348_v63, %v7339_v48  ;;  %v426_v48 = vadd.f32 %v9793_v12, %v9792_v31  ;;  %v9794_v63 = vld [vmem:[#allocation9_spill] sm:$0xff]  ;;  %v7609_v12 = vld [vmem:[%s9323_s3 + $0x40] sm:$0xff] }
 0x510   : > { %2505 = vmatpush1.bf16.msra.mxu1 %v9787_v26  ;;  %v428_v39 = vadd.f32 %v9794_v63, %v9792_v31  ;;  %v2413_v47 = vrot.slane %v2412_v32, 2  ;;  %v2888_v63 = vld [vmem:[%s9324_s4 + $0x2] sm:$0x3] }
 0x511   : > { %v2437_v1 = vadd.f32 %v5195_v29, %v2436_v21  ;;  %2506 = vmatprep.subr.bf16.mxu1 %v2475_v59  ;;  %v2533_v53 = vpack.c.bf16 %v426_v48, %v426_v48  ;;  %v2887_v48 = vld [vmem:[%s9324_s4] sm:$0x3] }
 0x512   : > { %v2534_v11 = vpack.c.bf16 %v428_v39, %v428_v39  ;;  %v2414_v21 = vadd.f32 %v2413_v47, %v2412_v32  ;;  %v7620_v39 = vld [vmem:[%s9323_s3 + $0x48] sm:$0xff] }
 0x513   : > { %v2438_v27 = vadd.f32 %v5209_v38, %v2437_v1 }
 0x514   : > { %2507 = vmatpush1.bf16.msra.mxu1 %v9788_v20  ;;  %v2415_v26 = vrot.slane %v2414_v21, 1 }
 0x515   : > { %v2439_v17 = vadd.f32 %v5211_v25, %v2438_v27  ;;  %2508 = vmatprep.subr.bf16.mxu1 %v2477_v41 }
 0x517   : > { %v2440_v45 = vadd.f32 %v5213_v19, %v2439_v17  ;;  %v2416_v19 = vadd.f32 %v2415_v26, %v2414_v21 }
 0x518   : > { %2509 = vmatpush1.bf16.msra.mxu1 %v9789_v28 }
 0x519   : > { %v2441_v44 = vadd.f32 %v5215_v43, %v2440_v45  ;;  %2510 = vmatprep.subr.bf16.mxu1 %v2479_v2  ;;  %5216 = vrcp.f32 %v2416_v19 }
 0x51b   : > { %v2442_v35 = vadd.f32 %v5197_v15, %v2441_v44  ;;  %v460_v15 = vadd.f32 %v9797_v3, %v9796_v50  ;;  %v9822_v50 = vld [vmem:[#allocation29_spill] sm:$0xff] }
 0x51c   : > { %2511 = vmatpush1.bf16.msra.mxu1 %v9790_v14  ;;  %v2922_v3 = vrot.slane %v2887_v48, %v9822_v50 }
 0x51d   : > { %v2443_v29 = vadd.f32 %v5199_v22, %v2442_v35  ;;  %2512 = vmatprep.subr.bf16.mxu1 %v2481_v37  ;;  %v1508_v10 = vpack.c.bf16 %v460_v15, %v460_v15  ;;  %v2620_v22 = vsel %vm561_vm1, %v2533_v53, 0  ;;  %v9809_v37 = vld [vmem:[#allocation47_spill] sm:$0xff]  ;;  %v7632_v15 = vld [vmem:[%s9323_s3 + $0x58] sm:$0xff] }
 0x51f   : > { %v2444_v59 = vadd.f32 %v5201_v54, %v2443_v29  ;;  %v9806_v54 = vld [vmem:[#allocation32_spill] sm:$0xff] }
 0x520   : > { %2513 = vmatpush1.bf16.msra.mxu1 %v9791_v40 }
 0x521   : > { %v2445_v60 = vadd.f32 %v5203_v0, %v2444_v59  ;;  %2514 = vmatprep.subr.bf16.mxu1 %v2483_v36  ;;  %v9810_v0 = vld [vmem:[#allocation52_spill] sm:$0xff] }
 0x522   : > { %v9815_v36 = vld [vmem:[#allocation44_spill] sm:$0xff] }
 0x523   : > { %v2446_v46 = vadd.f32 %v5205_v6, %v2445_v60  ;;  %v9813_v6 = vld [vmem:[#allocation56_spill] sm:$0xff]  ;;  %v5217_v41 = vpop.eup %5216 }
 0x524   : > { %2515 = vmatpush1.bf16.msra.mxu1 %v9795_v8 }
 0x525   : > { %v2447_v16 = vadd.f32 %v5207_v18, %v2446_v46  ;;  %2516 = vmatprep.subr.bf16.mxu1 %v2485_v34  ;;  %v9816_v18 = vld [vmem:[#allocation59_spill] sm:$0xff]  ;;  %v9817_v34 = vld [vmem:[#allocation49_spill] sm:$0xff]  ;;  %v7625_v46 = vld [vmem:[%s9323_s3 + $0x50] sm:$0xff] }
 0x526   : > { %v472_v42 = vadd.f32 %v9816_v18, %v9815_v36 }
 0x527   : > { %v2448_v7 = vrot.slane %v2447_v16, 4 }
 0x528   : > { %2517 = vmatpush1.bf16.msra.mxu1 %v9798_v9  ;;  %v3567_v51 = vpack.c.bf16 %v472_v42, %v472_v42 }
 0x529   : > { %4845 = vmatprep.subr.msk.bf16.mxu1 %vm561_vm1, %v2534_v11  ;;  %v2449_v55 = vadd.f32 %v2448_v7, %v2447_v16  ;;  %v2930_v16 = vrot.slane %v2888_v63, %v9822_v50  ;;  %v9823_v11 = vld [vmem:[#allocation31_spill] sm:$0xff] }
 0x52a   : > { %v2926_v9 = vrot.slane %v2887_v48, %v9823_v11 }
 0x52b   : > { %2519 = vmatmul.mubr.bf16.vlgmr.msra.gmra.mrb[64].mxu1 %v1508_v10  ;;  %v2450_v38 = vrot.slane %v2449_v55, 2 }
 0x52c   : > { %2626 = vmatpush1.bf16.msra.mxu1 %v2620_v22  ;;  %2657 = vmatprep.mubr.bf16.mxu1 %v9799_v58  ;;  %v2934_v22 = vrot.slane %v2888_v63, %v9823_v11 }
 0x52d   : > { %v2451_v25 = vadd.f32 %v2450_v38, %v2449_v55 }
 0x52f   : > { %v2452_v1 = vrot.slane %v2451_v25, 1 }
 0x531   : > { %v2453_v27 = vadd.f32 %v2452_v1, %v2451_v25 }
 0x533   : > { %4846 = vmatmul.mubr.msk.bf16.vlgmr.msra.gmra.mrb[68].mxu1 %vm512_vm2, %v9800_v61  ;;  %5218 = vrcp.f32 %v2453_v27 }
 0x534   : > { %2667 = vmatprep.mubr.bf16.mxu1 %v9799_v58 }
 0x53b   : > { %4847 = vmatmul.mubr.msk.bf16.gmra.mrb[72].mxu1 %vm512_vm2, %v9801_v13 }
 0x53c   : > { %2677 = vmatprep.mubr.bf16.mxu1 %v9799_v58 }
 0x53d   : > { %v5219_v20 = vpop.eup %5218 }
 0x543   : > { %4848 = vmatmul.mubr.msk.bf16.gmra.mrb[76].mxu1 %vm512_vm2, %v9802_v52 }
 0x544   : > { %2687 = vmatprep.mubr.bf16.mxu1 %v9799_v58 }
 0x54b   : > { %4849 = vmatmul.mubr.msk.bf16.gmra.mrb[80].mxu1 %vm512_vm2, %v9803_v62 }
 0x54c   : > { %2697 = vmatprep.mubr.bf16.mxu1 %v9799_v58 }
 0x553   : > { %4850 = vmatmul.mubr.msk.bf16.gmra.mrb[84].mxu1 %vm512_vm2, %v9804_v24 }
 0x554   : > { %2707 = vmatprep.mubr.bf16.mxu1 %v9799_v58 }
 0x55b   : > { %4851 = vmatmul.mubr.msk.bf16.gmra.mrb[88].mxu1 %vm512_vm2, %v9805_v57 }
 0x55c   : > { %2717 = vmatprep.mubr.bf16.mxu1 %v9799_v58 }
 0x563   : > { %4852 = vmatmul.mubr.msk.bf16.gmra.mrb[92].mxu1 %vm512_vm2, %v9806_v54 }
 0x564   : > { %2727 = vmatprep.mubr.bf16.mxu1 %v9799_v58 }
 0x56b   : > { %4853 = vmatmul.mubr.msk.bf16.gmra.mrb[96].mxu1 %vm512_vm2, %v9807_v49 }
 0x56c   : > { %2737 = vmatprep.mubr.bf16.mxu1 %v9799_v58 }
 0x573   : > { %4854 = vmatmul.mubr.msk.bf16.gmra.mrb[100].mxu1 %vm512_vm2, %v9808_v5 }
 0x574   : > { %2747 = vmatprep.mubr.bf16.mxu1 %v9799_v58 }
 0x57b   : > { %4855 = vmatmul.mubr.msk.bf16.gmra.mrb[104].mxu1 %vm512_vm2, %v9809_v37 }
 0x57c   : > { %2757 = vmatprep.mubr.bf16.mxu1 %v9799_v58 }
 0x583   : > { %4856 = vmatmul.mubr.msk.bf16.gmra.mrb[108].mxu1 %vm512_vm2, %v9810_v0 }
 0x584   : > { %2767 = vmatprep.mubr.bf16.mxu1 %v9799_v58 }
 0x58b   : > { %4857 = vmatmul.mubr.msk.bf16.gmra.mrb[112].mxu1 %vm512_vm2, %v9811_v33 }
 0x58c   : > { %2777 = vmatprep.mubr.bf16.mxu1 %v9799_v58 }
 0x593   : > { %4858 = vmatmul.mubr.msk.bf16.gmra.mrb[116].mxu1 %vm512_vm2, %v9812_v30 }
 0x594   : > { %2787 = vmatprep.mubr.bf16.mxu1 %v9799_v58 }
 0x59b   : > { %4859 = vmatmul.mubr.msk.bf16.gmra.mrb[120].mxu1 %vm512_vm2, %v9813_v6  ;;  %v2889_v6 = vld [vmem:[%s9324_s4 + $0x4] sm:$0x3] }
 0x59c   : > { %2797 = vmatprep.mubr.bf16.mxu1 %v9799_v58  ;;  %v2938_v7 = vrot.slane %v2889_v6, %v9822_v50  ;;  %v2942_v47 = vrot.slane %v2889_v6, %v9823_v11 }
 0x5a3   : > { %4860 = vmatmul.mubr.msk.bf16.gmra.mrb[124].mxu1 %vm512_vm2, %v9814_v23 }
 0x5a4   : > { %2807 = vmatprep.mubr.bf16.mxu1 %v9799_v58 }
 0x5ab   : > { %4861 = vmatmul.mubr.msk.bf16.gmra.mrb[128].mxu1 %vm512_vm2, %v9817_v34 }
 0x5ac   : > { %4576 = vmatprep.mubr.bf16.mxu1 %v3567_v51 }
 0x5fe   : > { %v2520_v43 = vpop.f32.mrb[64].mxu1 }
 0x5ff   : > { %v7598_v17 = vmul.f32 %v5217_v41, %v2520_v43  ;;  %v2522_v45 = vpop.f32.mrb[65].mxu1 }
 0x600   : > { %v7600_v2 = vmul.f32 %v5219_v20, %v2522_v45  ;;  %v2524_v56 = vpop.f32.mrb[66].mxu1  ;;  %v2890_v20 = vld [vmem:[%s9324_s4 + $0x6] sm:$0x3] }
 0x601   : > { %9818 = vst [vmem:[#allocation14_spill] sm:$0xff] %v7598_v17  ;;  %v2525_v35 = vpop.f32.mrb[67].mxu1  ;;  %v2950_v63 = vrot.slane %v2890_v20, %v9823_v11 }
 0x602   : > { %9819 = vst [vmem:[#allocation6_spill] sm:$0xff] %v7600_v2 }
 0x606   : > { %v2659_v59 = vpop.f32.mrb[68].mxu1 }
 0x607   : > { %v2661_v40 = vpop.f32.mrb[69].mxu1  ;;  %v2823_v8 = vadd.f32 %v7609_v12, %v2659_v59 }
 0x608   : > { %v2663_v60 = vpop.f32.mrb[70].mxu1  ;;  %v2824_v53 = vadd.f32 %v7620_v39, %v2661_v40 }
 0x609   : > { %v2665_v31 = vpop.f32.mrb[71].mxu1  ;;  %v2825_v61 = vadd.f32 %v7625_v46, %v2663_v60  ;;  %v7642_v54 = vadd.f32 %v2922_v3, %v2823_v8  ;;  %v2946_v60 = vrot.slane %v2890_v20, %v9822_v50 }
 0x60a   : > { %v2826_v62 = vadd.f32 %v7632_v15, %v2665_v31  ;;  %v7647_v0 = vadd.f32 %v2926_v9, %v2824_v53 }
 0x60b   : > { %v7655_v23 = vadd.f32 %v2922_v3, %v2825_v61 }
 0x60c   : > { %v7661_v42 = vadd.f32 %v2926_v9, %v2826_v62 }
 0x60e   : > { %v2669_v10 = vpop.f32.mrb[72].mxu1 }
 0x60f   : > { %v2827_v13 = vadd.f32 %v7609_v12, %v2669_v10  ;;  %v2671_v52 = vpop.f32.mrb[73].mxu1 }
 0x610   : > { %v2828_v24 = vadd.f32 %v7620_v39, %v2671_v52  ;;  %v2673_v57 = vpop.f32.mrb[74].mxu1  ;;  %v2891_v52 = vld [vmem:[%s9324_s4 + $0x8] sm:$0x3] }
 0x611   : > { %v7644_v49 = vadd.f32 %v2930_v16, %v2827_v13  ;;  %v2829_v5 = vadd.f32 %v7625_v46, %v2673_v57  ;;  %v2675_v37 = vpop.f32.mrb[75].mxu1 }
 0x612   : > { %v7649_v33 = vadd.f32 %v2934_v22, %v2828_v24  ;;  %v2830_v30 = vadd.f32 %v7632_v15, %v2675_v37 }
 0x613   : > { %v3143_v36 = vmax.f32 %v7642_v54, %v7644_v49  ;;  %v7659_v18 = vadd.f32 %v2930_v16, %v2829_v5 }
 0x614   : > { %v3180_v51 = vmax.f32 %v7647_v0, %v7649_v33  ;;  %v7665_v34 = vadd.f32 %v2934_v22, %v2830_v30  ;;  %v2954_v30 = vrot.slane %v2891_v52, %v9822_v50 }
 0x615   : > { %v3144_v4 = vmax.f32 %v7655_v23, %v7659_v18 }
 0x616   : > { %v3181_v32 = vmax.f32 %v7661_v42, %v7665_v34  ;;  %v2679_v55 = vpop.f32.mrb[76].mxu1 }
 0x617   : > { %v2831_v38 = vadd.f32 %v7609_v12, %v2679_v55  ;;  %v2681_v21 = vpop.f32.mrb[77].mxu1 }
 0x618   : > { %v2832_v25 = vadd.f32 %v7620_v39, %v2681_v21  ;;  %v2683_v26 = vpop.f32.mrb[78].mxu1 }
 0x619   : > { %v7675_v1 = vadd.f32 %v2938_v7, %v2831_v38  ;;  %v2833_v19 = vadd.f32 %v7625_v46, %v2683_v26  ;;  %v2685_v27 = vpop.f32.mrb[79].mxu1 }
 0x61a   : > { %v7678_v41 = vadd.f32 %v2942_v47, %v2832_v25  ;;  %v2834_v43 = vadd.f32 %v7632_v15, %v2685_v27 }
 0x61b   : > { %v3145_v45 = vmax.f32 %v3143_v36, %v7675_v1  ;;  %v7685_v56 = vadd.f32 %v2938_v7, %v2833_v19  ;;  %v2892_v19 = vld [vmem:[%s9324_s4 + $0xa] sm:$0x3] }
 0x61c   : > { %v3182_v35 = vmax.f32 %v3180_v51, %v7678_v41  ;;  %v7688_v59 = vadd.f32 %v2942_v47, %v2834_v43  ;;  %v2958_v51 = vrot.slane %v2891_v52, %v9823_v11 }
 0x61d   : > { %v3146_v40 = vmax.f32 %v3144_v4, %v7685_v56 }
 0x61e   : > { %v3183_v31 = vmax.f32 %v3181_v32, %v7688_v59  ;;  %v2689_v48 = vpop.f32.mrb[80].mxu1 }
 0x61f   : > { %v2835_v8 = vadd.f32 %v7609_v12, %v2689_v48  ;;  %v2691_v3 = vpop.f32.mrb[81].mxu1  ;;  %v2966_v48 = vrot.slane %v2892_v19, %v9823_v11 }
 0x620   : > { %v2836_v16 = vadd.f32 %v7620_v39, %v2691_v3  ;;  %v2693_v53 = vpop.f32.mrb[82].mxu1 }
 0x621   : > { %v7696_v9 = vadd.f32 %v2946_v60, %v2835_v8  ;;  %v2837_v10 = vadd.f32 %v7625_v46, %v2693_v53  ;;  %v2695_v22 = vpop.f32.mrb[83].mxu1 }
 0x622   : > { %v7699_v61 = vadd.f32 %v2950_v63, %v2836_v16  ;;  %v2838_v13 = vadd.f32 %v7632_v15, %v2695_v22 }
 0x623   : > { %v3147_v62 = vmax.f32 %v3145_v45, %v7696_v9  ;;  %v7706_v24 = vadd.f32 %v2946_v60, %v2837_v10 }
 0x624   : > { %v3184_v57 = vmax.f32 %v3182_v35, %v7699_v61  ;;  %v7709_v5 = vadd.f32 %v2950_v63, %v2838_v13 }
 0x625   : > { %v3148_v37 = vmax.f32 %v3146_v40, %v7706_v24  ;;  %v2962_v40 = vrot.slane %v2892_v19, %v9822_v50 }
 0x626   : > { %v3185_v6 = vmax.f32 %v3183_v31, %v7709_v5  ;;  %v2699_v36 = vpop.f32.mrb[84].mxu1 }
 0x627   : > { %v2839_v4 = vadd.f32 %v7609_v12, %v2699_v36  ;;  %v2701_v7 = vpop.f32.mrb[85].mxu1 }
 0x628   : > { %v2840_v32 = vadd.f32 %v7620_v39, %v2701_v7  ;;  %v2703_v55 = vpop.f32.mrb[86].mxu1 }
 0x629   : > { %v7717_v47 = vadd.f32 %v2954_v30, %v2839_v4  ;;  %v2841_v38 = vadd.f32 %v7625_v46, %v2703_v55  ;;  %v2705_v21 = vpop.f32.mrb[87].mxu1 }
 0x62a   : > { %v7720_v25 = vadd.f32 %v2958_v51, %v2840_v32  ;;  %v2842_v26 = vadd.f32 %v7632_v15, %v2705_v21 }
 0x62b   : > { %v3149_v27 = vmax.f32 %v3147_v62, %v7717_v47  ;;  %v7727_v43 = vadd.f32 %v2954_v30, %v2841_v38  ;;  %v2893_v62 = vld [vmem:[%s9324_s4 + $0xc] sm:$0x3] }
 0x62c   : > { %9824 = vst [vmem:[#allocation7_spill] sm:$0xff] %v7720_v25  ;;  %v3186_v20 = vmax.f32 %v3184_v57, %v7720_v25  ;;  %v7730_v45 = vadd.f32 %v2958_v51, %v2842_v26  ;;  %v2970_v51 = vrot.slane %v2893_v62, %v9822_v50  ;;  %v2974_v32 = vrot.slane %v2893_v62, %v9823_v11 }
 0x62d   : > { %v3150_v35 = vmax.f32 %v3148_v37, %v7727_v43 }
 0x62e   : > { %9825 = vst [vmem:[#allocation13_spill] sm:$0xff] %v7730_v45  ;;  %v3187_v60 = vmax.f32 %v3185_v6, %v7730_v45  ;;  %v2709_v31 = vpop.f32.mrb[88].mxu1 }
 0x62f   : > { %v2843_v63 = vadd.f32 %v7609_v12, %v2709_v31  ;;  %v2711_v8 = vpop.f32.mrb[89].mxu1 }
 0x630   : > { %v2844_v3 = vadd.f32 %v7620_v39, %v2711_v8  ;;  %v2713_v16 = vpop.f32.mrb[90].mxu1 }
 0x631   : > { %v7738_v53 = vadd.f32 %v2962_v40, %v2843_v63  ;;  %v2845_v10 = vadd.f32 %v7625_v46, %v2713_v16  ;;  %v2715_v22 = vpop.f32.mrb[91].mxu1 }
 0x632   : > { %v7741_v13 = vadd.f32 %v2966_v48, %v2844_v3  ;;  %v2846_v52 = vadd.f32 %v7632_v15, %v2715_v22 }
 0x633   : > { %v3151_v57 = vmax.f32 %v3149_v27, %v7738_v53  ;;  %v7748_v37 = vadd.f32 %v2962_v40, %v2845_v10 }
 0x634   : > { %9826 = vst [vmem:[#allocation12_spill] sm:$0xff] %v7741_v13  ;;  %v3188_v30 = vmax.f32 %v3186_v20, %v7741_v13  ;;  %v7751_v6 = vadd.f32 %v2966_v48, %v2846_v52 }
 0x635   : > { %v3152_v36 = vmax.f32 %v3150_v35, %v7748_v37 }
 0x636   : > { %9827 = vst [vmem:[#allocation15_spill] sm:$0xff] %v7751_v6  ;;  %v3189_v4 = vmax.f32 %v3187_v60, %v7751_v6  ;;  %v2719_v7 = vpop.f32.mrb[92].mxu1  ;;  %v2894_v60 = vld [vmem:[%s9324_s4 + $0xe] sm:$0x3] }
 0x637   : > { %v2847_v55 = vadd.f32 %v7609_v12, %v2719_v7  ;;  %v2721_v38 = vpop.f32.mrb[93].mxu1  ;;  %v2978_v16 = vrot.slane %v2894_v60, %v9822_v50  ;;  %v2982_v52 = vrot.slane %v2894_v60, %v9823_v11 }
 0x638   : > { %v2848_v21 = vadd.f32 %v7620_v39, %v2721_v38  ;;  %v2723_v26 = vpop.f32.mrb[94].mxu1 }
 0x639   : > { %v7759_v19 = vadd.f32 %v2970_v51, %v2847_v55  ;;  %v2849_v27 = vadd.f32 %v7625_v46, %v2723_v26  ;;  %v2725_v20 = vpop.f32.mrb[95].mxu1 }
 0x63a   : > { %v7762_v40 = vadd.f32 %v2974_v32, %v2848_v21  ;;  %v2850_v35 = vadd.f32 %v7632_v15, %v2725_v20 }
 0x63b   : > { %v3153_v31 = vmax.f32 %v3151_v57, %v7759_v19  ;;  %v7769_v48 = vadd.f32 %v2970_v51, %v2849_v27 }
 0x63c   : > { %9828 = vst [vmem:[#allocation16_spill] sm:$0xff] %v7762_v40  ;;  %v3190_v63 = vmax.f32 %v3188_v30, %v7762_v40  ;;  %v7772_v8 = vadd.f32 %v2974_v32, %v2850_v35 }
 0x63d   : > { %v3154_v3 = vmax.f32 %v3152_v36, %v7769_v48 }
 0x63e   : > { %9829 = vst [vmem:[#allocation17_spill] sm:$0xff] %v7772_v8  ;;  %v3191_v10 = vmax.f32 %v3189_v4, %v7772_v8  ;;  %v2729_v22 = vpop.f32.mrb[96].mxu1  ;;  %v2895_v4 = vld [vmem:[%s9324_s4 + $0x10] sm:$0x3] }
 0x63f   : > { %v2851_v62 = vadd.f32 %v7609_v12, %v2729_v22  ;;  %v2731_v7 = vpop.f32.mrb[97].mxu1  ;;  %v2986_v60 = vrot.slane %v2895_v4, %v9822_v50 }
 0x640   : > { %v2852_v57 = vadd.f32 %v7620_v39, %v2731_v7  ;;  %v2733_v51 = vpop.f32.mrb[98].mxu1  ;;  %v2990_v7 = vrot.slane %v2895_v4, %v9823_v11 }
 0x641   : > { %v7780_v55 = vadd.f32 %v2978_v16, %v2851_v62  ;;  %v2853_v30 = vadd.f32 %v7625_v46, %v2733_v51  ;;  %v2735_v32 = vpop.f32.mrb[99].mxu1 }
 0x642   : > { %v7783_v38 = vadd.f32 %v2982_v52, %v2852_v57  ;;  %v2854_v36 = vadd.f32 %v7632_v15, %v2735_v32 }
 0x643   : > { %v3155_v21 = vmax.f32 %v3153_v31, %v7780_v55  ;;  %v7790_v26 = vadd.f32 %v2978_v16, %v2853_v30 }
 0x644   : > { %9830 = vst [vmem:[#allocation18_spill] sm:$0xff] %v7783_v38  ;;  %v3192_v27 = vmax.f32 %v3190_v63, %v7783_v38  ;;  %v7793_v20 = vadd.f32 %v2982_v52, %v2854_v36 }
 0x645   : > { %v3156_v35 = vmax.f32 %v3154_v3, %v7790_v26 }
 0x646   : > { %9831 = vst [vmem:[#allocation19_spill] sm:$0xff] %v7793_v20  ;;  %v3193_v22 = vmax.f32 %v3191_v10, %v7793_v20  ;;  %v2739_v62 = vpop.f32.mrb[100].mxu1  ;;  %v2896_v10 = vld [vmem:[%s9324_s4 + $0x12] sm:$0x3] }
 0x647   : > { %v2855_v57 = vadd.f32 %v7609_v12, %v2739_v62  ;;  %v2741_v51 = vpop.f32.mrb[101].mxu1 }
 0x648   : > { %v2856_v31 = vadd.f32 %v7620_v39, %v2741_v51  ;;  %v2743_v16 = vpop.f32.mrb[102].mxu1 }
 0x649   : > { %v7801_v30 = vadd.f32 %v2986_v60, %v2855_v57  ;;  %v2857_v63 = vadd.f32 %v7625_v46, %v2743_v16  ;;  %v2745_v52 = vpop.f32.mrb[103].mxu1  ;;  %v2994_v16 = vrot.slane %v2896_v10, %v9822_v50 }
 0x64a   : > { %v7804_v32 = vadd.f32 %v2990_v7, %v2856_v31  ;;  %v2858_v3 = vadd.f32 %v7632_v15, %v2745_v52  ;;  %v2998_v52 = vrot.slane %v2896_v10, %v9823_v11 }
 0x64b   : > { %v3157_v36 = vmax.f32 %v3155_v21, %v7801_v30  ;;  %v7811_v4 = vadd.f32 %v2986_v60, %v2857_v63 }
 0x64c   : > { %9832 = vst [vmem:[#allocation20_spill] sm:$0xff] %v7804_v32  ;;  %v3194_v62 = vmax.f32 %v3192_v27, %v7804_v32  ;;  %v7814_v51 = vadd.f32 %v2990_v7, %v2858_v3 }
 0x64d   : > { %v3158_v57 = vmax.f32 %v3156_v35, %v7811_v4 }
 0x64e   : > { %9833 = vst [vmem:[#allocation21_spill] sm:$0xff] %v7814_v51  ;;  %v3195_v31 = vmax.f32 %v3193_v22, %v7814_v51  ;;  %v2749_v44 = vpop.f32.mrb[104].mxu1  ;;  %v2897_v22 = vld [vmem:[%s9324_s4 + $0x14] sm:$0x3] }
 0x64f   : > { %v2859_v29 = vadd.f32 %v7609_v12, %v2749_v44  ;;  %v2751_v28 = vpop.f32.mrb[105].mxu1 }
 0x650   : > { %v2860_v21 = vadd.f32 %v7620_v39, %v2751_v28  ;;  %v2753_v60 = vpop.f32.mrb[106].mxu1 }
 0x651   : > { %v7822_v63 = vadd.f32 %v2994_v16, %v2859_v29  ;;  %v2861_v27 = vadd.f32 %v7625_v46, %v2753_v60  ;;  %v2755_v7 = vpop.f32.mrb[107].mxu1  ;;  %v3002_v60 = vrot.slane %v2897_v22, %v9822_v50 }
 0x652   : > { %v7825_v3 = vadd.f32 %v2998_v52, %v2860_v21  ;;  %v2862_v35 = vadd.f32 %v7632_v15, %v2755_v7  ;;  %v3006_v7 = vrot.slane %v2897_v22, %v9823_v11 }
 0x653   : > { %v3159_v10 = vmax.f32 %v3157_v36, %v7822_v63  ;;  %v7832_v44 = vadd.f32 %v2994_v16, %v2861_v27 }
 0x654   : > { %9834 = vst [vmem:[#allocation22_spill] sm:$0xff] %v7825_v3  ;;  %v3196_v28 = vmax.f32 %v3194_v62, %v7825_v3  ;;  %v7835_v17 = vadd.f32 %v2998_v52, %v2862_v35 }
 0x655   : > { %v3160_v29 = vmax.f32 %v3158_v57, %v7832_v44 }
 0x656   : > { %9835 = vst [vmem:[#allocation61_spill] sm:$0xff] %v7835_v17  ;;  %v3197_v21 = vmax.f32 %v3195_v31, %v7835_v17  ;;  %v2759_v14 = vpop.f32.mrb[108].mxu1  ;;  %v2898_v31 = vld [vmem:[%s9324_s4 + $0x16] sm:$0x3] }
 0x657   : > { %v2863_v2 = vadd.f32 %v7609_v12, %v2759_v14  ;;  %v2761_v58 = vpop.f32.mrb[109].mxu1 }
 0x658   : > { %v2864_v36 = vadd.f32 %v7620_v39, %v2761_v58  ;;  %v2763_v16 = vpop.f32.mrb[110].mxu1 }
 0x659   : > { %v7843_v27 = vadd.f32 %v3002_v60, %v2863_v2  ;;  %v2865_v62 = vadd.f32 %v7625_v46, %v2763_v16  ;;  %v2765_v52 = vpop.f32.mrb[111].mxu1  ;;  %v3010_v16 = vrot.slane %v2898_v31, %v9822_v50 }
 0x65a   : > { %v7846_v35 = vadd.f32 %v3006_v7, %v2864_v36  ;;  %v2866_v57 = vadd.f32 %v7632_v15, %v2765_v52 }
 0x65b   : > { %v3161_v22 = vmax.f32 %v3159_v10, %v7843_v27  ;;  %v7853_v14 = vadd.f32 %v3002_v60, %v2865_v62 }
 0x65c   : > { %9836 = vst [vmem:[#allocation36_spill] sm:$0xff] %v7846_v35  ;;  %v3198_v58 = vmax.f32 %v3196_v28, %v7846_v35  ;;  %v7856_v17 = vadd.f32 %v3006_v7, %v2866_v57  ;;  %v2899_v28 = vld [vmem:[%s9324_s4 + $0x18] sm:$0x3] }
 0x65d   : > { %v3162_v2 = vmax.f32 %v3160_v29, %v7853_v14  ;;  %v3018_v62 = vrot.slane %v2899_v28, %v9822_v50 }
 0x65e   : > { %9837 = vst [vmem:[#allocation39_spill] sm:$0xff] %v7856_v17  ;;  %v3199_v36 = vmax.f32 %v3197_v21, %v7856_v17  ;;  %v2769_v3 = vpop.f32.mrb[112].mxu1 }
 0x65f   : > { %v2867_v52 = vadd.f32 %v7609_v12, %v2769_v3  ;;  %v2771_v51 = vpop.f32.mrb[113].mxu1 }
 0x660   : > { %v2773_v32 = vpop.f32.mrb[114].mxu1  ;;  %v2868_v17 = vadd.f32 %v7620_v39, %v2771_v51 }
 0x661   : > { %v7862_v20 = vadd.f32 %v3010_v16, %v2867_v52  ;;  %v2869_v10 = vadd.f32 %v7625_v46, %v2773_v32  ;;  %v2775_v60 = vpop.f32.mrb[115].mxu1  ;;  %v3014_v32 = vrot.slane %v2898_v31, %v9823_v11 }
 0x663   : > { %v3163_v29 = vmax.f32 %v3161_v22, %v7862_v20  ;;  %v7869_v7 = vadd.f32 %v3010_v16, %v2869_v10  ;;  %v2870_v16 = vadd.f32 %v7632_v15, %v2775_v60  ;;  %v3022_v10 = vrot.slane %v2899_v28, %v9823_v11 }
 0x664   : > { %v7888_v31 = vadd.f32 %v3014_v32, %v2868_v17 }
 0x665   : > { %v3164_v21 = vmax.f32 %v3162_v2, %v7869_v7  ;;  %v7893_v6 = vadd.f32 %v3014_v32, %v2870_v16 }
 0x666   : > { %v2779_v3 = vpop.f32.mrb[116].mxu1  ;;  %9838 = vst [vmem:[#allocation58_spill] sm:$0xff] %v7888_v31 }
 0x667   : > { %v2871_v57 = vadd.f32 %v7609_v12, %v2779_v3  ;;  %v2781_v52 = vpop.f32.mrb[117].mxu1  ;;  %v2900_v3 = vld [vmem:[%s9324_s4 + $0x1a] sm:$0x3]  ;;  %9839 = vst [vmem:[#allocation41_spill] sm:$0xff] %v7893_v6 }
 0x668   : > { %v2783_v35 = vpop.f32.mrb[118].mxu1  ;;  %v2872_v2 = vadd.f32 %v7620_v39, %v2781_v52  ;;  %v3026_v60 = vrot.slane %v2900_v3, %v9822_v50  ;;  %v3030_v13 = vrot.slane %v2900_v3, %v9823_v11 }
 0x669   : > { %v7876_v38 = vadd.f32 %v3018_v62, %v2871_v57  ;;  %v2873_v8 = vadd.f32 %v7625_v46, %v2783_v35  ;;  %v2785_v22 = vpop.f32.mrb[119].mxu1 }
 0x66a   : > { %v2874_v57 = vadd.f32 %v7632_v15, %v2785_v22  ;;  %v7895_v52 = vadd.f32 %v3022_v10, %v2872_v2  ;;  %v3201_v2 = vmax.f32 %v3199_v36, %v7893_v6 }
 0x66b   : > { %v3165_v51 = vmax.f32 %v3163_v29, %v7876_v38  ;;  %v7886_v40 = vadd.f32 %v3018_v62, %v2873_v8  ;;  %v3200_v8 = vmax.f32 %v3198_v58, %v7888_v31  ;;  %v2901_v58 = vld [vmem:[%s9324_s4 + $0x1c] sm:$0x3] }
 0x66c   : > { %9840 = vst [vmem:[#allocation63_spill] sm:$0xff] %v7895_v52  ;;  %v7900_v17 = vadd.f32 %v3022_v10, %v2874_v57 }
 0x66d   : > { %v3166_v35 = vmax.f32 %v3164_v21, %v7886_v40  ;;  %v3202_v25 = vmax.f32 %v3200_v8, %v7895_v52  ;;  %v3034_v8 = vrot.slane %v2901_v58, %v9822_v50  ;;  %v3038_v52 = vrot.slane %v2901_v58, %v9823_v11 }
 0x66e   : > { %v2789_v28 = vpop.f32.mrb[120].mxu1  ;;  %9841 = vst [vmem:[#allocation65_spill] sm:$0xff] %v7900_v17 }
 0x66f   : > { %v2875_v45 = vadd.f32 %v7609_v12, %v2789_v28  ;;  %v2791_v29 = vpop.f32.mrb[121].mxu1 }
 0x670   : > { %v2876_v62 = vadd.f32 %v7620_v39, %v2791_v29  ;;  %v2793_v22 = vpop.f32.mrb[122].mxu1 }
 0x671   : > { %v7903_v21 = vadd.f32 %v3026_v60, %v2875_v45  ;;  %v2877_v32 = vadd.f32 %v7625_v46, %v2793_v22  ;;  %v2795_v16 = vpop.f32.mrb[123].mxu1  ;;  %v3203_v45 = vmax.f32 %v3201_v2, %v7900_v17 }
 0x672   : > { %v7908_v3 = vadd.f32 %v3030_v13, %v2876_v62  ;;  %v2878_v28 = vadd.f32 %v7632_v15, %v2795_v16 }
 0x673   : > { %v3167_v10 = vmax.f32 %v3165_v51, %v7903_v21  ;;  %v7915_v57 = vadd.f32 %v3026_v60, %v2877_v32 }
 0x674   : > { %9842 = vst [vmem:[#allocation67_spill] sm:$0xff] %v7908_v3  ;;  %v3204_v29 = vmax.f32 %v3202_v25, %v7908_v3  ;;  %v7919_v22 = vadd.f32 %v3030_v13, %v2878_v28 }
 0x675   : > { %v3168_v36 = vmax.f32 %v3166_v35, %v7915_v57 }
 0x676   : > { %9843 = vst [vmem:[#allocation34_spill] sm:$0xff] %v7919_v22  ;;  %v3205_v62 = vmax.f32 %v3203_v45, %v7919_v22  ;;  %v2799_v16 = vpop.f32.mrb[124].mxu1  ;;  %v2902_v45 = vld [vmem:[%s9324_s4 + $0x1e] sm:$0x3] }
 0x677   : > { %v2879_v6 = vadd.f32 %v7609_v12, %v2799_v16  ;;  %v2801_v51 = vpop.f32.mrb[125].mxu1 }
 0x678   : > { %v2880_v60 = vadd.f32 %v7620_v39, %v2801_v51  ;;  %v2803_v32 = vpop.f32.mrb[126].mxu1 }
 0x679   : > { %v7927_v2 = vadd.f32 %v3034_v8, %v2879_v6  ;;  %v2881_v25 = vadd.f32 %v7625_v46, %v2803_v32  ;;  %v2805_v13 = vpop.f32.mrb[127].mxu1  ;;  %v3042_v32 = vrot.slane %v2902_v45, %v9822_v50 }
 0x67a   : > { %v7930_v28 = vadd.f32 %v3038_v52, %v2880_v60  ;;  %v2882_v35 = vadd.f32 %v7632_v15, %v2805_v13  ;;  %v3046_v13 = vrot.slane %v2902_v45, %v9823_v11 }
 0x67b   : > { %v3169_v58 = vmax.f32 %v3167_v10, %v7927_v2  ;;  %v7937_v16 = vadd.f32 %v3034_v8, %v2881_v25 }
 0x67c   : > { %9844 = vst [vmem:[#allocation23_spill] sm:$0xff] %v7930_v28  ;;  %v3206_v51 = vmax.f32 %v3204_v29, %v7930_v28  ;;  %v7940_v17 = vadd.f32 %v3038_v52, %v2882_v35 }
 0x67d   : > { %v3170_v6 = vmax.f32 %v3168_v36, %v7937_v16 }
 0x67e   : > { %9845 = vst [vmem:[#allocation8_spill] sm:$0xff] %v7940_v17  ;;  %v3207_v60 = vmax.f32 %v3205_v62, %v7940_v17  ;;  %v2809_v31 = vpop.f32.mrb[128].mxu1 }
 0x67f   : > { %v2883_v22 = vadd.f32 %v7609_v12, %v2809_v31  ;;  %v2811_v3 = vpop.f32.mrb[129].mxu1 }
 0x680   : > { %v2884_v10 = vadd.f32 %v7620_v39, %v2811_v3  ;;  %v2813_v8 = vpop.f32.mrb[130].mxu1 }
 0x681   : > { %v7948_v25 = vadd.f32 %v3042_v32, %v2883_v22  ;;  %v2885_v52 = vadd.f32 %v7625_v46, %v2813_v8  ;;  %v2815_v29 = vpop.f32.mrb[131].mxu1 }
 0x682   : > { %v7951_v35 = vadd.f32 %v3046_v13, %v2884_v10  ;;  %v2886_v36 = vadd.f32 %v7632_v15, %v2815_v29 }
 0x683   : > { %v3171_v62 = vmax.f32 %v3169_v58, %v7948_v25  ;;  %v7955_v50 = vadd.f32 %v3042_v32, %v2885_v52 }
 0x684   : > { %v3208_v45 = vmax.f32 %v3206_v51, %v7951_v35  ;;  %v7958_v12 = vadd.f32 %v3046_v13, %v2886_v36 }
 0x685   : > { %v3172_v39 = vmax.f32 %v3170_v6, %v7955_v50 }
 0x686   : > { %v3209_v31 = vmax.f32 %v3207_v60, %v7958_v12 }
 0x687   : > { %v3173_v3 = vmax.f32 %v3171_v62, %v3172_v39 }
 0x688   : > { %v3210_v22 = vmax.f32 %v3208_v45, %v3209_v31 }
 0x689   : > { %v3174_v46 = vrot.slane %v3173_v3, 4 }
 0x68a   : > { %v3211_v8 = vrot.slane %v3210_v22, 4 }
 0x68b   : > { %v3175_v10 = vmax.f32 %v3173_v3, %v3174_v46 }
 0x68c   : > { %v3212_v11 = vmax.f32 %v3210_v22, %v3211_v8 }
 0x68d   : > { %v3176_v17 = vrot.slane %v3175_v10, 2 }
 0x68e   : > { %v3213_v15 = vrot.slane %v3212_v11, 2 }
 0x68f   : > { %v3177_v29 = vmax.f32 %v3175_v10, %v3176_v17 }
 0x690   : > { %v3214_v58 = vmax.f32 %v3212_v11, %v3213_v15 }
 0x691   : > { %v3178_v32 = vrot.slane %v3177_v29, 1 }
 0x692   : > { %v3215_v52 = vrot.slane %v3214_v58, 1 }
 0x693   : > { %v7962_v28 = vmax.f32 %v3177_v29, %v3178_v32 }
 0x694   : > { %v7964_v51 = vmax.f32 %v3214_v58, %v3215_v52 }
 0x695   : > { %v3217_v6 = vsub.f32 %v7642_v54, %v7962_v28  ;;  %v3219_v60 = vsub.f32 %v7655_v23, %v7962_v28  ;;  %v3221_v13 = vsub.f32 %v7644_v49, %v7962_v28  ;;  %v3223_v36 = vsub.f32 %v7659_v18, %v7962_v28 }
 0x696   : > { %v3225_v11 = vsub.f32 %v7675_v1, %v7962_v28  ;;  %v3227_v17 = vsub.f32 %v7685_v56, %v7962_v28  ;;  %v3229_v62 = vsub.f32 %v7696_v9, %v7962_v28  ;;  %v3231_v54 = vsub.f32 %v7706_v24, %v7962_v28 }
 0x697   : > { %v3233_v23 = vsub.f32 %v7717_v47, %v7962_v28  ;;  %v3235_v49 = vsub.f32 %v7727_v43, %v7962_v28  ;;  %v3237_v18 = vsub.f32 %v7738_v53, %v7962_v28  ;;  %v3239_v1 = vsub.f32 %v7748_v37, %v7962_v28 }
 0x698   : > { %v3241_v56 = vsub.f32 %v7759_v19, %v7962_v28  ;;  %v3243_v9 = vsub.f32 %v7769_v48, %v7962_v28  ;;  %v3245_v24 = vsub.f32 %v7780_v55, %v7962_v28  ;;  %v3247_v47 = vsub.f32 %v7790_v26, %v7962_v28 }
 0x699   : > { %v3249_v43 = vsub.f32 %v7801_v30, %v7962_v28  ;;  %v3251_v53 = vsub.f32 %v7811_v4, %v7962_v28  ;;  %v3253_v37 = vsub.f32 %v7822_v63, %v7962_v28  ;;  %v3255_v19 = vsub.f32 %v7832_v44, %v7962_v28 }
 0x69a   : > { %v3257_v48 = vsub.f32 %v7843_v27, %v7962_v28  ;;  %v3259_v55 = vsub.f32 %v7853_v14, %v7962_v28  ;;  %v3261_v26 = vsub.f32 %v7862_v20, %v7962_v28  ;;  %v3263_v30 = vsub.f32 %v7869_v7, %v7962_v28  ;;  %v9860_v27 = vld [vmem:[#allocation67_spill] sm:$0xff]  ;;  %v9863_v7 = vld [vmem:[#allocation8_spill] sm:$0xff] }
 0x69b   : > { %v3265_v4 = vsub.f32 %v7876_v38, %v7962_v28  ;;  %v3267_v63 = vsub.f32 %v7886_v40, %v7962_v28  ;;  %v3269_v44 = vsub.f32 %v7903_v21, %v7962_v28  ;;  %v3281_v46 = vmul.f32 1.442695, %v3217_v6 }
 0x69c   : > { %v3285_v8 = vmul.f32 1.442695, %v3219_v60  ;;  %v3289_v10 = vmul.f32 1.442695, %v3221_v13  ;;  %v3293_v29 = vmul.f32 1.442695, %v3223_v36  ;;  %v9865_v40 = vsub.f32 %v7927_v2, %v7962_v28 }
 0x69d   : > { %5220 = vpow2.f32 %v3281_v46  ;;  %v3297_v32 = vmul.f32 1.442695, %v3225_v11  ;;  %v3301_v52 = vmul.f32 1.442695, %v3227_v17  ;;  %v3305_v31 = vmul.f32 1.442695, %v3229_v62 }
 0x69e   : > { %5222 = vpow2.f32 %v3285_v8  ;;  %v3309_v3 = vmul.f32 1.442695, %v3231_v54  ;;  %v3313_v22 = vmul.f32 1.442695, %v3233_v23  ;;  %v3317_v6 = vmul.f32 1.442695, %v3235_v49 }
 0x69f   : > { %5224 = vpow2.f32 %v3289_v10  ;;  %v3321_v60 = vmul.f32 1.442695, %v3237_v18  ;;  %v3325_v13 = vmul.f32 1.442695, %v3239_v1  ;;  %v3329_v15 = vmul.f32 1.442695, %v3241_v56 }
 0x6a0   : > { %5226 = vpow2.f32 %v3293_v29  ;;  %v3333_v36 = vmul.f32 1.442695, %v3243_v9  ;;  %v3337_v39 = vmul.f32 1.442695, %v3245_v24  ;;  %v3341_v58 = vmul.f32 1.442695, %v3247_v47 }
 0x6a1   : > { %5228 = vpow2.f32 %v3297_v32  ;;  %v3345_v46 = vmul.f32 1.442695, %v3249_v43  ;;  %v3349_v11 = vmul.f32 1.442695, %v3251_v53  ;;  %v3353_v17 = vmul.f32 1.442695, %v3253_v37 }
 0x6a2   : > { %5230 = vpow2.f32 %v3301_v52  ;;  %v3357_v8 = vmul.f32 1.442695, %v3255_v19  ;;  %v9846_v9 = vld [vmem:[#allocation7_spill] sm:$0xff]  ;;  %v9847_v43 = vld [vmem:[#allocation13_spill] sm:$0xff]  ;;  %v9848_v37 = vld [vmem:[#allocation12_spill] sm:$0xff] }
 0x6a3   : > { %5232 = vpow2.f32 %v3305_v31  ;;  %v9849_v31 = vld [vmem:[#allocation15_spill] sm:$0xff]  ;;  %v9850_v29 = vld [vmem:[#allocation16_spill] sm:$0xff]  ;;  %v9851_v52 = vld [vmem:[#allocation17_spill] sm:$0xff] }
 0x6a4   : > { %5234 = vpow2.f32 %v3309_v3  ;;  %v9853_v3 = vld [vmem:[#allocation19_spill] sm:$0xff]  ;;  %v9855_v1 = vld [vmem:[#allocation21_spill] sm:$0xff]  ;;  %v9856_v49 = vld [vmem:[#allocation22_spill] sm:$0xff] }
 0x6a5   : > { %5236 = vpow2.f32 %v3313_v22  ;;  %v9857_v19 = vld [vmem:[#allocation61_spill] sm:$0xff]  ;;  %v9858_v54 = vld [vmem:[#allocation36_spill] sm:$0xff]  ;;  %v9859_v62 = vld [vmem:[#allocation39_spill] sm:$0xff] }
 0x6a6   : > { %5238 = vpow2.f32 %v3317_v6 }
 0x6a7   : > { %v8042_v18 = vpop.eup %5220  ;;  %5240 = vpow2.f32 %v3321_v60 }
 0x6a8   : > { %v8050_v47 = vpop.eup %5222  ;;  %5242 = vpow2.f32 %v3325_v13  ;;  %v9852_v13 = vld [vmem:[#allocation18_spill] sm:$0xff] }
 0x6a9   : > { %v8058_v22 = vpop.eup %5224  ;;  %5244 = vpow2.f32 %v3329_v15  ;;  %v3409_v10 = vadd.f32 %v8050_v47, %v8042_v18  ;;  %v9854_v15 = vld [vmem:[#allocation20_spill] sm:$0xff] }
 0x6aa   : > { %v8066_v60 = vpop.eup %5226  ;;  %5246 = vpow2.f32 %v3333_v36 }
 0x6ab   : > { %v8074_v56 = vpop.eup %5228  ;;  %5248 = vpow2.f32 %v3337_v39  ;;  %v3410_v32 = vadd.f32 %v8058_v22, %v3409_v10  ;;  %v3361_v10 = vmul.f32 1.442695, %v3257_v48  ;;  %v3369_v39 = vmul.f32 1.442695, %v3261_v26 }
 0x6ac   : > { %v8081_v23 = vpop.eup %5230  ;;  %5250 = vpow2.f32 %v3341_v58  ;;  %v3365_v58 = vmul.f32 1.442695, %v3259_v55  ;;  %v9861_v55 = vld [vmem:[#allocation34_spill] sm:$0xff] }
 0x6ad   : > { %v8089_v45 = vpop.eup %5232  ;;  %5252 = vpow2.f32 %v3345_v46  ;;  %v3411_v36 = vadd.f32 %v8066_v60, %v3410_v32  ;;  %v3373_v46 = vmul.f32 1.442695, %v3263_v30 }
 0x6ae   : > { %v8098_v53 = vpop.eup %5234  ;;  %5254 = vpow2.f32 %v3349_v11  ;;  %v9862_v11 = vld [vmem:[#allocation23_spill] sm:$0xff] }
 0x6af   : > { %v8108_v24 = vpop.eup %5236  ;;  %5256 = vpow2.f32 %v3353_v17  ;;  %v3412_v14 = vadd.f32 %v8074_v56, %v3411_v36  ;;  %v3377_v36 = vmul.f32 1.442695, %v3265_v4  ;;  %v9864_v4 = vsub.f32 %v7915_v57, %v7962_v28 }
 0x6b0   : > { %v8115_v20 = vpop.eup %5238  ;;  %5258 = vpow2.f32 %v3357_v8  ;;  %v3381_v8 = vmul.f32 1.442695, %v3267_v63  ;;  %v3393_v63 = vmul.f32 1.442695, %v9865_v40  ;;  %v9867_v57 = vsub.f32 %v7948_v25, %v7962_v28 }
 0x6b1   : > { %v8123_v48 = vpop.eup %5240  ;;  %5260 = vpow2.f32 %v3361_v10  ;;  %v3413_v6 = vadd.f32 %v8081_v23, %v3412_v14  ;;  %v3385_v10 = vmul.f32 1.442695, %v3269_v44  ;;  %v9866_v44 = vsub.f32 %v7937_v16, %v7962_v28 }
 0x6b2   : > { %v8129_v32 = vpop.eup %5242  ;;  %5262 = vpow2.f32 %v3365_v58  ;;  %v3389_v58 = vmul.f32 1.442695, %v9864_v4 }
 0x6b3   : > { %v8134_v30 = vpop.eup %5244  ;;  %5264 = vpow2.f32 %v3369_v39  ;;  %v3414_v17 = vadd.f32 %v8089_v45, %v3413_v6  ;;  %v3397_v6 = vmul.f32 1.442695, %v9866_v44 }
 0x6b4   : > { %v8140_v38 = vpop.eup %5246  ;;  %5266 = vpow2.f32 %v3373_v46 }
 0x6b5   : > { %v8145_v14 = vpop.eup %5248  ;;  %5268 = vpow2.f32 %v3377_v36  ;;  %v3415_v39 = vadd.f32 %v8098_v53, %v3414_v17  ;;  %v3401_v36 = vmul.f32 1.442695, %v9867_v57  ;;  %v9868_v17 = vsub.f32 %v7955_v50, %v7962_v28 }
 0x6b6   : > { %v8151_v21 = vpop.eup %5250  ;;  %5270 = vpow2.f32 %v3381_v8  ;;  %v9871_v50 = vsub.f32 %v7649_v33, %v7964_v51  ;;  %v9874_v33 = vsub.f32 %v7688_v59, %v7964_v51  ;;  %v9878_v59 = vsub.f32 %v9847_v43, %v7964_v51 }
 0x6b7   : > { %v8156_v46 = vpop.eup %5252  ;;  %5272 = vpow2.f32 %v3385_v10  ;;  %v3416_v4 = vadd.f32 %v8108_v24, %v3415_v39  ;;  %v3405_v8 = vmul.f32 1.442695, %v9868_v17  ;;  %v9869_v10 = vsub.f32 %v7647_v0, %v7964_v51 }
 0x6b8   : > { %v8162_v2 = vpop.eup %5254  ;;  %5274 = vpow2.f32 %v3389_v58  ;;  %v9870_v39 = vsub.f32 %v7661_v42, %v7964_v51  ;;  %v3291_v28 = vmul.f32 1.442695, %v9871_v50  ;;  %v9872_v0 = vsub.f32 %v7665_v34, %v7964_v51 }
 0x6b9   : > { %v8167_v40 = vpop.eup %5256  ;;  %5276 = vpow2.f32 %v3393_v63  ;;  %v3417_v16 = vadd.f32 %v8115_v20, %v3416_v4  ;;  %v3283_v44 = vmul.f32 1.442695, %v9869_v10  ;;  %v3303_v42 = vmul.f32 1.442695, %v9874_v33 }
 0x6ba   : > { %v8173_v25 = vpop.eup %5258  ;;  %5278 = vpow2.f32 %v3397_v6  ;;  %v3287_v58 = vmul.f32 1.442695, %v9870_v39  ;;  %v3295_v4 = vmul.f32 1.442695, %v9872_v0  ;;  %v9873_v6 = vsub.f32 %v7678_v41, %v7964_v51 }
 0x6bb   : > { %v8181_v57 = vpop.eup %5260  ;;  %5280 = vpow2.f32 %v3401_v36  ;;  %v3418_v63 = vadd.f32 %v8123_v48, %v3417_v16  ;;  %v9875_v36 = vsub.f32 %v7699_v61, %v7964_v51  ;;  %v9876_v16 = vsub.f32 %v7709_v5, %v7964_v51 }
 0x6bc   : > { %v3299_v17 = vmul.f32 1.442695, %v9873_v6  ;;  %v8190_v10 = vpop.eup %5262  ;;  %5282 = vpow2.f32 %v3405_v8  ;;  %v9877_v8 = vsub.f32 %v9846_v9, %v7964_v51  ;;  %v3319_v6 = vmul.f32 1.442695, %v9878_v59 }
 0x6bd   : > { %v3307_v39 = vmul.f32 1.442695, %v9875_v36  ;;  %v3311_v34 = vmul.f32 1.442695, %v9876_v16  ;;  %v8201_v50 = vpop.eup %5264  ;;  %v3419_v41 = vadd.f32 %v8129_v32, %v3418_v63  ;;  %5284 = vpow2.f32 %v3283_v44 }
 0x6be   : > { %v3315_v0 = vmul.f32 1.442695, %v9877_v8  ;;  %v8210_v33 = vpop.eup %5266  ;;  %5286 = vpow2.f32 %v3287_v58  ;;  %v9880_v59 = vsub.f32 %v9849_v31, %v7964_v51 }
 0x6bf   : > { %v8218_v63 = vpop.eup %5268  ;;  %v3420_v9 = vadd.f32 %v8134_v30, %v3419_v41  ;;  %5288 = vpow2.f32 %v3291_v28 }
 0x6c0   : > { %v8225_v36 = vpop.eup %5270  ;;  %5290 = vpow2.f32 %v3295_v4  ;;  %v9879_v4 = vsub.f32 %v9848_v37, %v7964_v51  ;;  %v3327_v8 = vmul.f32 1.442695, %v9880_v59 }
 0x6c1   : > { %v8233_v41 = vpop.eup %5272  ;;  %v3421_v28 = vadd.f32 %v8140_v38, %v3420_v9  ;;  %5292 = vpow2.f32 %v3299_v17 }
 0x6c2   : > { %v8240_v43 = vpop.eup %5274  ;;  %5294 = vpow2.f32 %v3303_v42  ;;  %v3323_v58 = vmul.f32 1.442695, %v9879_v4 }
 0x6c3   : > { %v8248_v9 = vpop.eup %5276  ;;  %v3422_v17 = vadd.f32 %v8145_v14, %v3421_v28  ;;  %5296 = vpow2.f32 %v3307_v39  ;;  %v9881_v39 = vsub.f32 %v9850_v29, %v7964_v51  ;;  %v9886_v29 = vsub.f32 %v9855_v1, %v7964_v51 }
 0x6c4   : > { %v8256_v26 = vpop.eup %5278  ;;  %5298 = vpow2.f32 %v3311_v34  ;;  %v9882_v34 = vsub.f32 %v9851_v52, %v7964_v51  ;;  %v9885_v52 = vsub.f32 %v9854_v15, %v7964_v51  ;;  %v9889_v1 = vsub.f32 %v9858_v54, %v7964_v51 }
 0x6c5   : > { %v8261_v16 = vpop.eup %5280  ;;  %v3423_v44 = vadd.f32 %v8151_v21, %v3422_v17  ;;  %5300 = vpow2.f32 %v3315_v0  ;;  %v3331_v37 = vmul.f32 1.442695, %v9881_v39  ;;  %v9883_v0 = vsub.f32 %v9852_v13, %v7964_v51 }
 0x6c6   : > { %v8269_v4 = vpop.eup %5282  ;;  %5302 = vpow2.f32 %v3319_v6  ;;  %v3335_v31 = vmul.f32 1.442695, %v9882_v34  ;;  %v9884_v6 = vsub.f32 %v9853_v3, %v7964_v51  ;;  %v3347_v34 = vmul.f32 1.442695, %v9885_v52 }
 0x6c7   : > { %v5285_v59 = vpop.eup %5284  ;;  %v3424_v42 = vadd.f32 %v8156_v46, %v3423_v44  ;;  %5304 = vpow2.f32 %v3323_v58  ;;  %v3339_v17 = vmul.f32 1.442695, %v9883_v0  ;;  %v9887_v3 = vsub.f32 %v9856_v49, %v7964_v51 }
 0x6c8   : > { %v5287_v39 = vpop.eup %5286  ;;  %5306 = vpow2.f32 %v3327_v8  ;;  %v3343_v28 = vmul.f32 1.442695, %v9884_v6  ;;  %v3351_v8 = vmul.f32 1.442695, %v9886_v29  ;;  %v3363_v29 = vmul.f32 1.442695, %v9889_v1 }
 0x6c9   : > { %v5289_v5 = vpop.eup %5288  ;;  %v3425_v44 = vadd.f32 %v8162_v2, %v3424_v42  ;;  %5308 = vpow2.f32 %v3331_v37  ;;  %v3446_v58 = vadd.f32 %v5287_v39, %v5285_v59  ;;  %v3484_v13 = vpack.c.bf16 %v5287_v39, %v5285_v59 }
 0x6ca   : > { %v5291_v0 = vpop.eup %5290  ;;  %5310 = vpow2.f32 %v3335_v31  ;;  %v3355_v6 = vmul.f32 1.442695, %v9887_v3  ;;  %v9888_v31 = vsub.f32 %v9857_v19, %v7964_v51  ;;  %v9890_v49 = vpack.c.bf16 %v8050_v47, %v8042_v18 }
 0x6cb   : > { %v5293_v61 = vpop.eup %5292  ;;  %v3426_v15 = vadd.f32 %v8167_v40, %v3425_v44  ;;  %5312 = vpow2.f32 %v3339_v17  ;;  %v3447_v52 = vadd.f32 %v5289_v5, %v3446_v58  ;;  %3515 = vmatprep.subr.bf16.mxu0 %v3484_v13  ;;  %v3486_v42 = vpack.c.bf16 %v5291_v0, %v5289_v5 }
 0x6cc   : > { %v5295_v37 = vpop.eup %5294  ;;  %5314 = vpow2.f32 %v3343_v28  ;;  %v3359_v59 = vmul.f32 1.442695, %v9888_v31  ;;  %3516 = vmatpush1.bf16.msra.mxu0 %v9890_v49  ;;  %v9891_v19 = vsub.f32 %v9859_v62, %v7964_v51 }
 0x6cd   : > { %v5297_v39 = vpop.eup %5296  ;;  %v3427_v17 = vadd.f32 %v8173_v25, %v3426_v15  ;;  %5316 = vpow2.f32 %v3347_v34  ;;  %v3448_v44 = vadd.f32 %v5291_v0, %v3447_v52  ;;  %3517 = vmatprep.subr.bf16.mxu0 %v3486_v42  ;;  %v3488_v5 = vpack.c.bf16 %v5295_v37, %v5293_v61 }
 0x6ce   : > { %v5299_v28 = vpop.eup %5298  ;;  %5318 = vpow2.f32 %v3351_v8  ;;  %v3367_v58 = vmul.f32 1.442695, %v9891_v19  ;;  %v9892_v34 = vpack.c.bf16 %v8066_v60, %v8058_v22  ;;  %v9894_v60 = vsub.f32 %v9861_v55, %v7964_v51 }
 0x6cf   : > { %v5301_v13 = vpop.eup %5300  ;;  %v3428_v54 = vadd.f32 %v8181_v57, %v3427_v17  ;;  %5320 = vpow2.f32 %v3355_v6  ;;  %v3449_v3 = vadd.f32 %v5293_v61, %v3448_v44  ;;  %v3490_v18 = vpack.c.bf16 %v5299_v28, %v5297_v39 }
 0x6d0   : > { %v5303_v47 = vpop.eup %5302  ;;  %5322 = vpow2.f32 %v3359_v59  ;;  %3518 = vmatpush1.bf16.msra.mxu0 %v9892_v34  ;;  %v9893_v61 = vsub.f32 %v9860_v27, %v7964_v51  ;;  %v3391_v49 = vmul.f32 1.442695, %v9894_v60  ;;  %v9896_v44 = vsub.f32 %v9862_v11, %v7964_v51 }
 0x6d1   : > { %v5305_v0 = vpop.eup %5304  ;;  %v3429_v15 = vadd.f32 %v8190_v10, %v3428_v54  ;;  %5324 = vpow2.f32 %v3363_v29  ;;  %v3450_v8 = vadd.f32 %v5295_v37, %v3449_v3  ;;  %3519 = vmatprep.subr.bf16.mxu0 %v3488_v5  ;;  %v3492_v62 = vpack.c.bf16 %v5303_v47, %v5301_v13 }
 0x6d2   : > { %v5307_v52 = vpop.eup %5306  ;;  %5326 = vpow2.f32 %v3367_v58  ;;  %v3387_v31 = vmul.f32 1.442695, %v9893_v61  ;;  %v9895_v37 = vpack.c.bf16 %v8081_v23, %v8074_v56  ;;  %v3395_v27 = vmul.f32 1.442695, %v9896_v44  ;;  %v9903_v44 = vld [vmem:[#allocation41_spill] sm:$0xff] }
 0x6d3   : > { %v5309_v42 = vpop.eup %5308  ;;  %v3430_v6 = vadd.f32 %v8201_v50, %v3429_v15  ;;  %v3451_v59 = vadd.f32 %v5297_v39, %v3450_v8  ;;  %v3494_v1 = vpack.c.bf16 %v5307_v52, %v5305_v0  ;;  %v9897_v55 = vsub.f32 %v9863_v7, %v7964_v51 }
 0x6d4   : > { %v5311_v22 = vpop.eup %5310  ;;  %3520 = vmatpush1.bf16.msra.mxu0 %v9895_v37  ;;  %v9898_v23 = vsub.f32 %v7951_v35, %v7964_v51  ;;  %5328 = vpow2.f32 %v3387_v31  ;;  %v9900_v7 = vpack.c.bf16 %v8098_v53, %v8089_v45  ;;  %v9901_v45 = vpack.c.bf16 %v8115_v20, %v8108_v24 }
 0x6d5   : > { %v8322_v29 = vpop.eup %5312  ;;  %v3431_v17 = vadd.f32 %v8210_v33, %v3430_v6  ;;  %v3452_v5 = vadd.f32 %v5299_v28, %v3451_v59  ;;  %3521 = vmatprep.subr.bf16.mxu0 %v3490_v18  ;;  %v3496_v39 = vpack.c.bf16 %v5311_v22, %v5309_v42  ;;  %v3399_v58 = vmul.f32 1.442695, %v9897_v55  ;;  %v9904_v55 = vld [vmem:[#allocation63_spill] sm:$0xff] }
 0x6d6   : > { %v5315_v19 = vpop.eup %5314  ;;  %v3403_v56 = vmul.f32 1.442695, %v9898_v23  ;;  %5330 = vpow2.f32 %v3391_v49  ;;  %v9899_v18 = vsub.f32 %v7958_v12, %v7964_v51  ;;  %v9905_v24 = vpack.c.bf16 %v8129_v32, %v8123_v48 }
 0x6d7   : > { %v8334_v54 = vpop.eup %5316  ;;  %v3432_v3 = vadd.f32 %v8218_v63, %v3431_v17  ;;  %v3453_v34 = vadd.f32 %v5301_v13, %v3452_v5  ;;  %v3498_v11 = vpack.c.bf16 %v5315_v19, %v8322_v29  ;;  %5332 = vpow2.f32 %v3395_v27 }
 0x6d8   : > { %v5319_v28 = vpop.eup %5318  ;;  %v3407_v15 = vmul.f32 1.442695, %v9899_v18  ;;  %3522 = vmatpush1.bf16.msra.mxu0 %v9900_v7  ;;  %5334 = vpow2.f32 %v3399_v58  ;;  %v3264_v27 = vsub.f32 %v9903_v44, %v7964_v51  ;;  %v3266_v58 = vsub.f32 %v9904_v55, %v7964_v51 }
 0x6d9   : > { %v5321_v35 = vpop.eup %5320  ;;  %v3433_v8 = vadd.f32 %v8225_v36, %v3432_v3  ;;  %v3454_v6 = vadd.f32 %v5303_v47, %v3453_v34  ;;  %3523 = vmatprep.subr.bf16.mxu0 %v3492_v62  ;;  %v3500_v13 = vpack.c.bf16 %v5319_v28, %v8334_v54  ;;  %5336 = vpow2.f32 %v3403_v56  ;;  %v9902_v47 = vld [vmem:[#allocation58_spill] sm:$0xff]  ;;  %v9906_v3 = vld [vmem:[#allocation65_spill] sm:$0xff] }
 0x6da   : > { %v5323_v61 = vpop.eup %5322  ;;  %5338 = vpow2.f32 %v3407_v15  ;;  %v3262_v62 = vsub.f32 %v9902_v47, %v7964_v51  ;;  %v3268_v34 = vsub.f32 %v9906_v3, %v7964_v51  ;;  %v3375_v18 = vmul.f32 1.442695, %v3264_v27 }
 0x6db   : > { %v5325_v31 = vpop.eup %5324  ;;  %v3434_v59 = vadd.f32 %v8233_v41, %v3433_v8  ;;  %v3455_v12 = vadd.f32 %v5305_v0, %v3454_v6  ;;  %v3502_v60 = vpack.c.bf16 %v5323_v61, %v5321_v35  ;;  %v3379_v48 = vmul.f32 1.442695, %v3266_v58 }
 0x6dc   : > { %v5327_v49 = vpop.eup %5326  ;;  %3524 = vmatpush1.bf16.msra.mxu0 %v9901_v45  ;;  %v3371_v56 = vmul.f32 1.442695, %v3262_v62  ;;  %v9907_v32 = vpack.c.bf16 %v8140_v38, %v8134_v30  ;;  %v3383_v45 = vmul.f32 1.442695, %v3268_v34  ;;  %v9908_v47 = vpack.c.bf16 %v8151_v21, %v8145_v14 }
 0x6dd   : > { %v3435_v53 = vadd.f32 %v8240_v43, %v3434_v59  ;;  %v3456_v37 = vadd.f32 %v5307_v52, %v3455_v12  ;;  %3525 = vmatprep.subr.bf16.mxu0 %v3494_v1  ;;  %v3504_v17 = vpack.c.bf16 %v5327_v49, %v5325_v31 }
 0x6de   : > { %v5329_v20 = vpop.eup %5328  ;;  %5340 = vpow2.f32 %v3371_v56  ;;  %v9921_v56 = vpack.c.bf16 %v8269_v4, %v8261_v16 }
 0x6df   : > { %v3436_v0 = vadd.f32 %v8248_v9, %v3435_v53  ;;  %v3457_v5 = vadd.f32 %v5309_v42, %v3456_v37  ;;  %5342 = vpow2.f32 %v3375_v18 }
 0x6e0   : > { %3526 = vmatpush1.bf16.msra.mxu0 %v9905_v24  ;;  %v5331_v1 = vpop.eup %5330  ;;  %5344 = vpow2.f32 %v3379_v48  ;;  %v9920_v24 = vld [vmem:[#allocation57_spill] sm:$0xff]  ;;  %v9926_v48 = vld [vmem:[#allocation68_spill] sm:$0xff] }
 0x6e1   : > { %v3437_v23 = vadd.f32 %v8256_v26, %v3436_v0  ;;  %v3458_v52 = vadd.f32 %v5311_v22, %v3457_v5  ;;  %3527 = vmatprep.subr.bf16.mxu0 %v3496_v39  ;;  %v5333_v15 = vpop.eup %5332  ;;  %v3510_v8 = vpack.c.bf16 %v5331_v1, %v5329_v20  ;;  %5346 = vpow2.f32 %v3383_v45  ;;  %v9915_v0 = vld [vmem:[#allocation60_spill] sm:$0xff]  ;;  %v9916_v5 = vld [vmem:[#allocation10_spill] sm:$0xff] }
 0x6e2   : > { %v5335_v6 = vpop.eup %5334 }
 0x6e3   : > { %v3438_v42 = vadd.f32 %v8261_v16, %v3437_v23  ;;  %v3459_v7 = vadd.f32 %v8322_v29, %v3458_v52  ;;  %v5337_v59 = vpop.eup %5336  ;;  %v3512_v51 = vpack.c.bf16 %v5335_v6, %v5333_v15 }
 0x6e4   : > { %3528 = vmatpush1.bf16.msra.mxu0 %v9907_v32  ;;  %v5339_v12 = vpop.eup %5338  ;;  %v9927_v32 = vld [vmem:[#allocation35_spill] sm:$0xff] }
 0x6e5   : > { %v8370_v22 = vadd.f32 %v8269_v4, %v3438_v42  ;;  %v3460_v39 = vadd.f32 %v5315_v19, %v3459_v7  ;;  %3529 = vmatprep.subr.bf16.mxu0 %v3498_v11  ;;  %v3514_v53 = vpack.c.bf16 %v5339_v12, %v5337_v59  ;;  %v9909_v19 = vpack.c.bf16 %v8162_v2, %v8156_v46  ;;  %v9923_v7 = vld [vmem:[#allocation62_spill] sm:$0xff] }
 0x6e7   : > { %v3461_v29 = vadd.f32 %v8334_v54, %v3460_v39  ;;  %v9910_v54 = vpack.c.bf16 %v8173_v25, %v8167_v40  ;;  %v9929_v39 = vld [vmem:[#allocation40_spill] sm:$0xff] }
 0x6e8   : > { %3530 = vmatpush1.bf16.msra.mxu0 %v9908_v47  ;;  %v5341_v62 = vpop.eup %5340 }
 0x6e9   : > { %v3462_v30 = vadd.f32 %v5319_v28, %v3461_v29  ;;  %3531 = vmatprep.subr.bf16.mxu0 %v3500_v13  ;;  %v5343_v44 = vpop.eup %5342 }
 0x6ea   : > { %v5345_v21 = vpop.eup %5344  ;;  %v3506_v13 = vpack.c.bf16 %v5343_v44, %v5341_v62 }
 0x6eb   : > { %v3463_v38 = vadd.f32 %v5321_v35, %v3462_v30  ;;  %v5347_v27 = vpop.eup %5346  ;;  %v9911_v35 = vpack.c.bf16 %v8190_v10, %v8181_v57  ;;  %v9914_v57 = vpack.c.bf16 %v8240_v43, %v8233_v41 }
 0x6ec   : > { %3532 = vmatpush1.bf16.msra.mxu0 %v9909_v19 }
 0x6ed   : > { %v3464_v11 = vadd.f32 %v5323_v61, %v3463_v38  ;;  %3533 = vmatprep.subr.bf16.mxu0 %v3502_v60  ;;  %v3508_v61 = vpack.c.bf16 %v5347_v27, %v5345_v21  ;;  %v9913_v60 = vpack.c.bf16 %v8225_v36, %v8218_v63  ;;  %v9918_v63 = vpack.c.bf16 %v8256_v26, %v8248_v9  ;;  %v9919_v36 = vld [vmem:[#allocation50_spill] sm:$0xff]  ;;  %v3576_v9 = vpop.trf.xlu1 }
 0x6ee   : > { %v9922_v26 = vmov 0  }
 0x6ef   : > { %v3465_v37 = vadd.f32 %v5325_v31, %v3464_v11  ;;  %v9912_v31 = vpack.c.bf16 %v8210_v33, %v8201_v50  ;;  %v430_v50 = vadd.f32 %v9916_v5, %v9915_v0  ;;  %v9917_v33 = vld [vmem:[#allocation11_spill] sm:$0xff]  ;;  %v8480_v5 = vld [vmem:[%s9323_s3 + $0x78] sm:$0xff] }
 0x6f0   : > { %3534 = vmatpush1.bf16.msra.mxu0 %v9910_v54  ;;  %v432_v55 = vadd.f32 %v9917_v33, %v9915_v0 }
 0x6f1   : > { %v3466_v14 = vadd.f32 %v5327_v49, %v3465_v37  ;;  %3535 = vmatprep.subr.bf16.mxu0 %v3504_v17  ;;  %v3562_v43 = vpack.c.bf16 %v430_v50, %v430_v50  ;;  %v3577_v3 = vpop.trf.xlu1 }
 0x6f2   : > { %v3563_v41 = vpack.c.bf16 %v432_v55, %v432_v55  ;;  %v9934_v55 = vld [vmem:[#allocation31_spill] sm:$0xff] }
 0x6f3   : > { %v3467_v28 = vadd.f32 %v5341_v62, %v3466_v14 }
 0x6f4   : > { %3536 = vmatpush1.bf16.msra.mxu0 %v9911_v35 }
 0x6f5   : > { %v3468_v46 = vadd.f32 %v5343_v44, %v3467_v28  ;;  %3537 = vmatprep.subr.bf16.mxu0 %v3506_v13  ;;  %v3578_v16 = vpop.trf.xlu1 }
 0x6f7   : > { %v3469_v2 = vadd.f32 %v5345_v21, %v3468_v46 }
 0x6f8   : > { %3538 = vmatpush1.bf16.msra.mxu0 %v9912_v31 }
 0x6f9   : > { %v3470_v40 = vadd.f32 %v5347_v27, %v3469_v2  ;;  %3539 = vmatprep.subr.bf16.mxu0 %v3508_v61  ;;  %v3579_v4 = vpop.trf.xlu1 }
 0x6fb   : > { %v3471_v25 = vadd.f32 %v5329_v20, %v3470_v40  ;;  %v466_v20 = vadd.f32 %v9920_v24, %v9919_v36  ;;  %v8457_v40 = vld [vmem:[%s9323_s3 + $0x60] sm:$0xff] }
 0x6fc   : > { %3540 = vmatpush1.bf16.msra.mxu0 %v9913_v60  ;;  %v3917_v60 = vld [vmem:[%s9324_s4 + $0x2] sm:$0x3] }
 0x6fd   : > { %v3472_v49 = vadd.f32 %v5331_v1, %v3471_v25  ;;  %3541 = vmatprep.subr.bf16.mxu0 %v3510_v8  ;;  %v2537_v52 = vpack.c.bf16 %v466_v20, %v466_v20  ;;  %v3649_v1 = vsel %vm561_vm1, %v3562_v43, 0  ;;  %v3580_v34 = vpop.trf.xlu1  ;;  %v9924_v8 = vld [vmem:[#allocation64_spill] sm:$0xff]  ;;  %v3916_v25 = vld [vmem:[%s9324_s4] sm:$0x3]  ;;  %v3963_v36 = vrot.slane %v3917_v60, %v9934_v55 }
 0x6ff   : > { %v3473_v17 = vadd.f32 %v5333_v15, %v3472_v49  ;;  %v8468_v49 = vld [vmem:[%s9323_s3 + $0x68] sm:$0xff] }
 0x700   : > { %3542 = vmatpush1.bf16.msra.mxu0 %v9914_v57 }
 0x701   : > { %v3474_v10 = vadd.f32 %v5335_v6, %v3473_v17  ;;  %3543 = vmatprep.subr.bf16.mxu0 %v3512_v51  ;;  %v3581_v18 = vpop.trf.xlu1  ;;  %v9925_v6 = vld [vmem:[#allocation66_spill] sm:$0xff]  ;;  %v8473_v17 = vld [vmem:[%s9323_s3 + $0x70] sm:$0xff] }
 0x702   : > { %v9930_v51 = vld [vmem:[#allocation42_spill] sm:$0xff] }
 0x703   : > { %v3475_v58 = vadd.f32 %v5337_v59, %v3474_v10  ;;  %v9928_v59 = vld [vmem:[#allocation37_spill] sm:$0xff] }
 0x704   : > { %3544 = vmatpush1.bf16.msra.mxu0 %v9918_v63  ;;  %v9933_v10 = vld [vmem:[#allocation29_spill] sm:$0xff] }
 0x705   : > { %v3476_v23 = vadd.f32 %v5339_v12, %v3475_v58  ;;  %3545 = vmatprep.subr.bf16.mxu0 %v3514_v53  ;;  %v3582_v15 = vpop.trf.xlu1  ;;  %v3440_v12 = vrot.slane %v8370_v22, 4  ;;  %v3951_v0 = vrot.slane %v3916_v25, %v9933_v10  ;;  %v3959_v50 = vrot.slane %v3917_v60, %v9933_v10 }
 0x706   : > { %v3955_v58 = vrot.slane %v3916_v25, %v9934_v55 }
 0x707   : > { %v3477_v45 = vrot.slane %v3476_v23, 4  ;;  %v3441_v29 = vadd.f32 %v3440_v12, %v8370_v22 }
 0x708   : > { %3546 = vmatpush1.bf16.msra.mxu0 %v9921_v56 }
 0x709   : > { %4866 = vmatprep.subr.msk.bf16.mxu0 %vm561_vm1, %v3563_v41  ;;  %v3583_v42 = vpop.trf.xlu1  ;;  %v3478_v53 = vadd.f32 %v3477_v45, %v3476_v23  ;;  %v3442_v47 = vrot.slane %v3441_v29, 2 }
 0x70b   : > { %3548 = vmatmul.mubr.bf16.vlgmr.msra.gmra.mrb[92].mxu0 %v2537_v52  ;;  %v3479_v30 = vrot.slane %v3478_v53, 2  ;;  %v3443_v38 = vadd.f32 %v3442_v47, %v3441_v29 }
 0x70c   : > { %3655 = vmatpush1.bf16.msra.mxu0 %v3649_v1  ;;  %3686 = vmatprep.mubr.bf16.mxu0 %v9922_v26 }
 0x70d   : > { %v3480_v19 = vadd.f32 %v3479_v30, %v3478_v53  ;;  %v3444_v11 = vrot.slane %v3443_v38, 1 }
 0x70f   : > { %v3481_v62 = vrot.slane %v3480_v19, 1  ;;  %v3445_v37 = vadd.f32 %v3444_v11, %v3443_v38 }
 0x711   : > { %v3482_v44 = vadd.f32 %v3481_v62, %v3480_v19  ;;  %5348 = vrcp.f32 %v3445_v37  ;;  %v3919_v37 = vld [vmem:[%s9324_s4 + $0x6] sm:$0x3] }
 0x713   : > { %4867 = vmatmul.mubr.msk.bf16.vlgmr.msra.gmra.mrb[96].mxu0 %vm512_vm2, %v3576_v9  ;;  %5350 = vrcp.f32 %v3482_v44 }
 0x714   : > { %3696 = vmatprep.mubr.bf16.mxu0 %v9922_v26 }
 0x71b   : > { %4868 = vmatmul.mubr.msk.bf16.gmra.mrb[100].mxu0 %vm512_vm2, %v3577_v3  ;;  %v5349_v54 = vpop.eup %5348 }
 0x71c   : > { %3706 = vmatprep.mubr.bf16.mxu0 %v9922_v26 }
 0x71d   : > { %v5351_v21 = vpop.eup %5350 }
 0x723   : > { %4869 = vmatmul.mubr.msk.bf16.gmra.mrb[104].mxu0 %vm512_vm2, %v3578_v16 }
 0x724   : > { %3716 = vmatprep.mubr.bf16.mxu0 %v9922_v26 }
 0x72b   : > { %4870 = vmatmul.mubr.msk.bf16.gmra.mrb[108].mxu0 %vm512_vm2, %v3579_v4 }
 0x72c   : > { %3726 = vmatprep.mubr.bf16.mxu0 %v9922_v26 }
 0x733   : > { %4871 = vmatmul.mubr.msk.bf16.gmra.mrb[112].mxu0 %vm512_vm2, %v3580_v34 }
 0x734   : > { %3736 = vmatprep.mubr.bf16.mxu0 %v9922_v26 }
 0x73b   : > { %4872 = vmatmul.mubr.msk.bf16.gmra.mrb[116].mxu0 %vm512_vm2, %v3581_v18  ;;  %v3918_v18 = vld [vmem:[%s9324_s4 + $0x4] sm:$0x3] }
 0x73c   : > { %3746 = vmatprep.mubr.bf16.mxu0 %v9922_v26  ;;  %v3971_v12 = vrot.slane %v3918_v18, %v9934_v55 }
 0x743   : > { %4873 = vmatmul.mubr.msk.bf16.gmra.mrb[120].mxu0 %vm512_vm2, %v3582_v15 }
 0x744   : > { %3756 = vmatprep.mubr.bf16.mxu0 %v9922_v26 }
 0x74b   : > { %4874 = vmatmul.mubr.msk.bf16.gmra.mrb[124].mxu0 %vm512_vm2, %v3583_v42 }
 0x74c   : > { %3766 = vmatprep.mubr.bf16.mxu0 %v9922_v26 }
 0x753   : > { %4875 = vmatmul.mubr.msk.bf16.gmra.mrb[128].mxu0 %vm512_vm2, %v9923_v7 }
 0x754   : > { %3776 = vmatprep.mubr.bf16.mxu0 %v9922_v26 }
 0x75b   : > { %4876 = vmatmul.mubr.msk.bf16.gmra.mrb[132].mxu0 %vm512_vm2, %v9924_v8 }
 0x75c   : > { %3786 = vmatprep.mubr.bf16.mxu0 %v9922_v26 }
 0x763   : > { %4877 = vmatmul.mubr.msk.bf16.gmra.mrb[136].mxu0 %vm512_vm2, %v9925_v6 }
 0x764   : > { %3796 = vmatprep.mubr.bf16.mxu0 %v9922_v26 }
 0x76b   : > { %4878 = vmatmul.mubr.msk.bf16.gmra.mrb[140].mxu0 %vm512_vm2, %v9926_v48 }
 0x76c   : > { %3806 = vmatprep.mubr.bf16.mxu0 %v9922_v26 }
 0x773   : > { %4879 = vmatmul.mubr.msk.bf16.gmra.mrb[144].mxu0 %vm512_vm2, %v9927_v32 }
 0x774   : > { %3816 = vmatprep.mubr.bf16.mxu0 %v9922_v26 }
 0x77b   : > { %4880 = vmatmul.mubr.msk.bf16.gmra.mrb[148].mxu0 %vm512_vm2, %v9928_v59  ;;  %v3967_v59 = vrot.slane %v3918_v18, %v9933_v10 }
 0x77c   : > { %3826 = vmatprep.mubr.bf16.mxu0 %v9922_v26 }
 0x783   : > { %4881 = vmatmul.mubr.msk.bf16.gmra.mrb[152].mxu0 %vm512_vm2, %v9929_v39 }
 0x784   : > { %3836 = vmatprep.mubr.bf16.mxu0 %v9922_v26 }
 0x78b   : > { %4882 = vmatmul.mubr.msk.bf16.gmra.mrb[156].mxu0 %vm512_vm2, %v9930_v51 }
 0x7de   : > { %v3549_v14 = vpop.f32.mrb[92].mxu0 }
 0x7df   : > { %v8450_v28 = vmul.f32 %v5349_v54, %v3549_v14  ;;  %v3551_v13 = vpop.f32.mrb[93].mxu0 }
 0x7e0   : > { %v8452_v27 = vmul.f32 %v5351_v21, %v3551_v13  ;;  %v3553_v22 = vpop.f32.mrb[94].mxu0 }
 0x7e1   : > { %9931 = vst [vmem:[#allocation9_spill] sm:$0xff] %v8450_v28  ;;  %v3554_v35 = vpop.f32.mrb[95].mxu0  ;;  %v3975_v22 = vrot.slane %v3919_v37, %v9933_v10 }
 0x7e2   : > { %9932 = vst [vmem:[#allocation43_spill] sm:$0xff] %v8452_v27 }
 0x7e6   : > { %v3688_v46 = vpop.f32.mrb[96].mxu0 }
 0x7e7   : > { %v3690_v2 = vpop.f32.mrb[97].mxu0  ;;  %v3852_v57 = vadd.f32 %v8457_v40, %v3688_v46 }
 0x7e8   : > { %v3692_v61 = vpop.f32.mrb[98].mxu0  ;;  %v3853_v33 = vadd.f32 %v8468_v49, %v3690_v2  ;;  %v3979_v2 = vrot.slane %v3919_v37, %v9934_v55 }
 0x7e9   : > { %v3694_v31 = vpop.f32.mrb[99].mxu0  ;;  %v3854_v24 = vadd.f32 %v8473_v17, %v3692_v61  ;;  %v8490_v52 = vadd.f32 %v3951_v0, %v3852_v57 }
 0x7ea   : > { %v3855_v43 = vadd.f32 %v8480_v5, %v3694_v31  ;;  %v8495_v16 = vadd.f32 %v3955_v58, %v3853_v33 }
 0x7eb   : > { %v8503_v15 = vadd.f32 %v3951_v0, %v3854_v24 }
 0x7ec   : > { %v8509_v8 = vadd.f32 %v3955_v58, %v3855_v43 }
 0x7ee   : > { %v3698_v63 = vpop.f32.mrb[100].mxu0 }
 0x7ef   : > { %v3856_v20 = vadd.f32 %v8457_v40, %v3698_v63  ;;  %v3700_v23 = vpop.f32.mrb[101].mxu0  ;;  %v3920_v63 = vld [vmem:[%s9324_s4 + $0x8] sm:$0x3] }
 0x7f0   : > { %v3857_v41 = vadd.f32 %v8468_v49, %v3700_v23  ;;  %v3702_v56 = vpop.f32.mrb[102].mxu0 }
 0x7f1   : > { %v8492_v1 = vadd.f32 %v3959_v50, %v3856_v20  ;;  %v3858_v9 = vadd.f32 %v8473_v17, %v3702_v56  ;;  %v3704_v3 = vpop.f32.mrb[103].mxu0 }
 0x7f2   : > { %v8497_v4 = vadd.f32 %v3963_v36, %v3857_v41  ;;  %v3859_v34 = vadd.f32 %v8480_v5, %v3704_v3  ;;  %v3983_v41 = vrot.slane %v3920_v63, %v9933_v10  ;;  %v3987_v3 = vrot.slane %v3920_v63, %v9934_v55 }
 0x7f3   : > { %v4172_v42 = vmax.f32 %v8490_v52, %v8492_v1  ;;  %v8507_v7 = vadd.f32 %v3959_v50, %v3858_v9 }
 0x7f4   : > { %v4209_v6 = vmax.f32 %v8495_v16, %v8497_v4  ;;  %v8513_v48 = vadd.f32 %v3963_v36, %v3859_v34 }
 0x7f5   : > { %v4173_v32 = vmax.f32 %v8503_v15, %v8507_v7 }
 0x7f6   : > { %v4210_v39 = vmax.f32 %v8509_v8, %v8513_v48  ;;  %v3708_v51 = vpop.f32.mrb[104].mxu0 }
 0x7f7   : > { %v3860_v45 = vadd.f32 %v8457_v40, %v3708_v51  ;;  %v3710_v29 = vpop.f32.mrb[105].mxu0 }
 0x7f8   : > { %v3861_v53 = vadd.f32 %v8468_v49, %v3710_v29  ;;  %v3712_v47 = vpop.f32.mrb[106].mxu0 }
 0x7f9   : > { %v8523_v30 = vadd.f32 %v3967_v59, %v3860_v45  ;;  %v3862_v38 = vadd.f32 %v8473_v17, %v3712_v47  ;;  %v3714_v19 = vpop.f32.mrb[107].mxu0  ;;  %v3921_v45 = vld [vmem:[%s9324_s4 + $0xa] sm:$0x3] }
 0x7fa   : > { %v8526_v11 = vadd.f32 %v3971_v12, %v3861_v53  ;;  %v3863_v62 = vadd.f32 %v8480_v5, %v3714_v19 }
 0x7fb   : > { %v4174_v44 = vmax.f32 %v4172_v42, %v8523_v30  ;;  %v8533_v54 = vadd.f32 %v3967_v59, %v3862_v38 }
 0x7fc   : > { %v4211_v14 = vmax.f32 %v4209_v6, %v8526_v11  ;;  %v8536_v21 = vadd.f32 %v3971_v12, %v3863_v62  ;;  %v3991_v62 = vrot.slane %v3921_v45, %v9933_v10 }
 0x7fd   : > { %v4175_v13 = vmax.f32 %v4173_v32, %v8533_v54 }
 0x7fe   : > { %v4212_v35 = vmax.f32 %v4210_v39, %v8536_v21  ;;  %v3718_v46 = vpop.f32.mrb[108].mxu0 }
 0x7ff   : > { %v3864_v61 = vadd.f32 %v8457_v40, %v3718_v46  ;;  %v3720_v31 = vpop.f32.mrb[109].mxu0 }
 0x800   : > { %v3865_v25 = vadd.f32 %v8468_v49, %v3720_v31  ;;  %v3722_v60 = vpop.f32.mrb[110].mxu0 }
 0x801   : > { %v8544_v57 = vadd.f32 %v3975_v22, %v3864_v61  ;;  %v3866_v0 = vadd.f32 %v8473_v17, %v3722_v60  ;;  %v3724_v50 = vpop.f32.mrb[111].mxu0 }
 0x802   : > { %v8547_v33 = vadd.f32 %v3979_v2, %v3865_v25  ;;  %v3867_v58 = vadd.f32 %v8480_v5, %v3724_v50 }
 0x803   : > { %v4176_v36 = vmax.f32 %v4174_v44, %v8544_v57  ;;  %v8554_v24 = vadd.f32 %v3975_v22, %v3866_v0  ;;  %v3922_v0 = vld [vmem:[%s9324_s4 + $0xc] sm:$0x3] }
 0x804   : > { %v4213_v20 = vmax.f32 %v4211_v14, %v8547_v33  ;;  %v8557_v23 = vadd.f32 %v3979_v2, %v3867_v58  ;;  %v3995_v14 = vrot.slane %v3921_v45, %v9934_v55 }
 0x805   : > { %v4177_v43 = vmax.f32 %v4175_v13, %v8554_v24 }
 0x806   : > { %v4214_v56 = vmax.f32 %v4212_v35, %v8557_v23  ;;  %v3728_v9 = vpop.f32.mrb[112].mxu0 }
 0x807   : > { %v3868_v34 = vadd.f32 %v8457_v40, %v3728_v9  ;;  %v3730_v18 = vpop.f32.mrb[113].mxu0  ;;  %v4003_v9 = vrot.slane %v3922_v0, %v9934_v55 }
 0x808   : > { %v3869_v42 = vadd.f32 %v8468_v49, %v3730_v18  ;;  %v3732_v6 = vpop.f32.mrb[114].mxu0 }
 0x809   : > { %v8565_v32 = vadd.f32 %v3983_v41, %v3868_v34  ;;  %v3870_v59 = vadd.f32 %v8473_v17, %v3732_v6  ;;  %v3734_v39 = vpop.f32.mrb[115].mxu0 }
 0x80a   : > { %v8568_v51 = vadd.f32 %v3987_v3, %v3869_v42  ;;  %v3871_v12 = vadd.f32 %v8480_v5, %v3734_v39 }
 0x80b   : > { %v4178_v29 = vmax.f32 %v4176_v36, %v8565_v32  ;;  %v8575_v53 = vadd.f32 %v3983_v41, %v3870_v59 }
 0x80c   : > { %9935 = vst [vmem:[#allocation54_spill] sm:$0xff] %v8568_v51  ;;  %v4215_v47 = vmax.f32 %v4213_v20, %v8568_v51  ;;  %v8578_v38 = vadd.f32 %v3987_v3, %v3871_v12 }
 0x80d   : > { %v4179_v19 = vmax.f32 %v4177_v43, %v8575_v53  ;;  %v3999_v43 = vrot.slane %v3922_v0, %v9933_v10 }
 0x80e   : > { %9936 = vst [vmem:[#allocation24_spill] sm:$0xff] %v8578_v38  ;;  %v4216_v37 = vmax.f32 %v4214_v56, %v8578_v38  ;;  %v3738_v44 = vpop.f32.mrb[116].mxu0 }
 0x80f   : > { %v3872_v13 = vadd.f32 %v8457_v40, %v3738_v44  ;;  %v3740_v22 = vpop.f32.mrb[117].mxu0 }
 0x810   : > { %v3873_v35 = vadd.f32 %v8468_v49, %v3740_v22  ;;  %v3742_v46 = vpop.f32.mrb[118].mxu0 }
 0x811   : > { %v8586_v2 = vadd.f32 %v3991_v62, %v3872_v13  ;;  %v3874_v61 = vadd.f32 %v8473_v17, %v3742_v46  ;;  %v3744_v31 = vpop.f32.mrb[119].mxu0 }
 0x812   : > { %v8589_v25 = vadd.f32 %v3995_v14, %v3873_v35  ;;  %v3875_v60 = vadd.f32 %v8480_v5, %v3744_v31 }
 0x813   : > { %v4180_v50 = vmax.f32 %v4178_v29, %v8586_v2  ;;  %v8596_v58 = vadd.f32 %v3991_v62, %v3874_v61  ;;  %v3923_v29 = vld [vmem:[%s9324_s4 + $0xe] sm:$0x3] }
 0x814   : > { %9937 = vst [vmem:[#allocation25_spill] sm:$0xff] %v8589_v25  ;;  %v4217_v63 = vmax.f32 %v4215_v47, %v8589_v25  ;;  %v8599_v36 = vadd.f32 %v3995_v14, %v3875_v60  ;;  %v4007_v14 = vrot.slane %v3923_v29, %v9933_v10  ;;  %v4011_v35 = vrot.slane %v3923_v29, %v9934_v55 }
 0x815   : > { %v4181_v20 = vmax.f32 %v4179_v19, %v8596_v58 }
 0x816   : > { %9938 = vst [vmem:[#allocation26_spill] sm:$0xff] %v8599_v36  ;;  %v4218_v41 = vmax.f32 %v4216_v37, %v8599_v36  ;;  %v3748_v56 = vpop.f32.mrb[120].mxu0 }
 0x817   : > { %v3876_v3 = vadd.f32 %v8457_v40, %v3748_v56  ;;  %v3750_v34 = vpop.f32.mrb[121].mxu0 }
 0x818   : > { %v3877_v18 = vadd.f32 %v8468_v49, %v3750_v34  ;;  %v3752_v42 = vpop.f32.mrb[122].mxu0 }
 0x819   : > { %v8607_v6 = vadd.f32 %v3999_v43, %v3876_v3  ;;  %v3878_v59 = vadd.f32 %v8473_v17, %v3752_v42  ;;  %v3754_v39 = vpop.f32.mrb[123].mxu0 }
 0x81a   : > { %v8610_v12 = vadd.f32 %v4003_v9, %v3877_v18  ;;  %v3879_v45 = vadd.f32 %v8480_v5, %v3754_v39 }
 0x81b   : > { %v4182_v47 = vmax.f32 %v4180_v50, %v8607_v6  ;;  %v8617_v19 = vadd.f32 %v3999_v43, %v3878_v59 }
 0x81c   : > { %9939 = vst [vmem:[#allocation27_spill] sm:$0xff] %v8610_v12  ;;  %v4219_v62 = vmax.f32 %v4217_v63, %v8610_v12  ;;  %v8620_v37 = vadd.f32 %v4003_v9, %v3879_v45 }
 0x81d   : > { %v4183_v44 = vmax.f32 %v4181_v20, %v8617_v19 }
 0x81e   : > { %9940 = vst [vmem:[#allocation28_spill] sm:$0xff] %v8620_v37  ;;  %v4220_v13 = vmax.f32 %v4218_v41, %v8620_v37  ;;  %v3758_v22 = vpop.f32.mrb[124].mxu0  ;;  %v3924_v41 = vld [vmem:[%s9324_s4 + $0x10] sm:$0x3] }
 0x81f   : > { %v3880_v46 = vadd.f32 %v8457_v40, %v3758_v22  ;;  %v3760_v61 = vpop.f32.mrb[125].mxu0  ;;  %v4015_v42 = vrot.slane %v3924_v41, %v9933_v10  ;;  %v4019_v45 = vrot.slane %v3924_v41, %v9934_v55 }
 0x820   : > { %v3881_v31 = vadd.f32 %v8468_v49, %v3760_v61  ;;  %v3762_v60 = vpop.f32.mrb[126].mxu0 }
 0x821   : > { %v8628_v0 = vadd.f32 %v4007_v14, %v3880_v46  ;;  %v3882_v50 = vadd.f32 %v8473_v17, %v3762_v60  ;;  %v3764_v63 = vpop.f32.mrb[127].mxu0 }
 0x822   : > { %v8631_v43 = vadd.f32 %v4011_v35, %v3881_v31  ;;  %v3883_v20 = vadd.f32 %v8480_v5, %v3764_v63 }
 0x823   : > { %v4184_v56 = vmax.f32 %v4182_v47, %v8628_v0  ;;  %v8638_v9 = vadd.f32 %v4007_v14, %v3882_v50 }
 0x824   : > { %9941 = vst [vmem:[#allocation30_spill] sm:$0xff] %v8631_v43  ;;  %v4221_v3 = vmax.f32 %v4219_v62, %v8631_v43  ;;  %v8641_v34 = vadd.f32 %v4011_v35, %v3883_v20 }
 0x825   : > { %v4185_v18 = vmax.f32 %v4183_v44, %v8638_v9 }
 0x826   : > { %9942 = vst [vmem:[#allocation32_spill] sm:$0xff] %v8641_v34  ;;  %v4222_v59 = vmax.f32 %v4220_v13, %v8641_v34  ;;  %v3768_v39 = vpop.f32.mrb[128].mxu0  ;;  %v3925_v13 = vld [vmem:[%s9324_s4 + $0x12] sm:$0x3] }
 0x827   : > { %v3884_v29 = vadd.f32 %v8457_v40, %v3768_v39  ;;  %v3770_v22 = vpop.f32.mrb[129].mxu0  ;;  %v4023_v41 = vrot.slane %v3925_v13, %v9933_v10 }
 0x828   : > { %v3885_v47 = vadd.f32 %v8468_v49, %v3770_v22  ;;  %v3772_v14 = vpop.f32.mrb[130].mxu0  ;;  %v4027_v22 = vrot.slane %v3925_v13, %v9934_v55 }
 0x829   : > { %v8649_v46 = vadd.f32 %v4015_v42, %v3884_v29  ;;  %v3886_v62 = vadd.f32 %v8473_v17, %v3772_v14  ;;  %v3774_v35 = vpop.f32.mrb[131].mxu0 }
 0x82a   : > { %v8652_v61 = vadd.f32 %v4019_v45, %v3885_v47  ;;  %v3887_v44 = vadd.f32 %v8480_v5, %v3774_v35 }
 0x82b   : > { %v4186_v31 = vmax.f32 %v4184_v56, %v8649_v46  ;;  %v8659_v60 = vadd.f32 %v4015_v42, %v3886_v62 }
 0x82c   : > { %9943 = vst [vmem:[#allocation33_spill] sm:$0xff] %v8652_v61  ;;  %v4223_v50 = vmax.f32 %v4221_v3, %v8652_v61  ;;  %v8662_v63 = vadd.f32 %v4019_v45, %v3887_v44 }
 0x82d   : > { %v4187_v20 = vmax.f32 %v4185_v18, %v8659_v60 }
 0x82e   : > { %9944 = vst [vmem:[#allocation46_spill] sm:$0xff] %v8662_v63  ;;  %v4224_v39 = vmax.f32 %v4222_v59, %v8662_v63  ;;  %v3778_v29 = vpop.f32.mrb[132].mxu0  ;;  %v3926_v59 = vld [vmem:[%s9324_s4 + $0x14] sm:$0x3] }
 0x82f   : > { %v3888_v47 = vadd.f32 %v8457_v40, %v3778_v29  ;;  %v3780_v14 = vpop.f32.mrb[133].mxu0 }
 0x830   : > { %v3889_v56 = vadd.f32 %v8468_v49, %v3780_v14  ;;  %v3782_v42 = vpop.f32.mrb[134].mxu0 }
 0x831   : > { %v8670_v62 = vadd.f32 %v4023_v41, %v3888_v47  ;;  %v3890_v3 = vadd.f32 %v8473_v17, %v3782_v42  ;;  %v3784_v45 = vpop.f32.mrb[135].mxu0  ;;  %v4031_v42 = vrot.slane %v3926_v59, %v9933_v10 }
 0x832   : > { %v8673_v35 = vadd.f32 %v4027_v22, %v3889_v56  ;;  %v3891_v18 = vadd.f32 %v8480_v5, %v3784_v45  ;;  %v4035_v45 = vrot.slane %v3926_v59, %v9934_v55 }
 0x833   : > { %v4188_v44 = vmax.f32 %v4186_v31, %v8670_v62  ;;  %v8680_v13 = vadd.f32 %v4023_v41, %v3890_v3 }
 0x834   : > { %9945 = vst [vmem:[#allocation47_spill] sm:$0xff] %v8673_v35  ;;  %v4225_v29 = vmax.f32 %v4223_v50, %v8673_v35  ;;  %v8683_v14 = vadd.f32 %v4027_v22, %v3891_v18 }
 0x835   : > { %v4189_v47 = vmax.f32 %v4187_v20, %v8680_v13 }
 0x836   : > { %9946 = vst [vmem:[#allocation52_spill] sm:$0xff] %v8683_v14  ;;  %v4226_v56 = vmax.f32 %v4224_v39, %v8683_v14  ;;  %v3788_v27 = vpop.f32.mrb[136].mxu0  ;;  %v3927_v39 = vld [vmem:[%s9324_s4 + $0x16] sm:$0x3] }
 0x837   : > { %v3892_v28 = vadd.f32 %v8457_v40, %v3788_v27  ;;  %v3790_v26 = vpop.f32.mrb[137].mxu0 }
 0x838   : > { %v3893_v31 = vadd.f32 %v8468_v49, %v3790_v26  ;;  %v3792_v41 = vpop.f32.mrb[138].mxu0 }
 0x839   : > { %v8691_v3 = vadd.f32 %v4031_v42, %v3892_v28  ;;  %v3894_v50 = vadd.f32 %v8473_v17, %v3792_v41  ;;  %v3794_v22 = vpop.f32.mrb[139].mxu0  ;;  %v4039_v41 = vrot.slane %v3927_v39, %v9933_v10 }
 0x83a   : > { %v8694_v18 = vadd.f32 %v4035_v45, %v3893_v31  ;;  %v3895_v20 = vadd.f32 %v8480_v5, %v3794_v22 }
 0x83b   : > { %v4190_v59 = vmax.f32 %v4188_v44, %v8691_v3  ;;  %v8701_v27 = vadd.f32 %v4031_v42, %v3894_v50 }
 0x83c   : > { %9947 = vst [vmem:[#allocation53_spill] sm:$0xff] %v8694_v18  ;;  %v4227_v26 = vmax.f32 %v4225_v29, %v8694_v18  ;;  %v8704_v14 = vadd.f32 %v4035_v45, %v3895_v20  ;;  %v3928_v29 = vld [vmem:[%s9324_s4 + $0x18] sm:$0x3] }
 0x83d   : > { %v4191_v28 = vmax.f32 %v4189_v47, %v8701_v27  ;;  %v4047_v50 = vrot.slane %v3928_v29, %v9933_v10 }
 0x83e   : > { %9948 = vst [vmem:[#allocation55_spill] sm:$0xff] %v8704_v14  ;;  %v4228_v31 = vmax.f32 %v4226_v56, %v8704_v14  ;;  %v3798_v35 = vpop.f32.mrb[140].mxu0 }
 0x83f   : > { %v3896_v22 = vadd.f32 %v8457_v40, %v3798_v35  ;;  %v3800_v63 = vpop.f32.mrb[141].mxu0 }
 0x840   : > { %v3802_v61 = vpop.f32.mrb[142].mxu0  ;;  %v3897_v14 = vadd.f32 %v8468_v49, %v3800_v63 }
 0x841   : > { %v8710_v34 = vadd.f32 %v4039_v41, %v3896_v22  ;;  %v3898_v44 = vadd.f32 %v8473_v17, %v3802_v61  ;;  %v3804_v42 = vpop.f32.mrb[143].mxu0  ;;  %v4043_v61 = vrot.slane %v3927_v39, %v9934_v55 }
 0x843   : > { %v4192_v47 = vmax.f32 %v4190_v59, %v8710_v34  ;;  %v8717_v45 = vadd.f32 %v4039_v41, %v3898_v44  ;;  %v3899_v41 = vadd.f32 %v8480_v5, %v3804_v42  ;;  %v4051_v44 = vrot.slane %v3928_v29, %v9934_v55 }
 0x844   : > { %v8736_v39 = vadd.f32 %v4043_v61, %v3897_v14 }
 0x845   : > { %v4193_v56 = vmax.f32 %v4191_v28, %v8717_v45  ;;  %v8741_v36 = vadd.f32 %v4043_v61, %v3899_v41 }
 0x846   : > { %v3808_v35 = vpop.f32.mrb[144].mxu0  ;;  %9949 = vst [vmem:[#allocation56_spill] sm:$0xff] %v8736_v39 }
 0x847   : > { %v3900_v20 = vadd.f32 %v8457_v40, %v3808_v35  ;;  %v3810_v22 = vpop.f32.mrb[145].mxu0  ;;  %v3929_v35 = vld [vmem:[%s9324_s4 + $0x1a] sm:$0x3]  ;;  %9950 = vst [vmem:[#allocation48_spill] sm:$0xff] %v8741_v36 }
 0x848   : > { %v3812_v18 = vpop.f32.mrb[146].mxu0  ;;  %v3901_v28 = vadd.f32 %v8468_v49, %v3810_v22  ;;  %v4055_v42 = vrot.slane %v3929_v35, %v9933_v10  ;;  %v4059_v25 = vrot.slane %v3929_v35, %v9934_v55 }
 0x849   : > { %v8724_v43 = vadd.f32 %v4047_v50, %v3900_v20  ;;  %v3902_v37 = vadd.f32 %v8473_v17, %v3812_v18  ;;  %v3814_v59 = vpop.f32.mrb[147].mxu0 }
 0x84a   : > { %v3903_v20 = vadd.f32 %v8480_v5, %v3814_v59  ;;  %v8743_v22 = vadd.f32 %v4051_v44, %v3901_v28  ;;  %v4230_v28 = vmax.f32 %v4228_v31, %v8741_v36 }
 0x84b   : > { %v4194_v63 = vmax.f32 %v4192_v47, %v8724_v43  ;;  %v8734_v12 = vadd.f32 %v4047_v50, %v3902_v37  ;;  %v4229_v37 = vmax.f32 %v4227_v26, %v8736_v39  ;;  %v3930_v26 = vld [vmem:[%s9324_s4 + $0x1c] sm:$0x3] }
 0x84c   : > { %9951 = vst [vmem:[#allocation44_spill] sm:$0xff] %v8743_v22  ;;  %v8748_v14 = vadd.f32 %v4051_v44, %v3903_v20 }
 0x84d   : > { %v4195_v18 = vmax.f32 %v4193_v56, %v8734_v12  ;;  %v4231_v51 = vmax.f32 %v4229_v37, %v8743_v22  ;;  %v4063_v37 = vrot.slane %v3930_v26, %v9933_v10  ;;  %v4067_v22 = vrot.slane %v3930_v26, %v9934_v55 }
 0x84e   : > { %v3818_v29 = vpop.f32.mrb[148].mxu0  ;;  %9952 = vst [vmem:[#allocation59_spill] sm:$0xff] %v8748_v14 }
 0x84f   : > { %v3904_v38 = vadd.f32 %v8457_v40, %v3818_v29  ;;  %v3820_v47 = vpop.f32.mrb[149].mxu0 }
 0x850   : > { %v3905_v50 = vadd.f32 %v8468_v49, %v3820_v47  ;;  %v3822_v59 = vpop.f32.mrb[150].mxu0 }
 0x851   : > { %v8751_v56 = vadd.f32 %v4055_v42, %v3904_v38  ;;  %v3906_v61 = vadd.f32 %v8473_v17, %v3822_v59  ;;  %v3824_v41 = vpop.f32.mrb[151].mxu0  ;;  %v4232_v38 = vmax.f32 %v4230_v28, %v8748_v14 }
 0x852   : > { %v8756_v35 = vadd.f32 %v4059_v25, %v3905_v50  ;;  %v3907_v29 = vadd.f32 %v8480_v5, %v3824_v41 }
 0x853   : > { %v4196_v44 = vmax.f32 %v4194_v63, %v8751_v56  ;;  %v8763_v20 = vadd.f32 %v4055_v42, %v3906_v61 }
 0x854   : > { %9953 = vst [vmem:[#allocation49_spill] sm:$0xff] %v8756_v35  ;;  %v4233_v47 = vmax.f32 %v4231_v51, %v8756_v35  ;;  %v8767_v59 = vadd.f32 %v4059_v25, %v3907_v29 }
 0x855   : > { %v4197_v31 = vmax.f32 %v4195_v18, %v8763_v20 }
 0x856   : > { %9954 = vst [vmem:[#allocation7_spill] sm:$0xff] %v8767_v59  ;;  %v4234_v50 = vmax.f32 %v4232_v38, %v8767_v59  ;;  %v3828_v41 = vpop.f32.mrb[152].mxu0  ;;  %v3931_v38 = vld [vmem:[%s9324_s4 + $0x1e] sm:$0x3] }
 0x857   : > { %v3908_v36 = vadd.f32 %v8457_v40, %v3828_v41  ;;  %v3830_v63 = vpop.f32.mrb[153].mxu0 }
 0x858   : > { %v3909_v42 = vadd.f32 %v8468_v49, %v3830_v63  ;;  %v3832_v61 = vpop.f32.mrb[154].mxu0 }
 0x859   : > { %v8775_v28 = vadd.f32 %v4063_v37, %v3908_v36  ;;  %v3910_v51 = vadd.f32 %v8473_v17, %v3832_v61  ;;  %v3834_v25 = vpop.f32.mrb[155].mxu0  ;;  %v4071_v61 = vrot.slane %v3931_v38, %v9933_v10 }
 0x85a   : > { %v8778_v29 = vadd.f32 %v4067_v22, %v3909_v42  ;;  %v3911_v18 = vadd.f32 %v8480_v5, %v3834_v25  ;;  %v4075_v25 = vrot.slane %v3931_v38, %v9934_v55 }
 0x85b   : > { %v4198_v26 = vmax.f32 %v4196_v44, %v8775_v28  ;;  %v8785_v41 = vadd.f32 %v4063_v37, %v3910_v51 }
 0x85c   : > { %9955 = vst [vmem:[#allocation13_spill] sm:$0xff] %v8778_v29  ;;  %v4235_v63 = vmax.f32 %v4233_v47, %v8778_v29  ;;  %v8788_v14 = vadd.f32 %v4067_v22, %v3911_v18 }
 0x85d   : > { %v4199_v36 = vmax.f32 %v4197_v31, %v8785_v41 }
 0x85e   : > { %9956 = vst [vmem:[#allocation12_spill] sm:$0xff] %v8788_v14  ;;  %v4236_v42 = vmax.f32 %v4234_v50, %v8788_v14  ;;  %v3838_v39 = vpop.f32.mrb[156].mxu0 }
 0x85f   : > { %v3912_v59 = vadd.f32 %v8457_v40, %v3838_v39  ;;  %v3840_v35 = vpop.f32.mrb[157].mxu0 }
 0x860   : > { %v3913_v44 = vadd.f32 %v8468_v49, %v3840_v35  ;;  %v3842_v37 = vpop.f32.mrb[158].mxu0 }
 0x861   : > { %v8796_v51 = vadd.f32 %v4071_v61, %v3912_v59  ;;  %v3914_v22 = vadd.f32 %v8473_v17, %v3842_v37  ;;  %v3844_v47 = vpop.f32.mrb[159].mxu0 }
 0x862   : > { %v8799_v18 = vadd.f32 %v4075_v25, %v3913_v44  ;;  %v3915_v10 = vadd.f32 %v8480_v5, %v3844_v47 }
 0x863   : > { %v4200_v31 = vmax.f32 %v4198_v26, %v8796_v51  ;;  %v8803_v50 = vadd.f32 %v4071_v61, %v3914_v22 }
 0x864   : > { %v4237_v55 = vmax.f32 %v4235_v63, %v8799_v18  ;;  %v8806_v40 = vadd.f32 %v4075_v25, %v3915_v10 }
 0x865   : > { %v4201_v49 = vmax.f32 %v4199_v36, %v8803_v50 }
 0x866   : > { %v4238_v39 = vmax.f32 %v4236_v42, %v8806_v40 }
 0x867   : > { %v4202_v35 = vmax.f32 %v4200_v31, %v4201_v49 }
 0x868   : > { %v4239_v59 = vmax.f32 %v4237_v55, %v4238_v39 }
 0x869   : > { %v4203_v17 = vrot.slane %v4202_v35, 4 }
 0x86a   : > { %v4240_v38 = vrot.slane %v4239_v59, 4 }
 0x86b   : > { %v4204_v44 = vmax.f32 %v4202_v35, %v4203_v17 }
 0x86c   : > { %v4241_v37 = vmax.f32 %v4239_v59, %v4240_v38 }
 0x86d   : > { %v4205_v14 = vrot.slane %v4204_v44, 2 }
 0x86e   : > { %v4242_v5 = vrot.slane %v4241_v37, 2 }
 0x86f   : > { %v4206_v47 = vmax.f32 %v4204_v44, %v4205_v14 }
 0x870   : > { %v4243_v26 = vmax.f32 %v4241_v37, %v4242_v5 }
 0x871   : > { %v4207_v61 = vrot.slane %v4206_v47, 1 }
 0x872   : > { %v4244_v22 = vrot.slane %v4243_v26, 1 }
 0x873   : > { %v8810_v29 = vmax.f32 %v4206_v47, %v4207_v61 }
 0x874   : > { %v8812_v63 = vmax.f32 %v4243_v26, %v4244_v22 }
 0x875   : > { %v4246_v36 = vsub.f32 %v8490_v52, %v8810_v29  ;;  %v4248_v42 = vsub.f32 %v8503_v15, %v8810_v29  ;;  %v4250_v25 = vsub.f32 %v8492_v1, %v8810_v29  ;;  %v4252_v10 = vsub.f32 %v8507_v7, %v8810_v29 }
 0x876   : > { %v4254_v14 = vsub.f32 %v8523_v30, %v8810_v29  ;;  %v4256_v31 = vsub.f32 %v8533_v54, %v8810_v29  ;;  %v4258_v55 = vsub.f32 %v8544_v57, %v8810_v29  ;;  %v4260_v52 = vsub.f32 %v8554_v24, %v8810_v29 }
 0x877   : > { %v4262_v15 = vsub.f32 %v8565_v32, %v8810_v29  ;;  %v4264_v1 = vsub.f32 %v8575_v53, %v8810_v29  ;;  %v4266_v7 = vsub.f32 %v8586_v2, %v8810_v29  ;;  %v4268_v30 = vsub.f32 %v8596_v58, %v8810_v29 }
 0x878   : > { %v4270_v54 = vsub.f32 %v8607_v6, %v8810_v29  ;;  %v4272_v57 = vsub.f32 %v8617_v19, %v8810_v29  ;;  %v4274_v24 = vsub.f32 %v8628_v0, %v8810_v29  ;;  %v4276_v32 = vsub.f32 %v8638_v9, %v8810_v29 }
 0x879   : > { %v4278_v53 = vsub.f32 %v8649_v46, %v8810_v29  ;;  %v4280_v2 = vsub.f32 %v8659_v60, %v8810_v29  ;;  %v4282_v58 = vsub.f32 %v8670_v62, %v8810_v29  ;;  %v4284_v6 = vsub.f32 %v8680_v13, %v8810_v29 }
 0x87a   : > { %v4286_v19 = vsub.f32 %v8691_v3, %v8810_v29  ;;  %v4288_v0 = vsub.f32 %v8701_v27, %v8810_v29  ;;  %v4290_v9 = vsub.f32 %v8710_v34, %v8810_v29  ;;  %v4292_v46 = vsub.f32 %v8717_v45, %v8810_v29  ;;  %v9971_v3 = vld [vmem:[#allocation49_spill] sm:$0xff]  ;;  %v9974_v45 = vld [vmem:[#allocation12_spill] sm:$0xff] }
 0x87b   : > { %v4294_v60 = vsub.f32 %v8724_v43, %v8810_v29  ;;  %v4296_v62 = vsub.f32 %v8734_v12, %v8810_v29  ;;  %v4298_v13 = vsub.f32 %v8751_v56, %v8810_v29  ;;  %v4310_v38 = vmul.f32 1.442695, %v4246_v36 }
 0x87c   : > { %v4314_v44 = vmul.f32 1.442695, %v4248_v42  ;;  %v4318_v37 = vmul.f32 1.442695, %v4250_v25  ;;  %v4322_v47 = vmul.f32 1.442695, %v4252_v10  ;;  %v9976_v12 = vsub.f32 %v8775_v28, %v8810_v29 }
 0x87d   : > { %5352 = vpow2.f32 %v4310_v38  ;;  %v4326_v61 = vmul.f32 1.442695, %v4254_v14  ;;  %v4330_v22 = vmul.f32 1.442695, %v4256_v31  ;;  %v4334_v35 = vmul.f32 1.442695, %v4258_v55 }
 0x87e   : > { %5354 = vpow2.f32 %v4314_v44  ;;  %v4338_v59 = vmul.f32 1.442695, %v4260_v52  ;;  %v4342_v17 = vmul.f32 1.442695, %v4262_v15  ;;  %v4346_v36 = vmul.f32 1.442695, %v4264_v1 }
 0x87f   : > { %5356 = vpow2.f32 %v4318_v37  ;;  %v4350_v42 = vmul.f32 1.442695, %v4266_v7  ;;  %v4354_v25 = vmul.f32 1.442695, %v4268_v30  ;;  %v4358_v5 = vmul.f32 1.442695, %v4270_v54 }
 0x880   : > { %5358 = vpow2.f32 %v4322_v47  ;;  %v4362_v10 = vmul.f32 1.442695, %v4272_v57  ;;  %v4366_v39 = vmul.f32 1.442695, %v4274_v24  ;;  %v4370_v26 = vmul.f32 1.442695, %v4276_v32 }
 0x881   : > { %5360 = vpow2.f32 %v4326_v61  ;;  %v4374_v38 = vmul.f32 1.442695, %v4278_v53  ;;  %v4378_v14 = vmul.f32 1.442695, %v4280_v2  ;;  %v4382_v31 = vmul.f32 1.442695, %v4282_v58 }
 0x882   : > { %5362 = vpow2.f32 %v4330_v22  ;;  %v4386_v44 = vmul.f32 1.442695, %v4284_v6  ;;  %v9957_v57 = vld [vmem:[#allocation54_spill] sm:$0xff]  ;;  %v9958_v53 = vld [vmem:[#allocation24_spill] sm:$0xff]  ;;  %v9959_v58 = vld [vmem:[#allocation25_spill] sm:$0xff] }
 0x883   : > { %5364 = vpow2.f32 %v4334_v35  ;;  %v9960_v35 = vld [vmem:[#allocation26_spill] sm:$0xff]  ;;  %v9961_v47 = vld [vmem:[#allocation27_spill] sm:$0xff]  ;;  %v9962_v22 = vld [vmem:[#allocation28_spill] sm:$0xff] }
 0x884   : > { %5366 = vpow2.f32 %v4338_v59  ;;  %v9964_v59 = vld [vmem:[#allocation32_spill] sm:$0xff]  ;;  %v9966_v30 = vld [vmem:[#allocation46_spill] sm:$0xff]  ;;  %v9967_v1 = vld [vmem:[#allocation47_spill] sm:$0xff] }
 0x885   : > { %5368 = vpow2.f32 %v4342_v17  ;;  %v9968_v6 = vld [vmem:[#allocation52_spill] sm:$0xff]  ;;  %v9969_v52 = vld [vmem:[#allocation53_spill] sm:$0xff]  ;;  %v9970_v55 = vld [vmem:[#allocation55_spill] sm:$0xff] }
 0x886   : > { %5370 = vpow2.f32 %v4346_v36 }
 0x887   : > { %v8890_v7 = vpop.eup %5352  ;;  %5372 = vpow2.f32 %v4350_v42 }
 0x888   : > { %v8898_v32 = vpop.eup %5354  ;;  %5374 = vpow2.f32 %v4354_v25  ;;  %v9963_v25 = vld [vmem:[#allocation30_spill] sm:$0xff] }
 0x889   : > { %v8906_v17 = vpop.eup %5356  ;;  %5376 = vpow2.f32 %v4358_v5  ;;  %v4438_v37 = vadd.f32 %v8898_v32, %v8890_v7  ;;  %v9965_v5 = vld [vmem:[#allocation33_spill] sm:$0xff] }
 0x88a   : > { %v8914_v42 = vpop.eup %5358  ;;  %5378 = vpow2.f32 %v4362_v10 }
 0x88b   : > { %v8922_v54 = vpop.eup %5360  ;;  %5380 = vpow2.f32 %v4366_v39  ;;  %v4439_v61 = vadd.f32 %v8906_v17, %v4438_v37  ;;  %v4390_v37 = vmul.f32 1.442695, %v4286_v19  ;;  %v4398_v39 = vmul.f32 1.442695, %v4290_v9 }
 0x88c   : > { %v8929_v15 = vpop.eup %5362  ;;  %5382 = vpow2.f32 %v4370_v26  ;;  %v4394_v26 = vmul.f32 1.442695, %v4288_v0  ;;  %v9972_v0 = vld [vmem:[#allocation7_spill] sm:$0xff] }
 0x88d   : > { %v8937_v49 = vpop.eup %5364  ;;  %5384 = vpow2.f32 %v4374_v38  ;;  %v4440_v10 = vadd.f32 %v8914_v42, %v4439_v61  ;;  %v4402_v38 = vmul.f32 1.442695, %v4292_v46 }
 0x88e   : > { %v8946_v2 = vpop.eup %5366  ;;  %5386 = vpow2.f32 %v4378_v14  ;;  %v9973_v14 = vld [vmem:[#allocation13_spill] sm:$0xff] }
 0x88f   : > { %v8956_v24 = vpop.eup %5368  ;;  %5388 = vpow2.f32 %v4382_v31  ;;  %v4441_v27 = vadd.f32 %v8922_v54, %v4440_v10  ;;  %v4406_v10 = vmul.f32 1.442695, %v4294_v60  ;;  %v9975_v60 = vsub.f32 %v8763_v20, %v8810_v29 }
 0x890   : > { %v8963_v34 = vpop.eup %5370  ;;  %5390 = vpow2.f32 %v4386_v44  ;;  %v4410_v44 = vmul.f32 1.442695, %v4296_v62  ;;  %v4422_v62 = vmul.f32 1.442695, %v9976_v12  ;;  %v9978_v20 = vsub.f32 %v8796_v51, %v8810_v29 }
 0x891   : > { %v8971_v19 = vpop.eup %5372  ;;  %5392 = vpow2.f32 %v4390_v37  ;;  %v4442_v36 = vadd.f32 %v8929_v15, %v4441_v27  ;;  %v4414_v37 = vmul.f32 1.442695, %v4298_v13  ;;  %v9977_v13 = vsub.f32 %v8785_v41, %v8810_v29 }
 0x892   : > { %v8977_v61 = vpop.eup %5374  ;;  %5394 = vpow2.f32 %v4394_v26  ;;  %v4418_v26 = vmul.f32 1.442695, %v9975_v60 }
 0x893   : > { %v8982_v46 = vpop.eup %5376  ;;  %5396 = vpow2.f32 %v4398_v39  ;;  %v4443_v31 = vadd.f32 %v8937_v49, %v4442_v36  ;;  %v4426_v36 = vmul.f32 1.442695, %v9977_v13 }
 0x894   : > { %v8988_v43 = vpop.eup %5378  ;;  %5398 = vpow2.f32 %v4402_v38 }
 0x895   : > { %v8993_v27 = vpop.eup %5380  ;;  %5400 = vpow2.f32 %v4406_v10  ;;  %v4444_v39 = vadd.f32 %v8946_v2, %v4443_v31  ;;  %v4430_v10 = vmul.f32 1.442695, %v9978_v20  ;;  %v9979_v31 = vsub.f32 %v8803_v50, %v8810_v29 }
 0x896   : > { %v8999_v56 = vpop.eup %5382  ;;  %5402 = vpow2.f32 %v4410_v44  ;;  %v9982_v29 = vsub.f32 %v8497_v4, %v8812_v63  ;;  %v9985_v4 = vsub.f32 %v8536_v21, %v8812_v63  ;;  %v9989_v21 = vsub.f32 %v9958_v53, %v8812_v63 }
 0x897   : > { %v9004_v38 = vpop.eup %5384  ;;  %5404 = vpow2.f32 %v4414_v37  ;;  %v4445_v60 = vadd.f32 %v8956_v24, %v4444_v39  ;;  %v4434_v44 = vmul.f32 1.442695, %v9979_v31  ;;  %v9980_v37 = vsub.f32 %v8495_v16, %v8812_v63 }
 0x898   : > { %v9010_v28 = vpop.eup %5386  ;;  %5406 = vpow2.f32 %v4418_v26  ;;  %v9981_v39 = vsub.f32 %v8509_v8, %v8812_v63  ;;  %v4320_v50 = vmul.f32 1.442695, %v9982_v29  ;;  %v9983_v16 = vsub.f32 %v8513_v48, %v8812_v63 }
 0x899   : > { %v9015_v12 = vpop.eup %5388  ;;  %5408 = vpow2.f32 %v4422_v62  ;;  %v4446_v41 = vadd.f32 %v8963_v34, %v4445_v60  ;;  %v4312_v13 = vmul.f32 1.442695, %v9980_v37  ;;  %v4332_v8 = vmul.f32 1.442695, %v9985_v4 }
 0x89a   : > { %v9021_v51 = vpop.eup %5390  ;;  %5410 = vpow2.f32 %v4426_v36  ;;  %v4316_v26 = vmul.f32 1.442695, %v9981_v39  ;;  %v4324_v60 = vmul.f32 1.442695, %v9983_v16  ;;  %v9984_v36 = vsub.f32 %v8526_v11, %v8812_v63 }
 0x89b   : > { %v9029_v20 = vpop.eup %5392  ;;  %5412 = vpow2.f32 %v4430_v10  ;;  %v4447_v62 = vadd.f32 %v8971_v19, %v4446_v41  ;;  %v9986_v10 = vsub.f32 %v8547_v33, %v8812_v63  ;;  %v9987_v41 = vsub.f32 %v8557_v23, %v8812_v63 }
 0x89c   : > { %v4328_v31 = vmul.f32 1.442695, %v9984_v36  ;;  %v9038_v37 = vpop.eup %5394  ;;  %5414 = vpow2.f32 %v4434_v44  ;;  %v9988_v44 = vsub.f32 %v9957_v57, %v8812_v63  ;;  %v4348_v36 = vmul.f32 1.442695, %v9989_v21 }
 0x89d   : > { %v4336_v39 = vmul.f32 1.442695, %v9986_v10  ;;  %v4340_v48 = vmul.f32 1.442695, %v9987_v41  ;;  %v9049_v29 = vpop.eup %5396  ;;  %v4448_v11 = vadd.f32 %v8977_v61, %v4447_v62  ;;  %5416 = vpow2.f32 %v4312_v13 }
 0x89e   : > { %v4344_v16 = vmul.f32 1.442695, %v9988_v44  ;;  %v9058_v4 = vpop.eup %5398  ;;  %5418 = vpow2.f32 %v4316_v26  ;;  %v9991_v21 = vsub.f32 %v9960_v35, %v8812_v63 }
 0x89f   : > { %v9066_v62 = vpop.eup %5400  ;;  %v4449_v57 = vadd.f32 %v8982_v46, %v4448_v11  ;;  %5420 = vpow2.f32 %v4320_v50 }
 0x8a0   : > { %v9073_v10 = vpop.eup %5402  ;;  %5422 = vpow2.f32 %v4324_v60  ;;  %v9990_v60 = vsub.f32 %v9959_v58, %v8812_v63  ;;  %v4356_v44 = vmul.f32 1.442695, %v9991_v21 }
 0x8a1   : > { %v9081_v11 = vpop.eup %5404  ;;  %v4450_v50 = vadd.f32 %v8988_v43, %v4449_v57  ;;  %5424 = vpow2.f32 %v4328_v31 }
 0x8a2   : > { %v9088_v53 = vpop.eup %5406  ;;  %5426 = vpow2.f32 %v4332_v8  ;;  %v4352_v26 = vmul.f32 1.442695, %v9990_v60 }
 0x8a3   : > { %v9096_v57 = vpop.eup %5408  ;;  %v4451_v31 = vadd.f32 %v8993_v27, %v4450_v50  ;;  %5428 = vpow2.f32 %v4336_v39  ;;  %v9992_v39 = vsub.f32 %v9961_v47, %v8812_v63  ;;  %v9997_v47 = vsub.f32 %v9966_v30, %v8812_v63 }
 0x8a4   : > { %v9104_v9 = vpop.eup %5410  ;;  %5430 = vpow2.f32 %v4340_v48  ;;  %v9993_v48 = vsub.f32 %v9962_v22, %v8812_v63  ;;  %v9996_v22 = vsub.f32 %v9965_v5, %v8812_v63  ;;  %v10000_v30 = vsub.f32 %v9969_v52, %v8812_v63 }
 0x8a5   : > { %v9109_v41 = vpop.eup %5412  ;;  %v4452_v13 = vadd.f32 %v8999_v56, %v4451_v31  ;;  %5432 = vpow2.f32 %v4344_v16  ;;  %v4360_v58 = vmul.f32 1.442695, %v9992_v39  ;;  %v9994_v16 = vsub.f32 %v9963_v25, %v8812_v63 }
 0x8a6   : > { %v9117_v60 = vpop.eup %5414  ;;  %5434 = vpow2.f32 %v4348_v36  ;;  %v4364_v35 = vmul.f32 1.442695, %v9993_v48  ;;  %v9995_v36 = vsub.f32 %v9964_v59, %v8812_v63  ;;  %v4376_v48 = vmul.f32 1.442695, %v9996_v22 }
 0x8a7   : > { %v5417_v21 = vpop.eup %5416  ;;  %v4453_v8 = vadd.f32 %v9004_v38, %v4452_v13  ;;  %5436 = vpow2.f32 %v4352_v26  ;;  %v4368_v31 = vmul.f32 1.442695, %v9994_v16  ;;  %v9998_v59 = vsub.f32 %v9967_v1, %v8812_v63 }
 0x8a8   : > { %v5419_v39 = vpop.eup %5418  ;;  %5438 = vpow2.f32 %v4356_v44  ;;  %v4372_v50 = vmul.f32 1.442695, %v9995_v36  ;;  %v4380_v44 = vmul.f32 1.442695, %v9997_v47  ;;  %v4392_v47 = vmul.f32 1.442695, %v10000_v30 }
 0x8a9   : > { %v5421_v23 = vpop.eup %5420  ;;  %v4454_v13 = vadd.f32 %v9010_v28, %v4453_v8  ;;  %5440 = vpow2.f32 %v4360_v58  ;;  %v4475_v26 = vadd.f32 %v5419_v39, %v5417_v21  ;;  %v4513_v25 = vpack.c.bf16 %v5419_v39, %v5417_v21 }
 0x8aa   : > { %v5423_v16 = vpop.eup %5422  ;;  %5442 = vpow2.f32 %v4364_v35  ;;  %v4384_v36 = vmul.f32 1.442695, %v9998_v59  ;;  %v9999_v35 = vsub.f32 %v9968_v6, %v8812_v63  ;;  %v10001_v1 = vpack.c.bf16 %v8898_v32, %v8890_v7 }
 0x8ab   : > { %v5425_v33 = vpop.eup %5424  ;;  %v4455_v5 = vadd.f32 %v9015_v12, %v4454_v13  ;;  %5444 = vpow2.f32 %v4368_v31  ;;  %v4476_v22 = vadd.f32 %v5421_v23, %v4475_v26  ;;  %4544 = vmatprep.subr.bf16.mxu1 %v4513_v25  ;;  %v4515_v8 = vpack.c.bf16 %v5423_v16, %v5421_v23 }
 0x8ac   : > { %v5427_v58 = vpop.eup %5426  ;;  %5446 = vpow2.f32 %v4372_v50  ;;  %v4388_v21 = vmul.f32 1.442695, %v9999_v35  ;;  %4545 = vmatpush1.bf16.msra.mxu1 %v10001_v1  ;;  %v10002_v6 = vsub.f32 %v9970_v55, %v8812_v63 }
 0x8ad   : > { %v5429_v39 = vpop.eup %5428  ;;  %v4456_v31 = vadd.f32 %v9021_v51, %v4455_v5  ;;  %5448 = vpow2.f32 %v4376_v48  ;;  %v4477_v13 = vadd.f32 %v5423_v16, %v4476_v22  ;;  %4546 = vmatprep.subr.bf16.mxu1 %v4515_v8  ;;  %v4517_v23 = vpack.c.bf16 %v5427_v58, %v5425_v33 }
 0x8ae   : > { %v5431_v50 = vpop.eup %5430  ;;  %5450 = vpow2.f32 %v4380_v44  ;;  %v4396_v26 = vmul.f32 1.442695, %v10002_v6  ;;  %v10003_v48 = vpack.c.bf16 %v8914_v42, %v8906_v17  ;;  %v10005_v42 = vsub.f32 %v9972_v0, %v8812_v63 }
 0x8af   : > { %v5433_v25 = vpop.eup %5432  ;;  %v4457_v52 = vadd.f32 %v9029_v20, %v4456_v31  ;;  %5452 = vpow2.f32 %v4384_v36  ;;  %v4478_v59 = vadd.f32 %v5425_v33, %v4477_v13  ;;  %v4519_v7 = vpack.c.bf16 %v5431_v50, %v5429_v39 }
 0x8b0   : > { %v5435_v32 = vpop.eup %5434  ;;  %5454 = vpow2.f32 %v4388_v21  ;;  %4547 = vmatpush1.bf16.msra.mxu1 %v10003_v48  ;;  %v10004_v33 = vsub.f32 %v9971_v3, %v8812_v63  ;;  %v4420_v1 = vmul.f32 1.442695, %v10005_v42  ;;  %v10007_v13 = vsub.f32 %v9973_v14, %v8812_v63 }
 0x8b1   : > { %v5437_v16 = vpop.eup %5436  ;;  %v4458_v5 = vadd.f32 %v9038_v37, %v4457_v52  ;;  %5456 = vpow2.f32 %v4392_v47  ;;  %v4479_v44 = vadd.f32 %v5427_v58, %v4478_v59  ;;  %4548 = vmatprep.subr.bf16.mxu1 %v4517_v23  ;;  %v4521_v55 = vpack.c.bf16 %v5435_v32, %v5433_v25 }
 0x8b2   : > { %v5439_v22 = vpop.eup %5438  ;;  %5458 = vpow2.f32 %v4396_v26  ;;  %v4416_v35 = vmul.f32 1.442695, %v10004_v33  ;;  %v10006_v58 = vpack.c.bf16 %v8929_v15, %v8922_v54  ;;  %v4424_v3 = vmul.f32 1.442695, %v10007_v13  ;;  %v10014_v13 = vld [vmem:[#allocation48_spill] sm:$0xff] }
 0x8b3   : > { %v5441_v8 = vpop.eup %5440  ;;  %v4459_v36 = vadd.f32 %v9049_v29, %v4458_v5  ;;  %v4480_v21 = vadd.f32 %v5429_v39, %v4479_v44  ;;  %v4523_v30 = vpack.c.bf16 %v5439_v22, %v5437_v16  ;;  %v10008_v0 = vsub.f32 %v9974_v45, %v8812_v63 }
 0x8b4   : > { %v5443_v17 = vpop.eup %5442  ;;  %4549 = vmatpush1.bf16.msra.mxu1 %v10006_v58  ;;  %v10009_v15 = vsub.f32 %v8799_v18, %v8812_v63  ;;  %5460 = vpow2.f32 %v4416_v35  ;;  %v10011_v45 = vpack.c.bf16 %v8946_v2, %v8937_v49  ;;  %v10012_v49 = vpack.c.bf16 %v8963_v34, %v8956_v24 }
 0x8b5   : > { %v9170_v47 = vpop.eup %5444  ;;  %v4460_v31 = vadd.f32 %v9058_v4, %v4459_v36  ;;  %v4481_v23 = vadd.f32 %v5431_v50, %v4480_v21  ;;  %4550 = vmatprep.subr.bf16.mxu1 %v4519_v7  ;;  %v4525_v39 = vpack.c.bf16 %v5443_v17, %v5441_v8  ;;  %v4428_v26 = vmul.f32 1.442695, %v10008_v0  ;;  %v10015_v0 = vld [vmem:[#allocation44_spill] sm:$0xff] }
 0x8b6   : > { %v5447_v6 = vpop.eup %5446  ;;  %v4432_v54 = vmul.f32 1.442695, %v10009_v15  ;;  %5462 = vpow2.f32 %v4420_v1  ;;  %v10010_v7 = vsub.f32 %v8806_v40, %v8812_v63  ;;  %v10016_v24 = vpack.c.bf16 %v8977_v61, %v8971_v19 }
 0x8b7   : > { %v9182_v52 = vpop.eup %5448  ;;  %v4461_v59 = vadd.f32 %v9066_v62, %v4460_v31  ;;  %v4482_v48 = vadd.f32 %v5433_v25, %v4481_v23  ;;  %v4527_v14 = vpack.c.bf16 %v5447_v6, %v9170_v47  ;;  %5464 = vpow2.f32 %v4424_v3 }
 0x8b8   : > { %v5451_v50 = vpop.eup %5450  ;;  %v4436_v5 = vmul.f32 1.442695, %v10010_v7  ;;  %4551 = vmatpush1.bf16.msra.mxu1 %v10011_v45  ;;  %5466 = vpow2.f32 %v4428_v26  ;;  %v4293_v3 = vsub.f32 %v10014_v13, %v8812_v63  ;;  %v4295_v26 = vsub.f32 %v10015_v0, %v8812_v63  ;;  %v10029_v0 = vld [vmem:[#allocation6_spill] sm:$0xff] }
 0x8b9   : > { %v5453_v18 = vpop.eup %5452  ;;  %v4462_v44 = vadd.f32 %v9073_v10, %v4461_v59  ;;  %v4483_v36 = vadd.f32 %v5435_v32, %v4482_v48  ;;  %4552 = vmatprep.subr.bf16.mxu1 %v4521_v55  ;;  %v4529_v25 = vpack.c.bf16 %v5451_v50, %v9182_v52  ;;  %5468 = vpow2.f32 %v4432_v54  ;;  %v10013_v32 = vld [vmem:[#allocation56_spill] sm:$0xff]  ;;  %v10017_v59 = vld [vmem:[#allocation59_spill] sm:$0xff] }
 0x8ba   : > { %v5455_v33 = vpop.eup %5454  ;;  %5470 = vpow2.f32 %v4436_v5  ;;  %v4291_v55 = vsub.f32 %v10013_v32, %v8812_v63  ;;  %v4297_v48 = vsub.f32 %v10017_v59, %v8812_v63  ;;  %v4404_v7 = vmul.f32 1.442695, %v4293_v3 }
 0x8bb   : > { %v5457_v35 = vpop.eup %5456  ;;  %v4463_v21 = vadd.f32 %v9081_v11, %v4462_v44  ;;  %v4484_v40 = vadd.f32 %v5437_v16, %v4483_v36  ;;  %v4531_v42 = vpack.c.bf16 %v5455_v33, %v5453_v18  ;;  %v4408_v19 = vmul.f32 1.442695, %v4295_v26  ;;  %v10030_v26 = vld [vmem:[#allocation38_spill] sm:$0xff] }
 0x8bc   : > { %v5459_v1 = vpop.eup %5458  ;;  %4553 = vmatpush1.bf16.msra.mxu1 %v10012_v49  ;;  %v4400_v54 = vmul.f32 1.442695, %v4291_v55  ;;  %v10018_v61 = vpack.c.bf16 %v8988_v43, %v8982_v46  ;;  %v4412_v49 = vmul.f32 1.442695, %v4297_v48  ;;  %v10019_v32 = vpack.c.bf16 %v8999_v56, %v8993_v27 }
 0x8bd   : > { %v4464_v2 = vadd.f32 %v9088_v53, %v4463_v21  ;;  %v4485_v58 = vadd.f32 %v5439_v22, %v4484_v40  ;;  %4554 = vmatprep.subr.bf16.mxu1 %v4523_v30  ;;  %v4533_v31 = vpack.c.bf16 %v5459_v1, %v5457_v35 }
 0x8be   : > { %v5461_v34 = vpop.eup %5460  ;;  %5472 = vpow2.f32 %v4400_v54 }
 0x8bf   : > { %v4465_v16 = vadd.f32 %v9096_v57, %v4464_v2  ;;  %v4486_v23 = vadd.f32 %v5441_v8, %v4485_v58  ;;  %5474 = vpow2.f32 %v4404_v7 }
 0x8c0   : > { %4555 = vmatpush1.bf16.msra.mxu1 %v10016_v24  ;;  %v5463_v30 = vpop.eup %5462  ;;  %5476 = vpow2.f32 %v4408_v19  ;;  %v10033_v24 = vld [vmem:[#allocation51_spill] sm:$0xff] }
 0x8c1   : > { %v4466_v15 = vadd.f32 %v9104_v9, %v4465_v16  ;;  %v4487_v22 = vadd.f32 %v5443_v17, %v4486_v23  ;;  %4556 = vmatprep.subr.bf16.mxu1 %v4525_v39  ;;  %v5465_v5 = vpop.eup %5464  ;;  %v4539_v44 = vpack.c.bf16 %v5463_v30, %v5461_v34  ;;  %5478 = vpow2.f32 %v4412_v49  ;;  %v10037_v49 = vld [vmem:[#allocation43_spill] sm:$0xff] }
 0x8c2   : > { %v5467_v36 = vpop.eup %5466 }
 0x8c3   : > { %v4467_v8 = vadd.f32 %v9109_v41, %v4466_v15  ;;  %v4488_v45 = vadd.f32 %v9170_v47, %v4487_v22  ;;  %v5469_v21 = vpop.eup %5468  ;;  %v4541_v63 = vpack.c.bf16 %v5467_v36, %v5465_v5 }
 0x8c4   : > { %4557 = vmatpush1.bf16.msra.mxu1 %v10018_v61  ;;  %v5471_v40 = vpop.eup %5470 }
 0x8c5   : > { %v4468_v17 = vadd.f32 %v9117_v60, %v4467_v8  ;;  %v4489_v39 = vadd.f32 %v5447_v6, %v4488_v45  ;;  %4558 = vmatprep.subr.bf16.mxu1 %v4527_v14  ;;  %v4543_v47 = vpack.c.bf16 %v5471_v40, %v5469_v21  ;;  %v10020_v6 = vpack.c.bf16 %v9010_v28, %v9004_v38 }
 0x8c7   : > { %v4490_v2 = vadd.f32 %v9182_v52, %v4489_v39  ;;  %v10021_v52 = vpack.c.bf16 %v9021_v51, %v9015_v12  ;;  %v10036_v39 = vld [vmem:[#allocation9_spill] sm:$0xff] }
 0x8c8   : > { %4559 = vmatpush1.bf16.msra.mxu1 %v10019_v32  ;;  %v5473_v55 = vpop.eup %5472  ;;  %v4955_v32 = vld [vmem:[%s9321_s1 + $0x38] sm:$0xff]  }
 0x8c9   : > { %v4491_v46 = vadd.f32 %v5451_v50, %v4490_v2  ;;  %4560 = vmatprep.subr.bf16.mxu1 %v4529_v25  ;;  %v5475_v13 = vpop.eup %5474 }
 0x8ca   : > { %v5477_v56 = vpop.eup %5476  ;;  %v4535_v25 = vpack.c.bf16 %v5475_v13, %v5473_v55 }
 0x8cb   : > { %v4492_v43 = vadd.f32 %v5453_v18, %v4491_v46  ;;  %v5479_v3 = vpop.eup %5478  ;;  %v10022_v18 = vpack.c.bf16 %v9038_v37, %v9029_v20  ;;  %v10025_v20 = vpack.c.bf16 %v9088_v53, %v9081_v11  ;;  %v10031_v53 = vpack.c.bf16 %v10029_v0, %v10030_v26  ;;  %v10032_v11 = vld [vmem:[#allocation14_spill] sm:$0xff]  ;;  %v4614_v46 = vpop.permute.xlu1 %4613 }
 0x8cc   : > { %4561 = vmatpush1.bf16.msra.mxu1 %v10020_v6 }
 0x8cd   : > { %v4493_v14 = vadd.f32 %v5455_v33, %v4492_v43  ;;  %4562 = vmatprep.subr.bf16.mxu1 %v4531_v42  ;;  %v4537_v33 = vpack.c.bf16 %v5479_v3, %v5477_v56  ;;  %v10024_v42 = vpack.c.bf16 %v9073_v10, %v9066_v62  ;;  %v10027_v62 = vpack.c.bf16 %v9117_v60, %v9109_v41  ;;  %v10028_v10 = vld [vmem:[#allocation45_spill] sm:$0xff] }
 0x8ce   : > { %v3566_v23 = vpack.c.bf16 %v10028_v10, %v10028_v10 }
 0x8cf   : > { %v4494_v58 = vadd.f32 %v5457_v35, %v4493_v14  ;;  %v10023_v35 = vpack.c.bf16 %v9058_v4, %v9049_v29  ;;  %v10026_v29 = vpack.c.bf16 %v9104_v9, %v9096_v57  ;;  %v10035_v9 = vmov 0  }
 0x8d0   : > { %4563 = vmatpush1.bf16.msra.mxu1 %v10021_v52  ;;  %v4469_v57 = vrot.slane %v4468_v17, 4 }
 0x8d1   : > { %v4495_v27 = vadd.f32 %v5459_v1, %v4494_v58  ;;  %4564 = vmatprep.subr.bf16.mxu1 %v4533_v31 }
 0x8d2   : > { %v4470_v54 = vadd.f32 %v4469_v57, %v4468_v17 }
 0x8d3   : > { %v4496_v50 = vadd.f32 %v5473_v55, %v4495_v27  ;;  %v4619_v55 = vpop.permute.xlu1 %4618 }
 0x8d4   : > { %4565 = vmatpush1.bf16.msra.mxu1 %v10022_v18  ;;  %v4471_v41 = vrot.slane %v4470_v54, 2 }
 0x8d5   : > { %v4497_v38 = vadd.f32 %v5475_v13, %v4496_v50  ;;  %4566 = vmatprep.subr.bf16.mxu1 %v4535_v25  ;;  %v4624_v50 = vpop.permute.xlu0 %4623 }
 0x8d7   : > { %v4498_v28 = vadd.f32 %v5477_v56, %v4497_v38  ;;  %v4629_v38 = vpop.permute.xlu1 %4628 }
 0x8d8   : > { %4567 = vmatpush1.bf16.msra.mxu1 %v10023_v35 }
 0x8d9   : > { %v4499_v12 = vadd.f32 %v5479_v3, %v4498_v28  ;;  %4568 = vmatprep.subr.bf16.mxu1 %v4537_v33 }
 0x8db   : > { %v4500_v51 = vadd.f32 %v5461_v34, %v4499_v12  ;;  %v10034_v34 = vpack.c.bf16 %v10032_v11, %v10033_v24 }
 0x8dc   : > { %4569 = vmatpush1.bf16.msra.mxu1 %v10024_v42 }
 0x8dd   : > { %v4501_v1 = vadd.f32 %v5463_v30, %v4500_v51  ;;  %4570 = vmatprep.subr.bf16.mxu1 %v4539_v44  ;;  %v4472_v30 = vadd.f32 %v4471_v41, %v4470_v54 }
 0x8df   : > { %v4502_v31 = vadd.f32 %v5465_v5, %v4501_v1  ;;  %v4473_v48 = vrot.slane %v4472_v30, 1 }
 0x8e0   : > { %4571 = vmatpush1.bf16.msra.mxu1 %v10025_v20 }
 0x8e1   : > { %v4503_v37 = vadd.f32 %v5467_v36, %v4502_v31  ;;  %4572 = vmatprep.subr.bf16.mxu1 %v4541_v63  ;;  %v4474_v5 = vadd.f32 %v4473_v48, %v4472_v30 }
 0x8e3   : > { %v4504_v16 = vadd.f32 %v5469_v21, %v4503_v37  ;;  %5480 = vrcp.f32 %v4474_v5 }
 0x8e4   : > { %4573 = vmatpush1.bf16.msra.mxu1 %v10026_v29 }
 0x8e5   : > { %v4505_v4 = vadd.f32 %v5471_v40, %v4504_v16  ;;  %4574 = vmatprep.subr.bf16.mxu1 %v4543_v47  ;;  %v4954_v47 = vld [vmem:[%s9321_s1 + $0x30] sm:$0xff]  }
 0x8e7   : > { %v4506_v15 = vrot.slane %v4505_v4, 4 }
 0x8e8   : > { %4575 = vmatpush1.bf16.msra.mxu1 %v10027_v62 }
 0x8e9   : > { %4647 = vmatprep.subr.bf16.mxu1 %v10031_v53  ;;  %v4507_v22 = vadd.f32 %v4506_v15, %v4505_v4 }
 0x8eb   : > { %4577 = vmatmul.mubr.bf16.vlgmr.msra.gmra.mrb[132].mxu1 %v3566_v23  ;;  %v4508_v60 = vrot.slane %v4507_v22, 2 }
 0x8ec   : > { %4648 = vmatpush1.bf16.msra.mxu1 %v10034_v34  ;;  %4679 = vmatprep.mubr.bf16.mxu1 %v10035_v9 }
 0x8ed   : > { %v4509_v59 = vadd.f32 %v4508_v60, %v4507_v22  ;;  %v5481_v45 = vpop.eup %5480 }
 0x8ef   : > { %v4510_v7 = vrot.slane %v4509_v59, 1 }
 0x8f1   : > { %v4511_v8 = vadd.f32 %v4510_v7, %v4509_v59 }
 0x8f3   : > { %5482 = vrcp.f32 %v4511_v8 }
 0x8fd   : > { %v5483_v36 = vpop.eup %5482 }
 0x9be   : > { %v4578_v44 = vpop.f32.mrb[132].mxu1 }
 0x9bf   : > { %v4587_v19 = vmul.f32 %v5481_v45, %v4578_v44  ;;  %v4580_v61 = vpop.f32.mrb[133].mxu1 }
 0x9c0   : > { %v4588_v21 = vmul.f32 %v5483_v36, %v4580_v61  ;;  %v4582_v17 = vpop.f32.mrb[134].mxu1 }
 0x9c1   : > { %v4605_v63 = vpack.c.bf16 %v4587_v19, %v10036_v39  ;;  %v4583_v40 = vpop.f32.mrb[135].mxu1 }
 0x9c2   : > { %v4606_v2 = vpack.c.bf16 %v4588_v21, %v10037_v49 }
 0x9c4   : > { %4649 = vmatprep.subr.bf16.mxu1 %v4606_v2 }
 0x9c5   : > { %4650 = vmatpush1.bf16.msra.mxu1 %v4605_v63 }
 0x9c8   : > { %4889 = vmatmul.mubr.msk.bf16.vlgmr.msra.gmra.mrb[136].mxu1 %vm362_vm0, %v4954_v47 }
 0x9c9   : > { %4689 = vmatprep.mubr.bf16.mxu1 %v10035_v9 }
 0x9d0   : > { %4890 = vmatmul.mubr.msk.bf16.gmra.mrb[140].mxu1 %vm362_vm0, %v4955_v32 }
 0xa9b   : > { %v4681_v43 = vpop.f32.mrb[136].mxu1 }
 0xa9c   : > { %v4682_v6 = vadd.f32 %v4681_v43, %v4614_v46  ;;  %v4683_v14 = vpop.f32.mrb[137].mxu1 }
 0xa9d   : > { %v4684_v58 = vadd.f32 %v4683_v14, %v4614_v46  ;;  %v4685_v13 = vpop.f32.mrb[138].mxu1 }
 0xa9e   : > { %4700 = vst [vmem:[%s217_s12] sm:$0xff] %v4682_v6  ;;  %v4686_v52 = vadd.f32 %v4685_v13, %v4619_v55  ;;  %v4687_v27 = vpop.f32.mrb[139].mxu1 }
 0xa9f   : > { %4701 = vst [vmem:[%s217_s12 + $0x8] sm:$0xff] %v4684_v58  ;;  %v4688_v56 = vadd.f32 %v4687_v27, %v4619_v55 }
 0xaa0   : > { %4702 = vst [vmem:[%s217_s12 + $0x10] sm:$0xff] %v4686_v52 }
 0xaa1   : > { %4703 = vst [vmem:[%s217_s12 + $0x18] sm:$0xff] %v4688_v56 }
 0xaa3   : > { %v4691_v25 = vpop.f32.mrb[140].mxu1 }
 0xaa4   : > { %v4692_v3 = vadd.f32 %v4691_v25, %v4624_v50  ;;  %v4693_v18 = vpop.f32.mrb[141].mxu1 }
 0xaa5   : > { %v4694_v28 = vadd.f32 %v4693_v18, %v4624_v50  ;;  %v4695_v33 = vpop.f32.mrb[142].mxu1 }
 0xaa6   : > { %4704 = vst [vmem:[%s217_s12 + $0x20] sm:$0xff] %v4692_v3  ;;  %v4696_v35 = vadd.f32 %v4695_v33, %v4629_v38  ;;  %v4697_v12 = vpop.f32.mrb[143].mxu1 }
 0xaa7   : > { %4705 = vst [vmem:[%s217_s12 + $0x28] sm:$0xff] %v4694_v28  ;;  %v4698_v51 = vadd.f32 %v4697_v12, %v4629_v38 }
 0xaa8   : > { %4706 = vst [vmem:[%s217_s12 + $0x30] sm:$0xff] %v4696_v35 }
 0xaa9   : > { %4707 = vst [vmem:[%s217_s12 + $0x38] sm:$0xff] %v4698_v51 }
 0xaaa   : > { %5497 = shalt.err (!%p5494_p3)
}
 0xaab   : > { %s5498_s6 = scalar_lea.hbm %s9273_s17, 1024  ;;  %s5502_s9 = scalar_lea.hbm %s9325_s5, 2048 }
 0xaac   : > { %p5499_p4 = scmp.ne.s32.totalorder %s9273_s17, %s5498_s6  ;;  %p5503_p9 = scmp.lt.u32.totalorder %s9273_s17, %s9325_s5 }
 0xaad   : > { %p5504_p10 = scmp.lt.u32.totalorder %s5502_s9, %s5498_s6  ;;  %p5506_p12 = scmp.lt.u32.totalorder %s5498_s6, %s9273_s17 }
 0xaae   : > { %p5500_p7 = pnand %p5499_p4, %p5620_p5 }
 0xaaf   : > { %p5505_p11 = por %p5504_p10, %p5503_p9 }
 0xab0   : > { %p5501_p8 = pneg %p5500_p7 }
 0xab1   : > { %p5507_p13 = por %p5506_p12, %p5505_p11 }
 0xab3   : > { %p5508_p0 = pnand %p5507_p13, %p5501_p8 }
 0xab5   : > { %5511 = shalt.err (!%p5508_p0)
}
 0xab6   : > { %s5550_s12 = smov 256   ;;  %s5551_s13 = smov 16  }
 0xab7   : > { %4898 = dma.vmem_to_hbm [thread:$0]  (%p5620_p5), %s9275_s14, 1024, %s9273_s17, %s9279_s22, %s5550_s12, %s5550_s12, %s5551_s13  }
 0xab8 PF: > { %p4904_p1 = scmp.ge.s32.totalorder %s5546_s21, 2  ;;  %s4737_s15 = sand.u32 1, %s5534_s18  }
 0xab9   : > { %s4738_s16 = scalar_lea.sflag [#allocation4], %s4737_s15 }
 0xaba   : > { %p4901_p2 = pnand %p4904_p1, %p5624_p6 }
 0xabc   : > { %5529 = dma.done.wait (!%p4901_p2), %s4738_s16, 1024  }
 0xabd   : > { %5531 = vsyncadd (!%p4901_p2), %s4738_s16, 4294966272  ;;  %p15_p3 = scmp.ge.s32.totalorder %s5607_s24, 4   ;;  %s10038_s18 = smov %s5538_s19 }
 0xabe   : > { %s10039_s19 = smov %s5542_s20  ;;  %s10040_s20 = smov %s5618_s27 }
 0xabf   : > { %s10041_s21 = smov %s5607_s24  ;;  %17 = sbr.rel (!%p15_p3) target bundleno = 3 (0x3), region = 78 }
 0xac6   :  { %4743 = vsyncpa [#allocation4], 1 }
 0xac7   :  { %4745 = vsyncpa [#allocation4 + $0x1], 1 }

</bundles_post_ra>
